<compile_context>
chip_gen: v7x
topology: tpu7x:2x2x1
jax: 0.10.0
libtpu: 0.0.40
codegen_flags: <defaults>
</compile_context>

<pallas_src>
import functools

import jax
import jax.numpy as jnp
from jax import lax
from jax.experimental import pallas as pl
from jax.experimental.pallas import tpu as pltpu

BN_EPS_CONV = 1e-3   # EfficientNet backbone BN epsilon
BN_EPS_FC = 1e-5     # nn.BatchNorm1d default epsilon
GEM_P = 3.0
GEM_EPS = 1e-6

C_STEM = 40          # efficientnet-b3 stem channels
C_STEM_PAD = 128     # stem channels padded to a full lane tile (zero-padded)
C_HEAD = 1536        # ENet.out_channels
HEAD_OUT_PAD = 128   # merged classification heads padded to 128 lanes

SPATIAL_TILE_CAP = 1024              # per-step work >> 0.35us step overhead
VMEM_LIMIT_BYTES = 48 * 1024 * 1024  # fits [1024,1536] f32 temps; v7x headroom


def _round_up(x, m):
    return (x + m - 1) // m * m


def _choose_spatial_tile(hw):
    """Spatial tile: multiple of 8, capped; H*W is padded up to a tile multiple."""
    return min(SPATIAL_TILE_CAP, _round_up(hw, 8))


# ---------------------------------------------------------------------------
# Fused kernel: stem conv + head 1x1 conv + SiLU + GeM accumulation + _fc BN
#               + merged classification heads (in the finalize branch).
#   grid = (B, n_spatial_tiles); BN pre-folded into weights; bf16 matmuls,
#   f32 accumulation; per-batch GeM sum kept in a VMEM scratch accumulator.
# ---------------------------------------------------------------------------
def _fused_feat_gem_heads_kernel(patches_ref, ws_ref, bs_ref, wh_ref, bh_ref,
                                 scale_ref, shift_ref, wc_ref, bc_ref,
                                 o_ref, acc_ref, *, hw, tile_s, inv_hw, need_mask):
    s = pl.program_id(1)

    @pl.when(s == 0)
    def _():
        acc_ref[...] = jnp.zeros_like(acc_ref)

    x = patches_ref[0]                                        # [tile_s, Kp] bf16

    # stem conv (as matmul, BN folded into W/b) + SiLU.
    # SiLU via a single EUP transcendental: sigmoid(t) = 0.5 + 0.5*tanh(0.5*t).
    y = jnp.dot(x, ws_ref[...], preferred_element_type=jnp.float32) + bs_ref[...]
    y = y * (0.5 + 0.5 * jnp.tanh(0.5 * y))

    # head 1x1 conv to 1536 ch (BN folded) + SiLU (same single-tanh form)
    z = jnp.dot(y.astype(jnp.bfloat16), wh_ref[...],
                preferred_element_type=jnp.float32) + bh_ref[...]
    z = z * (0.5 + 0.5 * jnp.tanh(0.5 * z))

    # GeM accumulation: clamp(min=eps) then x**3 via two VPU muls (p == 3.0)
    z = jnp.maximum(z, GEM_EPS)
    z3 = z * z * z
    if need_mask:
        # mask spatial padding rows out of the GeM sum (bias+SiLU make them nonzero)
        row = s * tile_s + lax.broadcasted_iota(jnp.int32, (tile_s, 1), 0)
        z3 = z3 * (row < hw).astype(jnp.float32)
    acc_ref[...] += jnp.sum(z3, axis=0, keepdims=True)

    @pl.when(s == pl.num_programs(1) - 1)
    def _():
        mean_p = acc_ref[...] * inv_hw                        # mean over TRUE H*W
        pooled = jnp.exp(jnp.log(mean_p) * (1.0 / GEM_P))     # cube root, tiny row
        feat = pooled * scale_ref[...] + shift_ref[...]       # model._fc BatchNorm1d
        # merged classification heads (BN folded into W/b), fused into finalize
        o_ref[0] = jnp.dot(feat.astype(jnp.bfloat16), wc_ref[...],
                           preferred_element_type=jnp.float32) + bc_ref[...]


def fused_features_gem_heads(patches, prep, *, hw, tile_s):
    b, hw_pad, kp = patches.shape
    n_s = hw_pad // tile_s
    need_mask = hw_pad != hw
    kernel = functools.partial(_fused_feat_gem_heads_kernel,
                               hw=hw, tile_s=tile_s, inv_hw=1.0 / hw,
                               need_mask=need_mask)

    flops = (2 * b * hw_pad * (kp * C_STEM_PAD + C_STEM_PAD * C_HEAD)
             + 2 * b * C_HEAD * HEAD_OUT_PAD)
    transcendentals = b * (hw_pad * (C_STEM_PAD + C_HEAD) + 2 * C_HEAD)
    param_bytes = sum(int(v.size) * v.dtype.itemsize for v in prep.values())
    bytes_accessed = int(patches.size) * 2 + param_bytes + b * HEAD_OUT_PAD * 4

    # NOTE: constant-index weight BlockSpecs are left at the default buffering;
    # single-buffering (pl.Buffered(1)) would shave ~1 MiB of VMEM residency but
    # is not required under the 48 MiB budget.
    out = pl.pallas_call(
        kernel,
        out_shape=jax.ShapeDtypeStruct((b, 1, HEAD_OUT_PAD), jnp.float32),
        grid_spec=pltpu.PrefetchScalarGridSpec(
            num_scalar_prefetch=0,
            grid=(b, n_s),
            in_specs=[
                pl.BlockSpec((1, tile_s, kp), lambda bi, si: (bi, si, 0)),
                pl.BlockSpec((kp, C_STEM_PAD), lambda bi, si: (0, 0)),
                pl.BlockSpec((1, C_STEM_PAD), lambda bi, si: (0, 0)),
                pl.BlockSpec((C_STEM_PAD, C_HEAD), lambda bi, si: (0, 0)),
                pl.BlockSpec((1, C_HEAD), lambda bi, si: (0, 0)),
                pl.BlockSpec((1, C_HEAD), lambda bi, si: (0, 0)),
                pl.BlockSpec((1, C_HEAD), lambda bi, si: (0, 0)),
                pl.BlockSpec((C_HEAD, HEAD_OUT_PAD), lambda bi, si: (0, 0)),
                pl.BlockSpec((1, HEAD_OUT_PAD), lambda bi, si: (0, 0)),
            ],
            out_specs=pl.BlockSpec((1, 1, HEAD_OUT_PAD), lambda bi, si: (bi, 0, 0)),
            scratch_shapes=[pltpu.VMEM((1, C_HEAD), jnp.float32)],
        ),
        compiler_params=pltpu.CompilerParams(
            # TODO(synk): on v7x, pltpu.CORE_PARALLEL on the batch axis would
            # shard the grid across both TensorCores.
            dimension_semantics=("parallel", "arbitrary"),
            vmem_limit_bytes=VMEM_LIMIT_BYTES,
        ),
        cost_estimate=pl.CostEstimate(
            flops=int(flops),
            transcendentals=int(transcendentals),
            bytes_accessed=int(bytes_accessed)),
    )(patches, prep["w_stem"], prep["b_stem"], prep["w_head"], prep["b_head"],
      prep["scale_fc"], prep["shift_fc"], prep["w_heads"], prep["b_heads"])
    return out.reshape(b, HEAD_OUT_PAD)


# ---------------------------------------------------------------------------
# Glue: SAME padding + im2col for the 3x3 stride-2 stem conv (pure slices)
# ---------------------------------------------------------------------------
def _same_pad_1d(dim, k=3, s=2):
    out = -(-dim // s)
    total = max((out - 1) * s + k - dim, 0)
    lo = total // 2
    return lo, total - lo, out


def _im2col_3x3_s2(x_pad, h_out, w_out):
    cols = []
    for kh in range(3):
        for kw in range(3):
            cols.append(x_pad[:, kh:kh + 2 * h_out:2, kw:kw + 2 * w_out:2, :])
    patches = jnp.concatenate(cols, axis=-1)              # [B, Ho, Wo, 9*Cin]
    return patches.reshape(patches.shape[0], h_out * w_out, -1)


# ---------------------------------------------------------------------------
# Parameter construction (deterministic, synthetic) + one-time BN folding
# ---------------------------------------------------------------------------
def _bn_params(key, c):
    k1, k2, k3, k4 = jax.random.split(key, 4)
    gamma = 1.0 + 0.1 * jax.random.normal(k1, (c,), jnp.float32)
    beta = 0.05 * jax.random.normal(k2, (c,), jnp.float32)
    mean = 0.05 * jax.random.normal(k3, (c,), jnp.float32)
    var = jax.random.uniform(k4, (c,), jnp.float32, 0.5, 1.5)
    return gamma, beta, mean, var


def make_params(key, n_channels, n_classes):
    ks = jax.random.split(key, 12)
    p = {}
    p["w_stem"] = 0.1 * jax.random.normal(ks[0], (3, 3, n_channels, C_STEM), jnp.float32)
    p["bn_stem"] = _bn_params(ks[1], C_STEM)
    p["w_head"] = 0.05 * jax.random.normal(ks[2], (C_STEM, C_HEAD), jnp.float32)
    p["bn_head"] = _bn_params(ks[3], C_HEAD)
    p["bn_fc"] = _bn_params(ks[4], C_HEAD)                # model._fc (BatchNorm1d only)
    for i, name in enumerate(("gr", "vo", "co")):
        kb, kw, kbias = jax.random.split(ks[5 + i], 3)
        p[f"bn_{name}"] = _bn_params(kb, C_HEAD)
        p[f"w_{name}"] = 0.02 * jax.random.normal(kw, (C_HEAD, n_classes[i]), jnp.float32)
        p[f"b_{name}"] = 0.01 * jax.random.normal(kbias, (n_classes[i],), jnp.float32)
    return p


def _fold_bn_output(w, bn, eps):
    """y = BN(x @ W)  ->  y = x @ W' + b'   (BN over output channels)."""
    gamma, beta, mean, var = bn
    scale = gamma * lax.rsqrt(var + eps)
    return w * scale[None, :], beta - mean * scale


def _fold_bn_input(w, bias, bn, eps):
    """y = BN(x) @ W + b  ->  y = x @ W' + b'   (BN over input features)."""
    gamma, beta, mean, var = bn
    scale = gamma * lax.rsqrt(var + eps)
    shift = beta - mean * scale
    return w * scale[:, None], bias + shift @ w


def prepare_params(params, n_channels):
    """One-time: fold BNs into weights, pad to lane-dense shapes, cast to bf16."""
    k = 9 * n_channels
    kp = _round_up(k, 32)

    # stem conv: (kh, kw, cin, cout) -> (K, C_STEM); fold BN; pad K->kp, C->128
    w_stem = params["w_stem"].reshape(k, C_STEM)
    w_stem, b_stem = _fold_bn_output(w_stem, params["bn_stem"], BN_EPS_CONV)
    w_stem = jnp.pad(w_stem, ((0, kp - k), (0, C_STEM_PAD - C_STEM)))
    b_stem = jnp.pad(b_stem, (0, C_STEM_PAD - C_STEM))

    # head 1x1 conv: fold BN; pad K (stem channels) to 128 (padded rows are zero)
    w_head, b_head = _fold_bn_output(params["w_head"], params["bn_head"], BN_EPS_CONV)
    w_head = jnp.pad(w_head, ((0, C_STEM_PAD - C_STEM), (0, 0)))

    # model._fc BatchNorm1d applied to the GeM-pooled vector
    g, be, m, v = params["bn_fc"]
    scale_fc = g * lax.rsqrt(v + BN_EPS_FC)
    shift_fc = be - m * scale_fc

    # three heads: fold input-side BN into each W/b, concat, pad to 128 lanes
    ws, bs = [], []
    for name in ("gr", "vo", "co"):
        w_f, b_f = _fold_bn_input(params[f"w_{name}"], params[f"b_{name}"],
                                  params[f"bn_{name}"], BN_EPS_FC)
        ws.append(w_f)
        bs.append(b_f)
    w_all = jnp.concatenate(ws, axis=1)
    b_all = jnp.concatenate(bs, axis=0)
    n_total = w_all.shape[1]
    w_all = jnp.pad(w_all, ((0, 0), (0, HEAD_OUT_PAD - n_total)))
    b_all = jnp.pad(b_all, (0, HEAD_OUT_PAD - n_total))

    return {
        "w_stem": w_stem.astype(jnp.bfloat16),
        "b_stem": b_stem.reshape(1, C_STEM_PAD).astype(jnp.float32),
        "w_head": w_head.astype(jnp.bfloat16),
        "b_head": b_head.reshape(1, C_HEAD).astype(jnp.float32),
        "scale_fc": scale_fc.reshape(1, C_HEAD).astype(jnp.float32),
        "shift_fc": shift_fc.reshape(1, C_HEAD).astype(jnp.float32),
        "w_heads": w_all.astype(jnp.bfloat16),
        "b_heads": b_all.reshape(1, HEAD_OUT_PAD).astype(jnp.float32),
    }


# ---------------------------------------------------------------------------
# Forward (matches ENet.forward semantics: features -> GeM -> BN -> 3 heads)
# ---------------------------------------------------------------------------
@functools.partial(jax.jit, static_argnames=("n_classes",))
def enet_forward(x_nchw, prep, n_classes):
    b, cin, h, w = x_nchw.shape
    x = jnp.transpose(x_nchw, (0, 2, 3, 1))               # NCHW -> NHWC

    # stem conv 3x3 s2 "same" padding -> im2col patches
    h_lo, h_hi, ho = _same_pad_1d(h)
    w_lo, w_hi, wo = _same_pad_1d(w)
    x_pad = jnp.pad(x, ((0, 0), (h_lo, h_hi), (w_lo, w_hi), (0, 0)))
    patches = _im2col_3x3_s2(x_pad, ho, wo)               # [B, Ho*Wo, 9*Cin]

    hw = ho * wo
    k = 9 * cin
    kp = _round_up(k, 32)
    tile_s = _choose_spatial_tile(hw)
    hw_pad = _round_up(hw, tile_s)                        # pad spatial to tile mult
    patches = jnp.pad(patches, ((0, 0), (0, hw_pad - hw), (0, kp - k)))
    patches = patches.astype(jnp.bfloat16)

    # TODO(synk): EfficientNet-b3 MBConv block stack omitted (no clean single-kernel form).

    # single fused pallas_call: stem matmul+SiLU -> head matmul+SiLU -> GeM ->
    # _fc BN -> merged classification heads
    logits = fused_features_gem_heads(patches, prep, hw=hw, tile_s=tile_s)  # [B, 128]

    n0, n1, n2 = n_classes
    return (logits[:, :n0],
            logits[:, n0:n0 + n1],
            logits[:, n0 + n1:n0 + n1 + n2])


if __name__ == "__main__":
    key = jax.random.PRNGKey(0)
    k_x, k_p = jax.random.split(key)

    B, CIN, H, W = 2, 3, 16, 16
    n_classes = (5, 4, 3)

    x = jax.random.normal(k_x, (B, CIN, H, W), jnp.float32)
    params = make_params(k_p, CIN, n_classes)
    prep = prepare_params(params, CIN)

    out_gr, out_vo, out_co = enet_forward(x, prep, n_classes)
    jax.block_until_ready((out_gr, out_vo, out_co))

    assert out_gr.shape == (B, n_classes[0])
    assert out_vo.shape == (B, n_classes[1])
    assert out_co.shape == (B, n_classes[2])
    assert bool(jnp.all(jnp.isfinite(out_gr)))
    assert bool(jnp.all(jnp.isfinite(out_vo)))
    assert bool(jnp.all(jnp.isfinite(out_co)))
    print("KERNEL_OK")
</pallas_src>

<mosaic_0001>
module attributes {stable_mosaic.version = 11 : i64} {
  func.func @_fused_feat_gem_heads_kernel(%arg0: i32, %arg1: i32, %arg2: memref<1x64x32xbf16, #tpu.memory_space<vmem>>, %arg3: memref<32x128xbf16, #tpu.memory_space<vmem>>, %arg4: memref<1x128xf32, #tpu.memory_space<vmem>>, %arg5: memref<128x1536xbf16, #tpu.memory_space<vmem>>, %arg6: memref<1x1536xf32, #tpu.memory_space<vmem>>, %arg7: memref<1x1536xf32, #tpu.memory_space<vmem>>, %arg8: memref<1x1536xf32, #tpu.memory_space<vmem>>, %arg9: memref<1536x128xbf16, #tpu.memory_space<vmem>>, %arg10: memref<1x128xf32, #tpu.memory_space<vmem>>, %arg11: memref<1x1x128xf32, #tpu.memory_space<vmem>>, %arg12: memref<1x1536xf32, #tpu.memory_space<vmem>>) attributes {dimension_semantics = [#tpu.dimension_semantics<parallel>, #tpu.dimension_semantics<arbitrary>], iteration_bounds = array<i64: 2, 1>, scalar_prefetch = 0 : i64, scratch_operands = 1 : i64, tpu.core_type = #tpu.core_type<tc>, window_params = [{transform_indices = @transform_0, window_bounds = array<i64: 1, 64, 32>}, {pipeline_mode = #tpu.pipeline_mode<synchronous>, transform_indices = @transform_1, window_bounds = array<i64: 32, 128>}, {pipeline_mode = #tpu.pipeline_mode<synchronous>, transform_indices = @transform_2, window_bounds = array<i64: 1, 128>}, {pipeline_mode = #tpu.pipeline_mode<synchronous>, transform_indices = @transform_3, window_bounds = array<i64: 128, 1536>}, {pipeline_mode = #tpu.pipeline_mode<synchronous>, transform_indices = @transform_4, window_bounds = array<i64: 1, 1536>}, {pipeline_mode = #tpu.pipeline_mode<synchronous>, transform_indices = @transform_5, window_bounds = array<i64: 1, 1536>}, {pipeline_mode = #tpu.pipeline_mode<synchronous>, transform_indices = @transform_6, window_bounds = array<i64: 1, 1536>}, {pipeline_mode = #tpu.pipeline_mode<synchronous>, transform_indices = @transform_7, window_bounds = array<i64: 1536, 128>}, {pipeline_mode = #tpu.pipeline_mode<synchronous>, transform_indices = @transform_8, window_bounds = array<i64: 1, 128>}, {transform_indices = @transform_9, window_bounds = array<i64: 1, 1, 128>}]} {
    %c0_i32 = arith.constant 0 : i32
    %0 = arith.cmpi eq, %arg1, %c0_i32 : i32
    %1 = arith.extui %0 : i1 to i32
    %c0_i32_0 = arith.constant 0 : i32
    %2 = arith.cmpi ne, %1, %c0_i32_0 : i32
    scf.if %2 {
      %cst_26 = arith.constant 0.000000e+00 : f32
      %44 = vector.broadcast %cst_26 : f32 to vector<1x1536xf32>
      %c0_27 = arith.constant 0 : index
      %c0_28 = arith.constant 0 : index
      %45 = vector.load %arg12[%c0_27, %c0_28] : memref<1x1536xf32, #tpu.memory_space<vmem>>, vector<1x1536xf32>
      tpu.vector_store %arg12[%c0_27, %c0_28], %44 {strides = array<i32>} : memref<1x1536xf32, #tpu.memory_space<vmem>>, vector<1x1536xf32>,
    } else {
    }
    %c0 = arith.constant 0 : index
    %c0_1 = arith.constant 0 : index
    %c0_2 = arith.constant 0 : index
    %3 = vector.load %arg2[%c0, %c0_1, %c0_2] : memref<1x64x32xbf16, #tpu.memory_space<vmem>>, vector<1x64x32xbf16>
    %4 = vector.shape_cast %3 : vector<1x64x32xbf16> to vector<64x32xbf16>
    %c0_3 = arith.constant 0 : index
    %c0_4 = arith.constant 0 : index
    %5 = vector.load %arg3[%c0_3, %c0_4] : memref<32x128xbf16, #tpu.memory_space<vmem>>, vector<32x128xbf16>
    %cst = arith.constant dense<0.000000e+00> : vector<64x128xf32>
    %6 = tpu.matmul %4, %5, %cst {dimension_numbers = #tpu.dot_dimension_numbers<[1], [0], [0], [1], [0, 0, 1, 1], [], []>} : vector<64x32xbf16>, vector<32x128xbf16>, vector<64x128xf32> -> vector<64x128xf32>
    %c0_5 = arith.constant 0 : index
    %c0_6 = arith.constant 0 : index
    %7 = vector.load %arg4[%c0_5, %c0_6] : memref<1x128xf32, #tpu.memory_space<vmem>>, vector<1x128xf32>
    %8 = vector.broadcast %7 : vector<1x128xf32> to vector<64x128xf32>
    %9 = arith.addf %6, %8 : vector<64x128xf32>
    %cst_7 = arith.constant 5.000000e-01 : f32
    %10 = vector.broadcast %cst_7 : f32 to vector<64x128xf32>
    %11 = arith.mulf %10, %9 : vector<64x128xf32>
    %12 = math.tanh %11 : vector<64x128xf32>
    %cst_8 = arith.constant 5.000000e-01 : f32
    %13 = vector.broadcast %cst_8 : f32 to vector<64x128xf32>
    %14 = arith.mulf %13, %12 : vector<64x128xf32>
    %cst_9 = arith.constant 5.000000e-01 : f32
    %15 = vector.broadcast %cst_9 : f32 to vector<64x128xf32>
    %16 = arith.addf %15, %14 : vector<64x128xf32>
    %17 = arith.mulf %9, %16 : vector<64x128xf32>
    %18 = arith.truncf %17 : vector<64x128xf32> to vector<64x128xbf16>
    %c0_10 = arith.constant 0 : index
    %c0_11 = arith.constant 0 : index
    %19 = vector.load %arg5[%c0_10, %c0_11] : memref<128x1536xbf16, #tpu.memory_space<vmem>>, vector<128x1536xbf16>
    %cst_12 = arith.constant dense<0.000000e+00> : vector<64x1536xf32>
    %20 = tpu.matmul %18, %19, %cst_12 {dimension_numbers = #tpu.dot_dimension_numbers<[1], [0], [0], [1], [0, 0, 1, 1], [], []>} : vector<64x128xbf16>, vector<128x1536xbf16>, vector<64x1536xf32> -> vector<64x1536xf32>
    %c0_13 = arith.constant 0 : index
    %c0_14 = arith.constant 0 : index
    %21 = vector.load %arg6[%c0_13, %c0_14] : memref<1x1536xf32, #tpu.memory_space<vmem>>, vector<1x1536xf32>
    %22 = vector.broadcast %21 : vector<1x1536xf32> to vector<64x1536xf32>
    %23 = arith.addf %20, %22 : vector<64x1536xf32>
    %cst_15 = arith.constant 5.000000e-01 : f32
    %24 = vector.broadcast %cst_15 : f32 to vector<64x1536xf32>
    %25 = arith.mulf %24, %23 : vector<64x1536xf32>
    %26 = math.tanh %25 : vector<64x1536xf32>
    %cst_16 = arith.constant 5.000000e-01 : f32
    %27 = vector.broadcast %cst_16 : f32 to vector<64x1536xf32>
    %28 = arith.mulf %27, %26 : vector<64x1536xf32>
    %cst_17 = arith.constant 5.000000e-01 : f32
    %29 = vector.broadcast %cst_17 : f32 to vector<64x1536xf32>
    %30 = arith.addf %29, %28 : vector<64x1536xf32>
    %31 = arith.mulf %23, %30 : vector<64x1536xf32>
    %cst_18 = arith.constant 9.99999997E-7 : f32
    %32 = vector.broadcast %cst_18 : f32 to vector<64x1536xf32>
    %33 = arith.maximumf %31, %32 : vector<64x1536xf32>
    %34 = arith.mulf %33, %33 : vector<64x1536xf32>
    %35 = arith.mulf %34, %33 : vector<64x1536xf32>
    %c0_19 = arith.constant 0 : index
    %c0_20 = arith.constant 0 : index
    %36 = vector.load %arg12[%c0_19, %c0_20] : memref<1x1536xf32, #tpu.memory_space<vmem>>, vector<1x1536xf32>
    %cst_21 = arith.constant dense<0.000000e+00> : vector<1536xf32>
    %37 = vector.multi_reduction <add>, %35, %cst_21 [0] : vector<64x1536xf32> to vector<1536xf32>
    %38 = vector.shape_cast %37 : vector<1536xf32> to vector<1x1536xf32>
    %39 = arith.addf %36, %38 : vector<1x1536xf32>
    %c0_22 = arith.constant 0 : index
    %c0_23 = arith.constant 0 : index
    %40 = vector.load %arg12[%c0_22, %c0_23] : memref<1x1536xf32, #tpu.memory_space<vmem>>, vector<1x1536xf32>
    tpu.vector_store %arg12[%c0_22, %c0_23], %39 {strides = array<i32>} : memref<1x1536xf32, #tpu.memory_space<vmem>>, vector<1x1536xf32>,
    %c0_i32_24 = arith.constant 0 : i32
    %41 = arith.cmpi eq, %arg1, %c0_i32_24 : i32
    %42 = arith.extui %41 : i1 to i32
    %c0_i32_25 = arith.constant 0 : i32
    %43 = arith.cmpi ne, %42, %c0_i32_25 : i32
    scf.if %43 {
      %c0_26 = arith.constant 0 : index
      %c0_27 = arith.constant 0 : index
      %44 = vector.load %arg12[%c0_26, %c0_27] : memref<1x1536xf32, #tpu.memory_space<vmem>>, vector<1x1536xf32>
      %cst_28 = arith.constant 1.562500e-02 : f32
      %45 = vector.broadcast %cst_28 : f32 to vector<1x1536xf32>
      %46 = arith.mulf %44, %45 : vector<1x1536xf32>
      %47 = math.log %46 : vector<1x1536xf32>
      %cst_29 = arith.constant 0.333333343 : f32
      %48 = vector.broadcast %cst_29 : f32 to vector<1x1536xf32>
      %49 = arith.mulf %47, %48 : vector<1x1536xf32>
      %50 = math.exp %49 : vector<1x1536xf32>
      %c0_30 = arith.constant 0 : index
      %c0_31 = arith.constant 0 : index
      %51 = vector.load %arg7[%c0_30, %c0_31] : memref<1x1536xf32, #tpu.memory_space<vmem>>, vector<1x1536xf32>
      %52 = arith.mulf %50, %51 : vector<1x1536xf32>
      %c0_32 = arith.constant 0 : index
      %c0_33 = arith.constant 0 : index
      %53 = vector.load %arg8[%c0_32, %c0_33] : memref<1x1536xf32, #tpu.memory_space<vmem>>, vector<1x1536xf32>
      %54 = arith.addf %52, %53 : vector<1x1536xf32>
      %55 = arith.truncf %54 : vector<1x1536xf32> to vector<1x1536xbf16>
      %c0_34 = arith.constant 0 : index
      %c0_35 = arith.constant 0 : index
      %56 = vector.load %arg9[%c0_34, %c0_35] : memref<1536x128xbf16, #tpu.memory_space<vmem>>, vector<1536x128xbf16>
      %cst_36 = arith.constant dense<0.000000e+00> : vector<1x128xf32>
      %57 = tpu.matmul %55, %56, %cst_36 {dimension_numbers = #tpu.dot_dimension_numbers<[1], [0], [0], [1], [0, 0, 1, 1], [], []>} : vector<1x1536xbf16>, vector<1536x128xbf16>, vector<1x128xf32> -> vector<1x128xf32>
      %c0_37 = arith.constant 0 : index
      %c0_38 = arith.constant 0 : index
      %58 = vector.load %arg10[%c0_37, %c0_38] : memref<1x128xf32, #tpu.memory_space<vmem>>, vector<1x128xf32>
      %59 = arith.addf %57, %58 : vector<1x128xf32>
      %c0_39 = arith.constant 0 : index
      %c0_40 = arith.constant 0 : index
      %c0_41 = arith.constant 0 : index
      %60 = vector.load %arg11[%c0_39, %c0_40, %c0_41] : memref<1x1x128xf32, #tpu.memory_space<vmem>>, vector<1x1x128xf32>
      %61 = vector.shape_cast %60 : vector<1x1x128xf32> to vector<1x128xf32>
      %62 = vector.shape_cast %59 : vector<1x128xf32> to vector<1x1x128xf32>
      tpu.vector_store %arg11[%c0_39, %c0_40, %c0_41], %62 {strides = array<i32>} : memref<1x1x128xf32, #tpu.memory_space<vmem>>, vector<1x1x128xf32>,
    } else {
    }
    return
  }
  func.func @transform_0(%arg0: i32, %arg1: i32) -> (i32, i32, i32) {
    %c0_i32 = arith.constant 0 : i32
    %c0_i32_0 = arith.constant 0 : i32
    return %arg0, %arg1, %c0_i32 : i32, i32, i32
  }
  func.func @transform_1(%arg0: i32, %arg1: i32) -> (i32, i32) {
    %c0_i32 = arith.constant 0 : i32
    %c0_i32_0 = arith.constant 0 : i32
    %c0_i32_1 = arith.constant 0 : i32
    return %c0_i32, %c0_i32_0 : i32, i32
  }
  func.func @transform_2(%arg0: i32, %arg1: i32) -> (i32, i32) {
    %c0_i32 = arith.constant 0 : i32
    %c0_i32_0 = arith.constant 0 : i32
    %c0_i32_1 = arith.constant 0 : i32
    return %c0_i32, %c0_i32_0 : i32, i32
  }
  func.func @transform_3(%arg0: i32, %arg1: i32) -> (i32, i32) {
    %c0_i32 = arith.constant 0 : i32
    %c0_i32_0 = arith.constant 0 : i32
    %c0_i32_1 = arith.constant 0 : i32
    return %c0_i32, %c0_i32_0 : i32, i32
  }
  func.func @transform_4(%arg0: i32, %arg1: i32) -> (i32, i32) {
    %c0_i32 = arith.constant 0 : i32
    %c0_i32_0 = arith.constant 0 : i32
    %c0_i32_1 = arith.constant 0 : i32
    return %c0_i32, %c0_i32_0 : i32, i32
  }
  func.func @transform_5(%arg0: i32, %arg1: i32) -> (i32, i32) {
    %c0_i32 = arith.constant 0 : i32
    %c0_i32_0 = arith.constant 0 : i32
    %c0_i32_1 = arith.constant 0 : i32
    return %c0_i32, %c0_i32_0 : i32, i32
  }
  func.func @transform_6(%arg0: i32, %arg1: i32) -> (i32, i32) {
    %c0_i32 = arith.constant 0 : i32
    %c0_i32_0 = arith.constant 0 : i32
    %c0_i32_1 = arith.constant 0 : i32
    return %c0_i32, %c0_i32_0 : i32, i32
  }
  func.func @transform_7(%arg0: i32, %arg1: i32) -> (i32, i32) {
    %c0_i32 = arith.constant 0 : i32
    %c0_i32_0 = arith.constant 0 : i32
    %c0_i32_1 = arith.constant 0 : i32
    return %c0_i32, %c0_i32_0 : i32, i32
  }
  func.func @transform_8(%arg0: i32, %arg1: i32) -> (i32, i32) {
    %c0_i32 = arith.constant 0 : i32
    %c0_i32_0 = arith.constant 0 : i32
    %c0_i32_1 = arith.constant 0 : i32
    return %c0_i32, %c0_i32_0 : i32, i32
  }
  func.func @transform_9(%arg0: i32, %arg1: i32) -> (i32, i32, i32) {
    %c0_i32 = arith.constant 0 : i32
    %c0_i32_0 = arith.constant 0 : i32
    %c0_i32_1 = arith.constant 0 : i32
    return %arg0, %c0_i32, %c0_i32_0 : i32, i32, i32
  }
}

</mosaic_0001>

<bundles_post_ra>
// kernel: enet_forward.1
= control target key start
LH: loop header
LB: loop body
LE: loop exit
PB: predicated region body
PF: predicated region fallthrough
CT: control target
= control target key end

     0   :  { %s4739_s30 = smov 0   ;;  %s4741_s10 = smov 0   ;;  %s6323_s0 = inlined_call_operand.vmem [shape: bf16[2,64,32], index: 0, kind: input, shape index: {}]   ;;  %s6324_s1 = inlined_call_operand.vmem [shape: bf16[32,128], index: 1, kind: input, shape index: {}]   ;;  %s6325_s2 = inlined_call_operand.vmem [shape: f32[1,128], index: 2, kind: input, shape index: {}]   ;;  %s6326_s3 = inlined_call_operand.vmem [shape: bf16[128,1536], index: 3, kind: input, shape index: {}]   ;;  %s6327_s4 = inlined_call_operand.vmem [shape: f32[1,1536], index: 4, kind: input, shape index: {}]   ;;  %s6328_s5 = inlined_call_operand.vmem [shape: f32[1,1536], index: 5, kind: input, shape index: {}]   ;;  %s6329_s6 = inlined_call_operand.vmem [shape: f32[1,1536], index: 6, kind: input, shape index: {}]   ;;  %s6330_s7 = inlined_call_operand.vmem [shape: bf16[1536,128], index: 7, kind: input, shape index: {}]   ;;  %s6331_s8 = inlined_call_operand.vmem [shape: f32[1,128], index: 8, kind: input, shape index: {}]   ;;  %s6332_s9 = inlined_call_operand.vmem [shape: f32[2,1,128], index: 9, kind: output, shape index: {}]  }
   0x1   :  { %s4743_s11 = smov 0  }
   0x2 LB: > { %s31_s12 = sadd.s32 1, %s4680_s10  ;;  %p3814_p0 = scmp.ge.s32.totalorder %s4684_s11, 1  ;;  %s4684_s11 = sphi %s4743_s11, %s19_s11   ;;  %s4680_s10 = sphi %s4741_s10, %s6453_s10   ;;  %s4676_s30 = sphi %s4739_s30, %s6452_s30  }
   0x3   : > { %p33_p1 = scmp.ge.s32.totalorder %s31_s12, 2  ;;  %p306_p2 = scmp.lt.s32.totalorder %s4684_s11, 3 }
   0x5   : > { %s6455_s12 = smov (%p33_p1, %s31_s12), 0  ;;  %p307_p3 = pnand %p3814_p0, %p306_p2 }
   0x7   : > { %310 = sbr.rel (%p307_p3) target bundleno = 1048 (0x418), region = 56 }
   0xe   : > { %v4200_v0 = vld [vmem:[%s6324_s1] sm:$0xff]   ;;  %p345_p4 = scmp.lt.s32.totalorder %s4676_s30, 1  ;;  %v4201_v1 = vld [vmem:[%s6324_s1 + $0x8] sm:$0xff]   ;;  %vm419_vm0 = vcmask 261120   ;;  %v4686_v40 = vmov 0  }
   0xf   : > { %4161 = vmatprep.subr.bf16.mxu0 %v4200_v0  ;;  %v4206_v2 = vld [vmem:[%s6326_s3 + $0x4] ss:$48 sps:$4 sm:$0xff]   ;;  %v4210_v3 = vld [vmem:[%s6326_s3 + $0xc] ss:$48 sps:$4 sm:$0xff]   ;;  %v4211_v4 = vld [vmem:[%s6326_s3] ss:$48 sps:$4 sm:$0xff]   ;;  %1213 = vmatprep.mubr.bf16.mxu1 %v4686_v40 }
  0x10   : > { %s6457_s30 = smov (!%p345_p4, %s4676_s30), 1  ;;  %4162 = vmatpush3.bf16.msra.mxu0 %v4200_v0  ;;  %1181 = vmatprep.subr.bf16.mxu1 %v4206_v2  ;;  %v4208_v5 = vld [vmem:[%s6326_s3 + $0x8] ss:$48 sps:$4 sm:$0xff]   ;;  %v4212_v6 = vld [vmem:[%s6326_s3 + $0x64] ss:$48 sps:$4 sm:$0xff]  }
  0x11   : > { %4163 = vmatprep.subr.bf16.mxu0 %v4201_v1  ;;  %s4022_s19 = sshll.u32 %s6457_s30, 5  ;;  %1182 = vmatpush1.bf16.msra.mxu1 %v4211_v4  ;;  %v4214_v10 = vld [vmem:[%s6326_s3 + $0x68] ss:$48 sps:$4 sm:$0xff]   ;;  %v4216_v11 = vld [vmem:[%s6326_s3 + $0x6c] ss:$48 sps:$4 sm:$0xff]   ;;  %s356_s15 = scalar_lea.vmem %s6332_s9, %s6457_s30 }
  0x12   : > { %s352_s26 = scalar_lea.vmem %s6323_s0, %s4022_s19  ;;  %1183 = vmatprep.subr.bf16.mxu1 %v4212_v6  ;;  %v4217_v12 = vld [vmem:[%s6326_s3 + $0x60] ss:$48 sps:$4 sm:$0xff]   ;;  %v4218_v14 = vld [vmem:[%s6326_s3 + $0xc4] ss:$48 sps:$4 sm:$0xff]   ;;  %v4222_v15 = vld [vmem:[%s6326_s3 + $0xcc] ss:$48 sps:$4 sm:$0xff]  }
  0x13   : > { %v4202_v7 = vld [vmem:[%s352_s26] sm:$0xff]   ;;  %v4203_v8 = vld [vmem:[%s352_s26 + $0x8] sm:$0xff]   ;;  %v4204_v9 = vld [vmem:[%s352_s26 + $0x10] sm:$0xff]  }
  0x14   : > { %4164 = vmatpush3.bf16.msra.mxu0 %v4201_v1  ;;  %4165 = vmatprep.mubr.msk.bf16.mxu0 %vm419_vm0, %v4202_v7  ;;  %v4205_v13 = vld [vmem:[%s352_s26 + $0x18] sm:$0xff]   ;;  %v4223_v17 = vld [vmem:[%s6326_s3 + $0xc0] ss:$48 sps:$4 sm:$0xff]   ;;  %v4224_v18 = vld [vmem:[%s6326_s3 + $0x124] ss:$48 sps:$4 sm:$0xff]  }
  0x15   : > { %1254 = vmatprep.subr.bf16.mxu0 %v4210_v3  ;;  %1184 = vmatpush1.bf16.msra.mxu1 %v4217_v12  ;;  %v4220_v16 = vld [vmem:[%s6326_s3 + $0xc8] ss:$48 sps:$4 sm:$0xff]   ;;  %v4228_v19 = vld [vmem:[%s6326_s3 + $0x12c] ss:$48 sps:$4 sm:$0xff]   ;;  %v4229_v21 = vld [vmem:[%s6326_s3 + $0x120] ss:$48 sps:$4 sm:$0xff]  }
  0x16   : > { %1185 = vmatprep.subr.bf16.mxu1 %v4218_v14  ;;  %v4226_v20 = vld [vmem:[%s6326_s3 + $0x128] ss:$48 sps:$4 sm:$0xff]   ;;  %v4230_v22 = vld [vmem:[%s6326_s3 + $0x184] ss:$48 sps:$4 sm:$0xff]   ;;  %v4234_v23 = vld [vmem:[%s6326_s3 + $0x18c] ss:$48 sps:$4 sm:$0xff]  }
  0x17   : > { %4166 = vmatmul.mubr.msk.bf16.vlgmr.msra.gmra.mrb[0].mxu0 %vm419_vm0, %v4203_v8  ;;  %v4232_v24 = vld [vmem:[%s6326_s3 + $0x188] ss:$48 sps:$4 sm:$0xff]   ;;  %v4235_v25 = vld [vmem:[%s6326_s3 + $0x180] ss:$48 sps:$4 sm:$0xff]   ;;  %v4236_v26 = vld [vmem:[%s6326_s3 + $0x1e4] ss:$48 sps:$4 sm:$0xff]  }
  0x18   : > { %4169 = vmatprep.mubr.msk.bf16.mxu0 %vm419_vm0, %v4204_v9  ;;  %1255 = vmatpush1.bf16.msra.mxu0 %v4208_v5  ;;  %v4240_v27 = vld [vmem:[%s6326_s3 + $0x1ec] ss:$48 sps:$4 sm:$0xff]   ;;  %v4238_v28 = vld [vmem:[%s6326_s3 + $0x1e8] ss:$48 sps:$4 sm:$0xff]   ;;  %v4241_v29 = vld [vmem:[%s6326_s3 + $0x1e0] ss:$48 sps:$4 sm:$0xff]  }
  0x19   : > { %1256 = vmatprep.subr.bf16.mxu0 %v4216_v11  ;;  %1186 = vmatpush1.bf16.msra.mxu1 %v4223_v17  ;;  %v4242_v30 = vld [vmem:[%s6326_s3 + $0x244] ss:$48 sps:$4 sm:$0xff]   ;;  %v4246_v31 = vld [vmem:[%s6326_s3 + $0x24c] ss:$48 sps:$4 sm:$0xff]   ;;  %v4244_v32 = vld [vmem:[%s6326_s3 + $0x248] ss:$48 sps:$4 sm:$0xff]  }
  0x1a   : > { %1187 = vmatprep.subr.bf16.mxu1 %v4224_v18  ;;  %v4247_v33 = vld [vmem:[%s6326_s3 + $0x240] ss:$48 sps:$4 sm:$0xff]   ;;  %v4248_v34 = vld [vmem:[%s6326_s3 + $0x2a4] ss:$48 sps:$4 sm:$0xff]   ;;  %v4252_v35 = vld [vmem:[%s6326_s3 + $0x2ac] ss:$48 sps:$4 sm:$0xff]  }
  0x1b   : > { %v4250_v36 = vld [vmem:[%s6326_s3 + $0x2a8] ss:$48 sps:$4 sm:$0xff]   ;;  %v4253_v37 = vld [vmem:[%s6326_s3 + $0x2a0] ss:$48 sps:$4 sm:$0xff]   ;;  %v4256_v38 = vld [vmem:[%s6326_s3 + $0x14] ss:$48 sps:$4 sm:$0xff]  }
  0x1c   : > { %1257 = vmatpush1.bf16.msra.mxu0 %v4214_v10  ;;  %v4259_v39 = vld [vmem:[%s6326_s3 + $0x1c] ss:$48 sps:$4 sm:$0xff]   ;;  %v3817_v41 = vld [vmem:[%s6325_s2] ss:$0 sm:$0xff] }
  0x1d   : > { %1258 = vmatprep.subr.bf16.mxu0 %v4222_v15  ;;  %1188 = vmatpush1.bf16.msra.mxu1 %v4229_v21 }
  0x1e   : > { %1189 = vmatprep.subr.bf16.mxu1 %v4230_v22  ;;  %v4254_v22 = vld [vmem:[%s6326_s3 + $0x10] ss:$48 sps:$4 sm:$0xff]  }
  0x1f   : > { %4170 = vmatmul.mubr.msk.bf16.gmra.mrb[4].mxu0 %vm419_vm0, %v4205_v13 }
  0x20   : > { %1259 = vmatpush1.bf16.msra.mxu0 %v4220_v16  ;;  %1286 = vmatprep.mubr.bf16.mxu0 %v4686_v40 }
  0x21   : > { %1260 = vmatprep.subr.bf16.mxu0 %v4228_v19  ;;  %1190 = vmatpush1.bf16.msra.mxu1 %v4235_v25 }
  0x22   : > { %1191 = vmatprep.subr.bf16.mxu1 %v4236_v26 }
  0x24   : > { %1261 = vmatpush1.bf16.msra.mxu0 %v4226_v20 }
  0x25   : > { %1262 = vmatprep.subr.bf16.mxu0 %v4234_v23  ;;  %1192 = vmatpush1.bf16.msra.mxu1 %v4241_v29  ;;  %v4257_v23 = vld [vmem:[%s6326_s3 + $0x18] ss:$48 sps:$4 sm:$0xff]  }
  0x26   : > { %1193 = vmatprep.subr.bf16.mxu1 %v4242_v30 }
  0x28   : > { %1263 = vmatpush1.bf16.msra.mxu0 %v4232_v24 }
  0x29   : > { %1264 = vmatprep.subr.bf16.mxu0 %v4240_v27  ;;  %1194 = vmatpush1.bf16.msra.mxu1 %v4247_v33  ;;  %v4262_v27 = vld [vmem:[%s6326_s3 + $0x74] ss:$48 sps:$4 sm:$0xff]  }
  0x2a   : > { %1195 = vmatprep.subr.bf16.mxu1 %v4248_v34 }
  0x2c   : > { %1265 = vmatpush1.bf16.msra.mxu0 %v4238_v28  ;;  %v4265_v28 = vld [vmem:[%s6326_s3 + $0x7c] ss:$48 sps:$4 sm:$0xff]  }
  0x2d   : > { %1266 = vmatprep.subr.bf16.mxu0 %v4246_v31  ;;  %1196 = vmatpush1.bf16.msra.mxu1 %v4253_v37 }
  0x2e   : > { %1327 = vmatprep.subr.bf16.mxu1 %v4256_v38  ;;  %v4268_v38 = vld [vmem:[%s6326_s3 + $0xd4] ss:$48 sps:$4 sm:$0xff]  }
  0x30   : > { %1267 = vmatpush1.bf16.msra.mxu0 %v4244_v32 }
  0x31   : > { %1268 = vmatprep.subr.bf16.mxu0 %v4252_v35  ;;  %v4260_v35 = vld [vmem:[%s6326_s3 + $0x70] ss:$48 sps:$4 sm:$0xff]  }
  0x34   : > { %1269 = vmatpush1.bf16.msra.mxu0 %v4250_v36  ;;  %v4263_v36 = vld [vmem:[%s6326_s3 + $0x78] ss:$48 sps:$4 sm:$0xff]  }
  0x35   : > { %1400 = vmatprep.subr.bf16.mxu0 %v4259_v39  ;;  %v4271_v39 = vld [vmem:[%s6326_s3 + $0xdc] ss:$48 sps:$4 sm:$0xff]  }
  0xea   : > { %v4167_v42 = vpop.f32.mrb[0].mxu0 }
  0xeb   : > { %v475_v43 = vadd.f32 %v4167_v42, %v3817_v41  ;;  %v466_v44 = vpop.f32.mrb[1].mxu0 }
  0xec   : > { %v467_v45 = vadd.f32 %v3817_v41, %v466_v44  ;;  %v4168_v46 = vpop.f32.mrb[2].mxu0 }
  0xed   : > { %v499_v47 = vmul.f32 0.5, %v475_v43  ;;  %v478_v48 = vadd.f32 %v4168_v46, %v3817_v41  ;;  %v469_v49 = vpop.f32.mrb[3].mxu0  ;;  %v4266_v46 = vld [vmem:[%s6326_s3 + $0xd0] ss:$48 sps:$4 sm:$0xff]  }
  0xee   : > { %v497_v50 = vmul.f32 0.5, %v467_v45  ;;  %v470_v51 = vadd.f32 %v3817_v41, %v469_v49  ;;  %v4274_v49 = vld [vmem:[%s6326_s3 + $0x134] ss:$48 sps:$4 sm:$0xff]  }
  0xef   : > { %4446 = vtanh.f32 %v499_v47  ;;  %v500_v52 = vmul.f32 0.5, %v478_v48  ;;  %v4269_v47 = vld [vmem:[%s6326_s3 + $0xd8] ss:$48 sps:$4 sm:$0xff]  }
  0xf0   : > { %4448 = vtanh.f32 %v497_v50  ;;  %v498_v53 = vmul.f32 0.5, %v470_v51  ;;  %v4277_v50 = vld [vmem:[%s6326_s3 + $0x13c] ss:$48 sps:$4 sm:$0xff]  }
  0xf1   : > { %4450 = vtanh.f32 %v500_v52  ;;  %v4275_v52 = vld [vmem:[%s6326_s3 + $0x138] ss:$48 sps:$4 sm:$0xff]  }
  0xf2   : > { %4452 = vtanh.f32 %v498_v53  ;;  %v4171_v54 = vpop.f32.mrb[4].mxu0  ;;  %v4280_v53 = vld [vmem:[%s6326_s3 + $0x194] ss:$48 sps:$4 sm:$0xff]  }
  0xf3   : > { %v491_v55 = vadd.f32 %v4171_v54, %v3817_v41  ;;  %v482_v56 = vpop.f32.mrb[5].mxu0  ;;  %v4283_v54 = vld [vmem:[%s6326_s3 + $0x19c] ss:$48 sps:$4 sm:$0xff]  }
  0xf4   : > { %v483_v57 = vadd.f32 %v3817_v41, %v482_v56  ;;  %v4172_v58 = vpop.f32.mrb[6].mxu0  ;;  %v4281_v56 = vld [vmem:[%s6326_s3 + $0x198] ss:$48 sps:$4 sm:$0xff]  }
  0xf5   : > { %v503_v59 = vmul.f32 0.5, %v491_v55  ;;  %v494_v60 = vadd.f32 %v4172_v58, %v3817_v41  ;;  %v485_v61 = vpop.f32.mrb[7].mxu0  ;;  %v4289_v58 = vld [vmem:[%s6326_s3 + $0x1fc] ss:$48 sps:$4 sm:$0xff]  }
  0xf6   : > { %v501_v62 = vmul.f32 0.5, %v483_v57  ;;  %v486_v63 = vadd.f32 %v3817_v41, %v485_v61  ;;  %v4292_v61 = vld [vmem:[%s6326_s3 + $0x254] ss:$48 sps:$4 sm:$0xff]  }
  0xf7   : > { %4454 = vtanh.f32 %v503_v59  ;;  %v504_v0 = vmul.f32 0.5, %v494_v60  ;;  %v4284_v59 = vld [vmem:[%s6326_s3 + $0x1f0] ss:$48 sps:$4 sm:$0xff]  }
  0xf8   : > { %4456 = vtanh.f32 %v501_v62  ;;  %v502_v1 = vmul.f32 0.5, %v486_v63  ;;  %v4295_v62 = vld [vmem:[%s6326_s3 + $0x25c] ss:$48 sps:$4 sm:$0xff]  }
  0xf9   : > { %v4447_v2 = vpop.eup %4446  ;;  %4458 = vtanh.f32 %v504_v0  ;;  %v4293_v0 = vld [vmem:[%s6326_s3 + $0x258] ss:$48 sps:$4 sm:$0xff]  }
  0xfa   : > { %v4449_v3 = vpop.eup %4448  ;;  %v515_v4 = vmul.f32 0.5, %v4447_v2  ;;  %4460 = vtanh.f32 %v502_v1  ;;  %v4298_v1 = vld [vmem:[%s6326_s3 + $0x2b4] ss:$48 sps:$4 sm:$0xff]   ;;  %v4301_v2 = vld [vmem:[%s6326_s3 + $0x2bc] ss:$48 sps:$4 sm:$0xff]  }
  0xfb   : > { %v4451_v5 = vpop.eup %4450  ;;  %v513_v6 = vmul.f32 0.5, %v4449_v3  ;;  %v4296_v3 = vld [vmem:[%s6326_s3 + $0x2b0] ss:$48 sps:$4 sm:$0xff]  }
  0xfc   : > { %v4453_v7 = vpop.eup %4452  ;;  %v523_v8 = vadd.f32 0.5, %v515_v4  ;;  %v516_v9 = vmul.f32 0.5, %v4451_v5  ;;  %v4299_v4 = vld [vmem:[%s6326_s3 + $0x2b8] ss:$48 sps:$4 sm:$0xff]   ;;  %v4304_v5 = vld [vmem:[%s6326_s3 + $0x24] ss:$48 sps:$4 sm:$0xff]  }
  0xfd   : > { %v521_v10 = vadd.f32 0.5, %v513_v6  ;;  %v514_v11 = vmul.f32 0.5, %v4453_v7  ;;  %v4307_v6 = vld [vmem:[%s6326_s3 + $0x2c] ss:$48 sps:$4 sm:$0xff]   ;;  %v4302_v7 = vld [vmem:[%s6326_s3 + $0x20] ss:$48 sps:$4 sm:$0xff]  }
  0xfe   : > { %v524_v12 = vadd.f32 0.5, %v516_v9  ;;  %v531_v14 = vmul.f32 %v523_v8, %v475_v43  ;;  %v4305_v8 = vld [vmem:[%s6326_s3 + $0x28] ss:$48 sps:$4 sm:$0xff]   ;;  %v4310_v9 = vld [vmem:[%s6326_s3 + $0x84] ss:$48 sps:$4 sm:$0xff]  }
  0xff   : > { %v522_v13 = vadd.f32 0.5, %v514_v11  ;;  %v529_v17 = vmul.f32 %v521_v10, %v467_v45  ;;  %v4313_v10 = vld [vmem:[%s6326_s3 + $0x8c] ss:$48 sps:$4 sm:$0xff]   ;;  %v4308_v11 = vld [vmem:[%s6326_s3 + $0x80] ss:$48 sps:$4 sm:$0xff]  }
 0x100   : > { %v532_v15 = vmul.f32 %v524_v12, %v478_v48  ;;  %v4311_v12 = vld [vmem:[%s6326_s3 + $0x88] ss:$48 sps:$4 sm:$0xff]  }
 0x101   : > { %v4455_v16 = vpop.eup %4454  ;;  %v530_v18 = vmul.f32 %v522_v13, %v470_v51  ;;  %v4272_v51 = vld [vmem:[%s6326_s3 + $0x130] ss:$48 sps:$4 sm:$0xff]   ;;  %v4316_v13 = vld [vmem:[%s6326_s3 + $0xe4] ss:$48 sps:$4 sm:$0xff]  }
 0x102   : > { %v4457_v19 = vpop.eup %4456  ;;  %v4880_v20 = vpack.c.bf16 %v532_v15, %v531_v14  ;;  %v519_v21 = vmul.f32 0.5, %v4455_v16  ;;  %v4319_v14 = vld [vmem:[%s6326_s3 + $0xec] ss:$48 sps:$4 sm:$0xff]   ;;  %v4314_v15 = vld [vmem:[%s6326_s3 + $0xe0] ss:$48 sps:$4 sm:$0xff]  }
 0x103   : > { %v4459_v24 = vpop.eup %4458  ;;  %v4888_v25 = vpack.c.bf16 %v530_v18, %v529_v17  ;;  %v517_v26 = vmul.f32 0.5, %v4457_v19  ;;  %v4317_v16 = vld [vmem:[%s6326_s3 + $0xe8] ss:$48 sps:$4 sm:$0xff]   ;;  %v4322_v17 = vld [vmem:[%s6326_s3 + $0x144] ss:$48 sps:$4 sm:$0xff]  }
 0x104   : > { %v4461_v29 = vpop.eup %4460  ;;  %v527_v30 = vadd.f32 0.5, %v519_v21  ;;  %v520_v31 = vmul.f32 0.5, %v4459_v24  ;;  %v4325_v18 = vld [vmem:[%s6326_s3 + $0x14c] ss:$48 sps:$4 sm:$0xff]   ;;  %v4320_v19 = vld [vmem:[%s6326_s3 + $0x140] ss:$48 sps:$4 sm:$0xff]  }
 0x105   : > { %v525_v32 = vadd.f32 0.5, %v517_v26  ;;  %v518_v33 = vmul.f32 0.5, %v4461_v29  ;;  %1214 = vmatmul.mubr.bf16.vlgmr.msra.gmra.mrb[0].mxu1 %v4888_v25  ;;  %1287 = vmatmul.mubr.bf16.vlgmr.msra.gmra.mrb[8].mxu0 %v4888_v25  ;;  %v4323_v21 = vld [vmem:[%s6326_s3 + $0x148] ss:$48 sps:$4 sm:$0xff]   ;;  %v4326_v24 = vld [vmem:[%s6326_s3 + $0x1a0] ss:$48 sps:$4 sm:$0xff]  }
 0x106   : > { %v528_v34 = vadd.f32 0.5, %v520_v31  ;;  %1328 = vmatpush1.bf16.msra.mxu1 %v4254_v22  ;;  %1401 = vmatpush1.bf16.msra.mxu0 %v4257_v23  ;;  %v535_v41 = vmul.f32 %v527_v30, %v491_v55  ;;  %v4278_v55 = vld [vmem:[%s6326_s3 + $0x190] ss:$48 sps:$4 sm:$0xff]   ;;  %v4328_v22 = vld [vmem:[%s6326_s3 + $0x1a4] ss:$48 sps:$4 sm:$0xff]  }
 0x107   : > { %v526_v37 = vadd.f32 0.5, %v518_v33  ;;  %1329 = vmatprep.subr.bf16.mxu1 %v4262_v27  ;;  %1402 = vmatprep.subr.bf16.mxu0 %v4265_v28  ;;  %v533_v43 = vmul.f32 %v525_v32, %v483_v57  ;;  %v4286_v57 = vld [vmem:[%s6326_s3 + $0x1f4] ss:$48 sps:$4 sm:$0xff]   ;;  %v4331_v23 = vld [vmem:[%s6326_s3 + $0x1ac] ss:$48 sps:$4 sm:$0xff]  }
 0x108   : > { %v536_v42 = vmul.f32 %v528_v34, %v494_v60  ;;  %1223 = vmatprep.mubr.bf16.mxu1 %v4686_v40  ;;  %1296 = vmatprep.mubr.bf16.mxu0 %v4686_v40  ;;  %v4287_v60 = vld [vmem:[%s6326_s3 + $0x1f8] ss:$48 sps:$4 sm:$0xff]   ;;  %v4334_v27 = vld [vmem:[%s6326_s3 + $0x204] ss:$48 sps:$4 sm:$0xff]   ;;  %v4337_v28 = vld [vmem:[%s6326_s3 + $0x20c] ss:$48 sps:$4 sm:$0xff]  }
 0x109   : > { %v534_v44 = vmul.f32 %v526_v37, %v486_v63  ;;  %v4290_v63 = vld [vmem:[%s6326_s3 + $0x250] ss:$48 sps:$4 sm:$0xff]   ;;  %v4329_v26 = vld [vmem:[%s6326_s3 + $0x1a8] ss:$48 sps:$4 sm:$0xff]   ;;  %v4340_v31 = vld [vmem:[%s6326_s3 + $0x264] ss:$48 sps:$4 sm:$0xff]  }
 0x10a   : > { %v4912_v45 = vpack.c.bf16 %v536_v42, %v535_v41  ;;  %1330 = vmatpush1.bf16.msra.mxu1 %v4260_v35  ;;  %1403 = vmatpush1.bf16.msra.mxu0 %v4263_v36  ;;  %v4332_v29 = vld [vmem:[%s6326_s3 + $0x200] ss:$48 sps:$4 sm:$0xff]   ;;  %v4335_v30 = vld [vmem:[%s6326_s3 + $0x208] ss:$48 sps:$4 sm:$0xff]   ;;  %v4343_v32 = vld [vmem:[%s6326_s3 + $0x26c] ss:$48 sps:$4 sm:$0xff]  }
 0x10b   : > { %v4920_v48 = vpack.c.bf16 %v534_v44, %v533_v43  ;;  %1331 = vmatprep.subr.bf16.mxu1 %v4268_v38  ;;  %1404 = vmatprep.subr.bf16.mxu0 %v4271_v39  ;;  %v4338_v33 = vld [vmem:[%s6326_s3 + $0x260] ss:$48 sps:$4 sm:$0xff]   ;;  %v4341_v34 = vld [vmem:[%s6326_s3 + $0x268] ss:$48 sps:$4 sm:$0xff]   ;;  %v4346_v35 = vld [vmem:[%s6326_s3 + $0x2c4] ss:$48 sps:$4 sm:$0xff]  }
 0x10c   : > { %v4349_v36 = vld [vmem:[%s6326_s3 + $0x2cc] ss:$48 sps:$4 sm:$0xff]   ;;  %v4344_v37 = vld [vmem:[%s6326_s3 + $0x2c0] ss:$48 sps:$4 sm:$0xff]   ;;  %v4347_v38 = vld [vmem:[%s6326_s3 + $0x2c8] ss:$48 sps:$4 sm:$0xff]  }
 0x10d   : > { %1224 = vmatmul.mubr.bf16.gmra.mrb[4].mxu1 %v4880_v20  ;;  %1297 = vmatmul.mubr.bf16.gmra.mrb[12].mxu0 %v4880_v20  ;;  %v5132_v42 = vld [vmem:[%s6327_s4] sm:$0xff] }
 0x10e   : > { %1332 = vmatpush1.bf16.msra.mxu1 %v4266_v46  ;;  %1405 = vmatpush1.bf16.msra.mxu0 %v4269_v47 }
 0x10f   : > { %1333 = vmatprep.subr.bf16.mxu1 %v4274_v49  ;;  %1406 = vmatprep.subr.bf16.mxu0 %v4277_v50 }
 0x110   : > { %1233 = vmatprep.mubr.bf16.mxu1 %v4686_v40  ;;  %1306 = vmatprep.mubr.bf16.mxu0 %v4686_v40 }
 0x112   : > { %1334 = vmatpush1.bf16.msra.mxu1 %v4272_v51  ;;  %1407 = vmatpush1.bf16.msra.mxu0 %v4275_v52 }
 0x113   : > { %1335 = vmatprep.subr.bf16.mxu1 %v4280_v53  ;;  %1408 = vmatprep.subr.bf16.mxu0 %v4283_v54 }
 0x115   : > { %1234 = vmatmul.mubr.bf16.gmra.mrb[8].mxu1 %v4920_v48  ;;  %1307 = vmatmul.mubr.bf16.gmra.mrb[16].mxu0 %v4920_v48 }
 0x116   : > { %1336 = vmatpush1.bf16.msra.mxu1 %v4278_v55  ;;  %1409 = vmatpush1.bf16.msra.mxu0 %v4281_v56 }
 0x117   : > { %1337 = vmatprep.subr.bf16.mxu1 %v4286_v57  ;;  %1410 = vmatprep.subr.bf16.mxu0 %v4289_v58 }
 0x118   : > { %1243 = vmatprep.mubr.bf16.mxu1 %v4686_v40  ;;  %1316 = vmatprep.mubr.bf16.mxu0 %v4686_v40 }
 0x11a   : > { %1338 = vmatpush1.bf16.msra.mxu1 %v4284_v59  ;;  %1411 = vmatpush1.bf16.msra.mxu0 %v4287_v60 }
 0x11b   : > { %1339 = vmatprep.subr.bf16.mxu1 %v4292_v61  ;;  %1412 = vmatprep.subr.bf16.mxu0 %v4295_v62 }
 0x11d   : > { %1244 = vmatmul.mubr.bf16.gmra.mrb[12].mxu1 %v4912_v45  ;;  %1317 = vmatmul.mubr.bf16.gmra.mrb[20].mxu0 %v4912_v45 }
 0x11e   : > { %1340 = vmatpush1.bf16.msra.mxu1 %v4290_v63  ;;  %1413 = vmatpush1.bf16.msra.mxu0 %v4293_v0 }
 0x11f   : > { %1341 = vmatprep.subr.bf16.mxu1 %v4298_v1  ;;  %1414 = vmatprep.subr.bf16.mxu0 %v4301_v2 }
 0x120   : > { %1359 = vmatprep.mubr.bf16.mxu1 %v4686_v40  ;;  %1432 = vmatprep.mubr.bf16.mxu0 %v4686_v40 }
 0x122   : > { %1342 = vmatpush1.bf16.msra.mxu1 %v4296_v3  ;;  %1415 = vmatpush1.bf16.msra.mxu0 %v4299_v4 }
 0x123   : > { %1473 = vmatprep.subr.bf16.mxu1 %v4304_v5  ;;  %1546 = vmatprep.subr.bf16.mxu0 %v4307_v6  ;;  %v4687_v6 = vmov 1966171168  }
 0x125   : > { %1360 = vmatmul.mubr.bf16.vlgmr.msra.gmra.mrb[16].mxu1 %v4888_v25  ;;  %1433 = vmatmul.mubr.bf16.vlgmr.msra.gmra.mrb[24].mxu0 %v4888_v25 }
 0x126   : > { %1474 = vmatpush1.bf16.msra.mxu1 %v4302_v7  ;;  %1547 = vmatpush1.bf16.msra.mxu0 %v4305_v8  ;;  %v2562_v7 = vunpack.c.l.s4 %v4687_v6 }
 0x127   : > { %1475 = vmatprep.subr.bf16.mxu1 %v4310_v9  ;;  %1548 = vmatprep.subr.bf16.mxu0 %v4313_v10 }
 0x128   : > { %1369 = vmatprep.mubr.bf16.mxu1 %v4686_v40  ;;  %1442 = vmatprep.mubr.bf16.mxu0 %v4686_v40 }
 0x12a   : > { %1476 = vmatpush1.bf16.msra.mxu1 %v4308_v11  ;;  %1549 = vmatpush1.bf16.msra.mxu0 %v4311_v12 }
 0x12b   : > { %1477 = vmatprep.subr.bf16.mxu1 %v4316_v13  ;;  %1550 = vmatprep.subr.bf16.mxu0 %v4319_v14 }
 0x12d   : > { %1370 = vmatmul.mubr.bf16.gmra.mrb[20].mxu1 %v4880_v20  ;;  %1443 = vmatmul.mubr.bf16.gmra.mrb[28].mxu0 %v4880_v20 }
 0x12e   : > { %1478 = vmatpush1.bf16.msra.mxu1 %v4314_v15  ;;  %1551 = vmatpush1.bf16.msra.mxu0 %v4317_v16 }
 0x12f   : > { %1479 = vmatprep.subr.bf16.mxu1 %v4322_v17  ;;  %1552 = vmatprep.subr.bf16.mxu0 %v4325_v18 }
 0x130   : > { %1379 = vmatprep.mubr.bf16.mxu1 %v4686_v40  ;;  %1452 = vmatprep.mubr.bf16.mxu0 %v4686_v40 }
 0x132   : > { %1480 = vmatpush1.bf16.msra.mxu1 %v4320_v19  ;;  %1553 = vmatpush1.bf16.msra.mxu0 %v4323_v21 }
 0x133   : > { %1481 = vmatprep.subr.bf16.mxu1 %v4328_v22  ;;  %1554 = vmatprep.subr.bf16.mxu0 %v4331_v23 }
 0x135   : > { %1380 = vmatmul.mubr.bf16.gmra.mrb[24].mxu1 %v4920_v48  ;;  %1453 = vmatmul.mubr.bf16.gmra.mrb[32].mxu0 %v4920_v48 }
 0x136   : > { %1482 = vmatpush1.bf16.msra.mxu1 %v4326_v24  ;;  %1555 = vmatpush1.bf16.msra.mxu0 %v4329_v26  ;;  %v2563_v26 = vunpack.c.0.s8 %v2562_v7 }
 0x137   : > { %1483 = vmatprep.subr.bf16.mxu1 %v4334_v27  ;;  %1556 = vmatprep.subr.bf16.mxu0 %v4337_v28 }
 0x138   : > { %1389 = vmatprep.mubr.bf16.mxu1 %v4686_v40  ;;  %1462 = vmatprep.mubr.bf16.mxu0 %v4686_v40 }
 0x13a   : > { %1484 = vmatpush1.bf16.msra.mxu1 %v4332_v29  ;;  %1557 = vmatpush1.bf16.msra.mxu0 %v4335_v30 }
 0x13b   : > { %1485 = vmatprep.subr.bf16.mxu1 %v4340_v31  ;;  %1558 = vmatprep.subr.bf16.mxu0 %v4343_v32 }
 0x13d   : > { %1390 = vmatmul.mubr.bf16.gmra.mrb[28].mxu1 %v4912_v45  ;;  %1463 = vmatmul.mubr.bf16.gmra.mrb[36].mxu0 %v4912_v45 }
 0x13e   : > { %1486 = vmatpush1.bf16.msra.mxu1 %v4338_v33  ;;  %1559 = vmatpush1.bf16.msra.mxu0 %v4341_v34 }
 0x13f   : > { %1487 = vmatprep.subr.bf16.mxu1 %v4346_v35  ;;  %1560 = vmatprep.subr.bf16.mxu0 %v4349_v36 }
 0x140   : > { %1505 = vmatprep.mubr.bf16.mxu1 %v4686_v40  ;;  %1578 = vmatprep.mubr.bf16.mxu0 %v4686_v40 }
 0x142   : > { %1488 = vmatpush1.bf16.msra.mxu1 %v4344_v37  ;;  %1561 = vmatpush1.bf16.msra.mxu0 %v4347_v38 }
 0x145   : > { %1506 = vmatmul.mubr.bf16.vlgmr.msra.gmra.mrb[32].mxu1 %v4888_v25  ;;  %1579 = vmatmul.mubr.bf16.vlgmr.msra.gmra.mrb[40].mxu0 %v4888_v25  ;;  %v6337_v25 = vlaneseq }
 0x146   : > { %1515 = vmatprep.mubr.bf16.mxu1 %v4686_v40  ;;  %1588 = vmatprep.mubr.bf16.mxu0 %v4686_v40 }
 0x147   : > { %v5121_v39 = vshrl.u32 %v6337_v25, 7 }
 0x149   : > { %6353 = vst [vmem:[#allocation3_spill] sm:$0xff] %v5121_v39  ;;  %v5127_v41 = vsub.s32 2, %v5121_v39  ;;  %v5138_v43 = vsub.s32 3, %v5121_v39  ;;  %v6334_v9 = vsub.s32 4, %v5121_v39  ;;  %v6333_v13 = vsub.s32 6, %v5121_v39 }
 0x14a   : > { %v6336_v14 = vsub.s32 5, %v5121_v39  ;;  %v6335_v19 = vsub.s32 7, %v5121_v39 }
 0x14b   : > { %6355 = vst [vmem:[#allocation5_spill] sm:$0xff] %v5127_v41  ;;  %6357 = vst [vmem:[#allocation7_spill] sm:$0xff] %v5138_v43  ;;  %v5154_v47 = vrot.slane %v5132_v42, %v5138_v43 }
 0x14d   : > { %1516 = vmatmul.mubr.bf16.gmra.mrb[36].mxu1 %v4880_v20  ;;  %1589 = vmatmul.mubr.bf16.gmra.mrb[44].mxu0 %v4880_v20  ;;  %v5124_v20 = vsub.s32 0, %v5121_v39 }
 0x14e   : > { %1525 = vmatprep.mubr.bf16.mxu1 %v4686_v40  ;;  %1598 = vmatprep.mubr.bf16.mxu0 %v4686_v40 }
 0x14f   : > { %6354 = vst [vmem:[#allocation4_spill] sm:$0xff] %v5124_v20  ;;  %v5142_v44 = vrot.slane %v5132_v42, %v5124_v20 }
 0x155   : > { %1526 = vmatmul.mubr.bf16.gmra.mrb[40].mxu1 %v4920_v48  ;;  %1599 = vmatmul.mubr.bf16.gmra.mrb[48].mxu0 %v4920_v48 }
 0x156   : > { %1535 = vmatprep.mubr.bf16.mxu1 %v4686_v40  ;;  %1608 = vmatprep.mubr.bf16.mxu0 %v4686_v40  ;;  %v5135_v40 = vsub.s32 1, %v5121_v39 }
 0x158   : > { %6356 = vst [vmem:[#allocation6_spill] sm:$0xff] %v5135_v40  ;;  %v5150_v46 = vrot.slane %v5132_v42, %v5135_v40 }
 0x15d   : > { %1536 = vmatmul.mubr.bf16.gmra.mrb[44].mxu1 %v4912_v45  ;;  %1609 = vmatmul.mubr.bf16.gmra.mrb[52].mxu0 %v4912_v45  ;;  %v5146_v45 = vrot.slane %v5132_v42, %v5127_v41 }
 0x1d8   : > { %v1215_v48 = vpop.f32.mrb[0].mxu1  ;;  %v1288_v49 = vpop.f32.mrb[8].mxu0 }
 0x1d9   : > { %v5157_v50 = vadd.f32 %v1215_v48, %v5142_v44  ;;  %v5160_v51 = vadd.f32 %v1288_v49, %v5146_v45  ;;  %v1217_v52 = vpop.f32.mrb[1].mxu1  ;;  %v1290_v53 = vpop.f32.mrb[9].mxu0  ;;  %v5225_v48 = vrot.slane %v5132_v42, %v6334_v9  ;;  %v5230_v49 = vrot.slane %v5132_v42, %v6333_v13 }
 0x1da   : > { %v5163_v54 = vadd.f32 %v1217_v52, %v5150_v46  ;;  %v5166_v55 = vadd.f32 %v1290_v53, %v5154_v47  ;;  %v1219_v56 = vpop.f32.mrb[2].mxu1  ;;  %v1292_v57 = vpop.f32.mrb[10].mxu0 }
 0x1db   : > { %v1619_v58 = vmul.f32 0.5, %v5157_v50  ;;  %v1621_v59 = vmul.f32 0.5, %v5160_v51  ;;  %v5171_v60 = vadd.f32 %v1219_v56, %v5142_v44  ;;  %v5174_v61 = vadd.f32 %v1292_v57, %v5146_v45  ;;  %v1221_v62 = vpop.f32.mrb[3].mxu1  ;;  %v1294_v63 = vpop.f32.mrb[11].mxu0  ;;  %6358 = vst [vmem:[#allocation8_spill] sm:$0xff] %v5225_v48  ;;  %6359 = vst [vmem:[#allocation9_spill] sm:$0xff] %v5230_v49 }
 0x1dc   : > { %v1620_v0 = vmul.f32 0.5, %v5163_v54  ;;  %v1622_v1 = vmul.f32 0.5, %v5166_v55  ;;  %v5179_v2 = vadd.f32 %v1221_v62, %v5150_v46  ;;  %v5182_v3 = vadd.f32 %v1294_v63, %v5154_v47 }
 0x1dd   : > { %4462 = vtanh.f32 %v1619_v58  ;;  %v1631_v4 = vmul.f32 0.5, %v5171_v60  ;;  %v1633_v5 = vmul.f32 0.5, %v5174_v61  ;;  %v5236_v56 = vrot.slane %v5132_v42, %v6336_v14 }
 0x1de   : > { %4464 = vtanh.f32 %v1621_v59  ;;  %v1632_v8 = vmul.f32 0.5, %v5179_v2  ;;  %v1634_v10 = vmul.f32 0.5, %v5182_v3  ;;  %v5241_v57 = vrot.slane %v5132_v42, %v6335_v19 }
 0x1df   : > { %4466 = vtanh.f32 %v1620_v0  ;;  %6360 = vst [vmem:[#allocation10_spill] sm:$0xff] %v5236_v56 }
 0x1e0   : > { %4468 = vtanh.f32 %v1622_v1  ;;  %v1225_v11 = vpop.f32.mrb[4].mxu1  ;;  %v1298_v12 = vpop.f32.mrb[12].mxu0  ;;  %6361 = vst [vmem:[#allocation11_spill] sm:$0xff] %v5241_v57  ;;  %v5245_v1 = vsub.s32 %v2563_v26, %v5121_v39 }
 0x1e1   : > { %4470 = vtanh.f32 %v1631_v4  ;;  %v5192_v15 = vadd.f32 %v1225_v11, %v5142_v44  ;;  %v5195_v16 = vadd.f32 %v1298_v12, %v5146_v45  ;;  %v1227_v17 = vpop.f32.mrb[5].mxu1  ;;  %v1300_v18 = vpop.f32.mrb[13].mxu0 }
 0x1e2   : > { %4472 = vtanh.f32 %v1633_v5  ;;  %v5199_v21 = vadd.f32 %v1227_v17, %v5150_v46  ;;  %v5202_v22 = vadd.f32 %v1300_v18, %v5154_v47  ;;  %v1229_v23 = vpop.f32.mrb[6].mxu1  ;;  %v1302_v24 = vpop.f32.mrb[14].mxu0  ;;  %6362 = vst [vmem:[#allocation12_spill] sm:$0xff] %v5245_v1 }
 0x1e3   : > { %4474 = vtanh.f32 %v1632_v8  ;;  %v1643_v27 = vmul.f32 0.5, %v5192_v15  ;;  %v1645_v28 = vmul.f32 0.5, %v5195_v16  ;;  %v5207_v29 = vadd.f32 %v1229_v23, %v5142_v44  ;;  %v1231_v30 = vpop.f32.mrb[7].mxu1  ;;  %v1304_v31 = vpop.f32.mrb[15].mxu0 }
 0x1e4   : > { %4476 = vtanh.f32 %v1634_v10  ;;  %v1644_v32 = vmul.f32 0.5, %v5199_v21  ;;  %v1646_v33 = vmul.f32 0.5, %v5202_v22  ;;  %v5212_v34 = vadd.f32 %v1302_v24, %v5146_v45 }
 0x1e5   : > { %4478 = vtanh.f32 %v1643_v27  ;;  %v1655_v35 = vmul.f32 0.5, %v5207_v29  ;;  %v5216_v36 = vadd.f32 %v1231_v30, %v5150_v46  ;;  %v5219_v37 = vadd.f32 %v1304_v31, %v5154_v47 }
 0x1e6   : > { %4480 = vtanh.f32 %v1645_v28  ;;  %v1657_v38 = vmul.f32 0.5, %v5212_v34 }
 0x1e7   : > { %v4463_v52 = vpop.eup %4462  ;;  %4482 = vtanh.f32 %v1644_v32  ;;  %v1656_v53 = vmul.f32 0.5, %v5216_v36  ;;  %v1658_v62 = vmul.f32 0.5, %v5219_v37 }
 0x1e8   : > { %v4465_v58 = vpop.eup %4464  ;;  %v1811_v59 = vmul.f32 0.5, %v4463_v52  ;;  %4484 = vtanh.f32 %v1646_v33  ;;  %v1235_v63 = vpop.f32.mrb[8].mxu1 }
 0x1e9   : > { %v1308_v0 = vpop.f32.mrb[16].mxu0  ;;  %v4467_v4 = vpop.eup %4466  ;;  %v1813_v5 = vmul.f32 0.5, %v4465_v58  ;;  %4486 = vtanh.f32 %v1655_v35  ;;  %v5248_v6 = vadd.f32 %v1235_v63, %v5142_v44 }
 0x1ea   : > { %v5251_v7 = vadd.f32 %v1308_v0, %v5146_v45  ;;  %v1237_v42 = vpop.f32.mrb[9].mxu1  ;;  %v5253_v8 = vpop.f32.mrb[17].mxu0  ;;  %v1907_v11 = vadd.f32 0.5, %v1811_v59  ;;  %v1812_v12 = vmul.f32 0.5, %v4467_v4  ;;  %4488 = vtanh.f32 %v1657_v38 }
 0x1eb   : > { %v4469_v10 = vpop.eup %4468  ;;  %v5256_v17 = vadd.f32 %v1237_v42, %v5150_v46  ;;  %v5258_v18 = vpop.f32.mrb[10].mxu1  ;;  %v1909_v26 = vadd.f32 0.5, %v1813_v5  ;;  %4490 = vtanh.f32 %v1656_v53  ;;  %v1667_v28 = vmul.f32 0.5, %v5248_v6 }
 0x1ec   : > { %v5260_v23 = vpop.f32.mrb[18].mxu0  ;;  %v4471_v24 = vpop.eup %4470  ;;  %v1814_v27 = vmul.f32 0.5, %v4469_v10  ;;  %v2003_v33 = vmul.f32 %v1907_v11, %v5157_v50  ;;  %v1908_v35 = vadd.f32 0.5, %v1812_v12  ;;  %4492 = vtanh.f32 %v1658_v62 }
 0x1ed   : > { %v5263_v30 = vpop.f32.mrb[11].mxu1  ;;  %v5265_v31 = vpop.f32.mrb[19].mxu0  ;;  %v1823_v38 = vmul.f32 0.5, %v4471_v24  ;;  %v2005_v58 = vmul.f32 %v1909_v26, %v5160_v51  ;;  %4494 = vtanh.f32 %v1667_v28 }
 0x1ee   : > { %v4473_v32 = vpop.eup %4472  ;;  %v1910_v59 = vadd.f32 0.5, %v1814_v27  ;;  %v2099_v53 = vmax.f32 %v2003_v33, 1e-06  ;;  %v2004_v4 = vmul.f32 %v1908_v35, %v5163_v54 }
 0x1ef   : > { %v4475_v52 = vpop.eup %4474  ;;  %v1825_v63 = vmul.f32 0.5, %v4473_v32  ;;  %v1919_v5 = vadd.f32 0.5, %v1823_v38  ;;  %v2101_v13 = vmax.f32 %v2005_v58, 1e-06 }
 0x1f0   : > { %v4477_v0 = vpop.eup %4476  ;;  %v1824_v42 = vmul.f32 0.5, %v4475_v52  ;;  %v2006_v9 = vmul.f32 %v1910_v59, %v5166_v55  ;;  %v2195_v62 = vmul.f32 %v2099_v53, %v2099_v53  ;;  %v2100_v24 = vmax.f32 %v2004_v4, 1e-06  ;;  %v5272_v27 = vpop.f32.mrb[12].mxu1 }
 0x1f1   : > { %v4479_v10 = vpop.eup %4478  ;;  %v1921_v50 = vadd.f32 0.5, %v1825_v63  ;;  %v1826_v11 = vmul.f32 0.5, %v4477_v0  ;;  %v2015_v51 = vmul.f32 %v1919_v5, %v5171_v60  ;;  %v5274_v28 = vpop.f32.mrb[20].mxu0  ;;  %v2197_v54 = vmul.f32 %v2101_v13, %v2101_v13 }
 0x1f2   : > { %v4481_v12 = vpop.eup %4480  ;;  %v1920_v26 = vadd.f32 0.5, %v1824_v42  ;;  %v2102_v33 = vmax.f32 %v2006_v9, 1e-06  ;;  %v5277_v52 = vpop.f32.mrb[13].mxu1  ;;  %v2291_v59 = vmul.f32 %v2195_v62, %v2099_v53  ;;  %v2196_v63 = vmul.f32 %v2100_v24, %v2100_v24 }
 0x1f3   : > { %v4483_v32 = vpop.eup %4482  ;;  %v2017_v35 = vmul.f32 %v1921_v50, %v5174_v61  ;;  %v1922_v38 = vadd.f32 0.5, %v1826_v11  ;;  %v5279_v55 = vpop.f32.mrb[21].mxu0  ;;  %v2111_v0 = vmax.f32 %v2015_v51, 1e-06  ;;  %v2293_v19 = vmul.f32 %v2197_v54, %v2101_v13 }
 0x1f4   : > { %v4485_v58 = vpop.eup %4484  ;;  %v2016_v60 = vmul.f32 %v1920_v26, %v5179_v2  ;;  %v5282_v4 = vpop.f32.mrb[14].mxu1  ;;  %v2198_v9 = vmul.f32 %v2102_v33, %v2102_v33  ;;  %v2292_v53 = vmul.f32 %v2196_v63, %v2100_v24  ;;  %v1835_v39 = vmul.f32 0.5, %v4479_v10 }
 0x1f5   : > { %v5284_v5 = vpop.f32.mrb[22].mxu0  ;;  %v4487_v42 = vpop.eup %4486  ;;  %v2113_v14 = vmax.f32 %v2017_v35, 1e-06  ;;  %v2018_v61 = vmul.f32 %v1922_v38, %v5182_v3  ;;  %v2207_v62 = vmul.f32 %v2111_v0, %v2111_v0  ;;  %v1837_v41 = vmul.f32 0.5, %v4481_v12 }
 0x1f6   : > { %v5287_v50 = vpop.f32.mrb[15].mxu1  ;;  %v5289_v11 = vpop.f32.mrb[23].mxu0  ;;  %v2112_v51 = vmax.f32 %v2016_v60, 1e-06  ;;  %v2294_v26 = vmul.f32 %v2198_v9, %v2102_v33  ;;  %v1931_v35 = vadd.f32 0.5, %v1835_v39  ;;  %v1836_v1 = vmul.f32 0.5, %v4483_v32 }
 0x1f7   : > { %v4489_v25 = vpop.eup %4488  ;;  %v2209_v43 = vmul.f32 %v2113_v14, %v2113_v14  ;;  %v2114_v40 = vmax.f32 %v2018_v61, 1e-06  ;;  %v2303_v13 = vmul.f32 %v2207_v62, %v2111_v0  ;;  %v1933_v56 = vadd.f32 0.5, %v1837_v41 }
 0x1f8   : > { %v4491_v2 = vpop.eup %4490  ;;  %v2208_v54 = vmul.f32 %v2112_v51, %v2112_v51  ;;  %v1838_v49 = vmul.f32 0.5, %v4485_v58  ;;  %v2027_v63 = vmul.f32 %v1931_v35, %v5192_v15  ;;  %v1932_v10 = vadd.f32 0.5, %v1836_v1  ;;  %v5292_v60 = vpop.f32.mrb[16].mxu1 }
 0x1f9   : > { %v4493_v20 = vpop.eup %4492  ;;  %v2305_v38 = vmul.f32 %v2209_v43, %v2113_v14  ;;  %v2210_v57 = vmul.f32 %v2114_v40, %v2114_v40  ;;  %v2389_v48 = vadd.f32 %v2303_v13, %v2291_v59  ;;  %v5294_v33 = vpop.f32.mrb[24].mxu0  ;;  %v2029_v0 = vmul.f32 %v1933_v56, %v5195_v16 }
 0x1fa   : > { %v4495_v3 = vpop.eup %4494  ;;  %v2304_v24 = vmul.f32 %v2208_v54, %v2112_v51  ;;  %v1934_v39 = vadd.f32 0.5, %v1838_v49  ;;  %v5297_v32 = vpop.f32.mrb[17].mxu1  ;;  %v2123_v14 = vmax.f32 %v2027_v63, 1e-06  ;;  %v2028_v58 = vmul.f32 %v1932_v10, %v5199_v21 }
 0x1fb   : > { %v2415_v12 = vadd.f32 %v2305_v38, %v2293_v19  ;;  %v2306_v9 = vmul.f32 %v2210_v57, %v2114_v40  ;;  %v5299_v43 = vpop.f32.mrb[25].mxu0  ;;  %v1847_v59 = vmul.f32 0.5, %v4487_v42  ;;  %v5302_v15 = vpop.f32.mrb[18].mxu1  ;;  %v2125_v62 = vmax.f32 %v2029_v0, 1e-06 }
 0x1fc   : > { %v2402_v41 = vadd.f32 %v2304_v24, %v2292_v53  ;;  %v5304_v1 = vpop.f32.mrb[26].mxu0  ;;  %v2030_v40 = vmul.f32 %v1934_v39, %v5202_v22  ;;  %v1849_v19 = vmul.f32 0.5, %v4489_v25  ;;  %v5307_v16 = vpop.f32.mrb[19].mxu1  ;;  %v2219_v56 = vmul.f32 %v2123_v14, %v2123_v14 }
 0x1fd   : > { %v2428_v61 = vadd.f32 %v2306_v9, %v2294_v26  ;;  %v5309_v49 = vpop.f32.mrb[27].mxu0  ;;  %v2124_v57 = vmax.f32 %v2028_v58, 1e-06  ;;  %v1943_v53 = vadd.f32 0.5, %v1847_v59  ;;  %v1848_v51 = vmul.f32 0.5, %v4491_v2 }
 0x1fe   : > { %v2221_v13 = vmul.f32 %v2125_v62, %v2125_v62  ;;  %v2126_v21 = vmax.f32 %v2030_v40, 1e-06  ;;  %v1945_v42 = vadd.f32 0.5, %v1849_v19  ;;  %v1850_v54 = vmul.f32 0.5, %v4493_v20 }
 0x1ff   : > { %v2315_v35 = vmul.f32 %v2219_v56, %v2123_v14  ;;  %v2220_v38 = vmul.f32 %v2124_v57, %v2124_v57  ;;  %v2039_v26 = vmul.f32 %v1943_v53, %v5207_v29  ;;  %v1944_v24 = vadd.f32 0.5, %v1848_v51 }
 0x200   : > { %v2317_v63 = vmul.f32 %v2221_v13, %v2125_v62  ;;  %v2222_v22 = vmul.f32 %v2126_v21, %v2126_v21  ;;  %v2041_v25 = vmul.f32 %v1945_v42, %v5212_v34  ;;  %v1946_v10 = vadd.f32 0.5, %v1850_v54  ;;  %v5314_v2 = vpop.f32.mrb[20].mxu1  ;;  %v5316_v59 = vpop.f32.mrb[28].mxu0 }
 0x201   : > { %v2390_v9 = vadd.f32 %v2389_v48, %v2315_v35  ;;  %v2316_v0 = vmul.f32 %v2220_v38, %v2124_v57  ;;  %v2135_v39 = vmax.f32 %v2039_v26, 1e-06  ;;  %v2040_v58 = vmul.f32 %v1944_v24, %v5216_v36  ;;  %v5319_v19 = vpop.f32.mrb[21].mxu1  ;;  %v5321_v62 = vpop.f32.mrb[29].mxu0 }
 0x202   : > { %v2416_v20 = vadd.f32 %v2415_v12, %v2317_v63  ;;  %v2318_v14 = vmul.f32 %v2222_v22, %v2126_v21  ;;  %v2137_v40 = vmax.f32 %v2041_v25, 1e-06  ;;  %v2042_v29 = vmul.f32 %v1946_v10, %v5219_v37  ;;  %v5323_v53 = vpop.f32.mrb[22].mxu1  ;;  %v5325_v36 = vpop.f32.mrb[30].mxu0 }
 0x203   : > { %v2403_v34 = vadd.f32 %v2402_v41, %v2316_v0  ;;  %v2231_v56 = vmul.f32 %v2135_v39, %v2135_v39  ;;  %v2136_v48 = vmax.f32 %v2040_v58, 1e-06  ;;  %v1859_v57 = vmul.f32 0.5, %v4495_v3  ;;  %v5328_v21 = vpop.f32.mrb[23].mxu1  ;;  %v5330_v37 = vpop.f32.mrb[31].mxu0 }
 0x204   : > { %v2429_v51 = vadd.f32 %v2428_v61, %v2318_v14  ;;  %v2233_v13 = vmul.f32 %v2137_v40, %v2137_v40  ;;  %v2138_v42 = vmax.f32 %v2042_v29, 1e-06  ;;  %v1669_v12 = vmul.f32 0.5, %v5251_v7 }
 0x205   : > { %v2327_v54 = vmul.f32 %v2231_v56, %v2135_v39  ;;  %v2232_v35 = vmul.f32 %v2136_v48, %v2136_v48  ;;  %v1955_v38 = vadd.f32 0.5, %v1859_v57  ;;  %v1668_v41 = vmul.f32 0.5, %v5256_v17 }
 0x206   : > { %v2329_v26 = vmul.f32 %v2233_v13, %v2137_v40  ;;  %v2234_v3 = vmul.f32 %v2138_v42, %v2138_v42  ;;  %4496 = vtanh.f32 %v1669_v12  ;;  %v5335_v24 = vadd.f32 %v5253_v8, %v5154_v47 }
 0x207   : > { %v2391_v61 = vadd.f32 %v2390_v9, %v2327_v54  ;;  %v2328_v63 = vmul.f32 %v2232_v35, %v2136_v48  ;;  %v2051_v22 = vmul.f32 %v1955_v38, %v5248_v6  ;;  %4498 = vtanh.f32 %v1668_v41 }
 0x208   : > { %v5338_v25 = vadd.f32 %v2416_v20, %v2329_v26  ;;  %v2330_v10 = vmul.f32 %v2234_v3, %v2138_v42  ;;  %v1670_v0 = vmul.f32 0.5, %v5335_v24  ;;  %v5343_v39 = vadd.f32 %v5258_v18, %v5142_v44  ;;  %v5355_v9 = vpop.f32.mrb[24].mxu1  ;;  %v5357_v20 = vpop.f32.mrb[32].mxu0 }
 0x209   : > { %v5345_v58 = vadd.f32 %v2403_v34, %v2328_v63  ;;  %v2147_v14 = vmax.f32 %v2051_v22, 1e-06  ;;  %v5349_v8 = vadd.f32 %v5260_v23, %v5146_v45  ;;  %v5353_v6 = vadd.f32 %v5263_v30, %v5150_v46  ;;  %6363 = vst [vmem:[#allocation13_spill] sm:$0xff] %v5355_v9  ;;  %6364 = vst [vmem:[#allocation14_spill] sm:$0xff] %v5357_v20  ;;  %v5366_v34 = vpop.f32.mrb[25].mxu1  ;;  %v5368_v23 = vpop.f32.mrb[33].mxu0 }
 0x20a   : > { %v5359_v40 = vadd.f32 %v2429_v51, %v2330_v10  ;;  %4500 = vtanh.f32 %v1670_v0  ;;  %v1679_v18 = vmul.f32 0.5, %v5343_v39  ;;  %v5364_v29 = vadd.f32 %v5265_v31, %v5154_v47  ;;  %6365 = vst [vmem:[#allocation15_spill] sm:$0xff] %v5366_v34  ;;  %6366 = vst [vmem:[#allocation16_spill] sm:$0xff] %v5368_v23  ;;  %v5376_v51 = vpop.f32.mrb[26].mxu1  ;;  %v5378_v13 = vpop.f32.mrb[34].mxu0 }
 0x20b   : > { %v2243_v56 = vmul.f32 %v2147_v14, %v2147_v14  ;;  %v1681_v30 = vmul.f32 0.5, %v5349_v8  ;;  %v1680_v48 = vmul.f32 0.5, %v5353_v6  ;;  %v5374_v57 = vadd.f32 %v5272_v27, %v5142_v44  ;;  %6367 = vst [vmem:[#allocation17_spill] sm:$0xff] %v5376_v51  ;;  %6368 = vst [vmem:[#allocation18_spill] sm:$0xff] %v5378_v13  ;;  %v5389_v54 = vpop.f32.mrb[27].mxu1  ;;  %v5391_v35 = vpop.f32.mrb[35].mxu0 }
 0x20c   : > { %4502 = vtanh.f32 %v1679_v18  ;;  %v1682_v31 = vmul.f32 0.5, %v5364_v29  ;;  %v5383_v42 = vadd.f32 %v5274_v28, %v5146_v45  ;;  %v5387_v12 = vadd.f32 %v5277_v52, %v5150_v46  ;;  %6369 = vst [vmem:[#allocation19_spill] sm:$0xff] %v5389_v54  ;;  %6370 = vst [vmem:[#allocation20_spill] sm:$0xff] %v5391_v35  ;;  %v6371_v18 = vld [vmem:[#allocation8_spill] sm:$0xff] }
 0x20d   : > { %v2339_v27 = vmul.f32 %v2243_v56, %v2147_v14  ;;  %4504 = vtanh.f32 %v1681_v30  ;;  %v1691_v38 = vmul.f32 0.5, %v5374_v57  ;;  %v5396_v41 = vadd.f32 %v5279_v55, %v5154_v47 }
 0x20e   : > { %4506 = vtanh.f32 %v1680_v48  ;;  %v1693_v28 = vmul.f32 0.5, %v5383_v42  ;;  %v1692_v26 = vmul.f32 0.5, %v5387_v12  ;;  %v5402_v52 = vadd.f32 %v5282_v4, %v5142_v44 }
 0x20f   : > { %v5404_v3 = vadd.f32 %v2391_v61, %v2339_v27  ;;  %4508 = vtanh.f32 %v1682_v31  ;;  %v1694_v63 = vmul.f32 0.5, %v5396_v41  ;;  %v5409_v22 = vadd.f32 %v5284_v5, %v5146_v45 }
 0x210   : > { %v4497_v55 = vpop.eup %4496  ;;  %4510 = vtanh.f32 %v1691_v38  ;;  %v1703_v10 = vmul.f32 0.5, %v5402_v52  ;;  %v5414_v0 = vadd.f32 %v5287_v50, %v5150_v46  ;;  %v5418_v44 = vadd.f32 %v5289_v11, %v5154_v47  ;;  %v5425_v5 = vpop.f32.mrb[28].mxu1 }
 0x211   : > { %v4499_v4 = vpop.eup %4498  ;;  %v1861_v61 = vmul.f32 0.5, %v4497_v55  ;;  %4512 = vtanh.f32 %v1693_v28  ;;  %v1705_v14 = vmul.f32 0.5, %v5409_v22  ;;  %v5423_v45 = vadd.f32 %v5292_v60, %v6371_v18  ;;  %6372 = vst [vmem:[#allocation8_spill] sm:$0xff] %v5425_v5  ;;  %v5427_v56 = vpop.f32.mrb[36].mxu0  ;;  %v6376_v60 = vld [vmem:[#allocation9_spill] sm:$0xff] }
 0x212   : > { %6373 = vst [vmem:[#allocation21_spill] sm:$0xff] %v5427_v56  ;;  %v1860_v30 = vmul.f32 0.5, %v4499_v4  ;;  %4514 = vtanh.f32 %v1692_v26  ;;  %v1704_v46 = vmul.f32 0.5, %v5414_v0  ;;  %v1706_v47 = vmul.f32 0.5, %v5418_v44  ;;  %v5431_v50 = vpop.f32.mrb[29].mxu1  ;;  %v5433_v11 = vpop.f32.mrb[37].mxu0 }
 0x213   : > { %6374 = vst [vmem:[#allocation22_spill] sm:$0xff] %v5431_v50  ;;  %6375 = vst [vmem:[#allocation23_spill] sm:$0xff] %v5433_v11  ;;  %v1957_v48 = vadd.f32 0.5, %v1861_v61  ;;  %4516 = vtanh.f32 %v1694_v63  ;;  %v1623_v31 = vmul.f32 0.5, %v5423_v45  ;;  %v5438_v27 = vadd.f32 %v5294_v33, %v6376_v60  ;;  %v5440_v38 = vpop.f32.mrb[30].mxu1  ;;  %v5442_v28 = vpop.f32.mrb[38].mxu0 }
 0x214   : > { %6377 = vst [vmem:[#allocation9_spill] sm:$0xff] %v5440_v38  ;;  %6378 = vst [vmem:[#allocation24_spill] sm:$0xff] %v5442_v28  ;;  %v4501_v26 = vpop.eup %4500  ;;  %v1956_v55 = vadd.f32 0.5, %v1860_v30  ;;  %4518 = vtanh.f32 %v1703_v10  ;;  %v6379_v4 = vld [vmem:[#allocation10_spill] sm:$0xff]  ;;  %v6380_v11 = vld [vmem:[#allocation11_spill] sm:$0xff]  ;;  %v5452_v61 = vpop.f32.mrb[31].mxu1 }
 0x215   : > { %v5446_v50 = vadd.f32 %v5297_v32, %v6379_v4  ;;  %v5450_v63 = vadd.f32 %v5299_v43, %v6380_v11  ;;  %6381 = vst [vmem:[#allocation10_spill] sm:$0xff] %v5452_v61  ;;  %v5454_v56 = vpop.f32.mrb[39].mxu0  ;;  %v2053_v33 = vmul.f32 %v1957_v48, %v5251_v7  ;;  %v1862_v38 = vmul.f32 0.5, %v4501_v26 }
 0x216   : > { %6382 = vst [vmem:[#allocation11_spill] sm:$0xff] %v5454_v56  ;;  %4520 = vtanh.f32 %v1705_v14  ;;  %v1625_v28 = vmul.f32 0.5, %v5438_v27  ;;  %v4503_v30 = vpop.eup %4502  ;;  %v2052_v10 = vmul.f32 %v1956_v55, %v5256_v17  ;;  %v5467_v26 = vadd.f32 %v5302_v15, %v6371_v18 }
 0x217   : > { %4522 = vtanh.f32 %v1704_v46  ;;  %v5460_v32 = vmul.f32 0.5, %v5446_v50  ;;  %v5463_v43 = vmul.f32 0.5, %v5450_v63  ;;  %v4505_v5 = vpop.eup %4504  ;;  %v2149_v61 = vmax.f32 %v2053_v33, 1e-06 }
 0x218   : > { %v1958_v35 = vadd.f32 0.5, %v1862_v38  ;;  %v1871_v56 = vmul.f32 0.5, %v4503_v30  ;;  %4524 = vtanh.f32 %v1706_v47  ;;  %v4507_v7 = vpop.eup %4506  ;;  %v2148_v48 = vmax.f32 %v2052_v10, 1e-06  ;;  %v5470_v51 = vpop.f32.mrb[32].mxu1 }
 0x219   : > { %v1873_v14 = vmul.f32 0.5, %v4505_v5  ;;  %4526 = vtanh.f32 %v1623_v31  ;;  %v4509_v17 = vpop.eup %4508  ;;  %v2245_v46 = vmul.f32 %v2149_v61, %v2149_v61  ;;  %v1872_v13 = vmul.f32 0.5, %v4507_v7  ;;  %6383 = vst [vmem:[#allocation25_spill] sm:$0xff] %v5470_v51  ;;  %v5472_v33 = vpop.f32.mrb[40].mxu0 }
 0x21a   : > { %v2054_v55 = vmul.f32 %v1958_v35, %v5335_v24  ;;  %v1967_v54 = vadd.f32 0.5, %v1871_v56  ;;  %6384 = vst [vmem:[#allocation26_spill] sm:$0xff] %v5472_v33  ;;  %v4511_v38 = vpop.eup %4510  ;;  %v2244_v47 = vmul.f32 %v2148_v48, %v2148_v48  ;;  %v1874_v10 = vmul.f32 0.5, %v4509_v17  ;;  %v5474_v5 = vpop.f32.mrb[33].mxu1 }
 0x21b   : > { %v1969_v30 = vadd.f32 0.5, %v1873_v14  ;;  %4528 = vtanh.f32 %v1625_v28  ;;  %6385 = vst [vmem:[#allocation27_spill] sm:$0xff] %v5474_v5  ;;  %v5476_v31 = vpop.f32.mrb[41].mxu0  ;;  %v4513_v15 = vpop.eup %4512  ;;  %v2341_v23 = vmul.f32 %v2245_v46, %v2149_v61  ;;  %v1968_v35 = vadd.f32 0.5, %v1872_v13 }
 0x21c   : > { %6386 = vst [vmem:[#allocation28_spill] sm:$0xff] %v5476_v31  ;;  %v2150_v34 = vmax.f32 %v2054_v55, 1e-06  ;;  %v2063_v24 = vmul.f32 %v1967_v54, %v5343_v39  ;;  %v5479_v56 = vpop.f32.mrb[34].mxu1  ;;  %v5481_v7 = vpop.f32.mrb[42].mxu0  ;;  %v2340_v51 = vmul.f32 %v2244_v47, %v2148_v48  ;;  %v1970_v17 = vadd.f32 0.5, %v1874_v10 }
 0x21d   : > { %6387 = vst [vmem:[#allocation29_spill] sm:$0xff] %v5479_v56  ;;  %6388 = vst [vmem:[#allocation30_spill] sm:$0xff] %v5481_v7  ;;  %v4515_v33 = vpop.eup %4514  ;;  %v2065_v14 = vmul.f32 %v1969_v30, %v5349_v8  ;;  %v1883_v28 = vmul.f32 0.5, %v4511_v38  ;;  %v5484_v20 = vpop.f32.mrb[35].mxu1  ;;  %v2418_v61 = vadd.f32 %v5338_v25, %v2341_v23  ;;  %v2064_v13 = vmul.f32 %v1968_v35, %v5353_v6 }
 0x21e   : > { %6389 = vst [vmem:[#allocation31_spill] sm:$0xff] %v5484_v20  ;;  %v5486_v5 = vpop.f32.mrb[43].mxu0  ;;  %v4517_v31 = vpop.eup %4516  ;;  %v2246_v46 = vmul.f32 %v2150_v34, %v2150_v34  ;;  %v2159_v39 = vmax.f32 %v2063_v24, 1e-06  ;;  %v2405_v55 = vadd.f32 %v5345_v58, %v2340_v51  ;;  %v2066_v48 = vmul.f32 %v1970_v17, %v5364_v29 }
 0x21f   : > { %6390 = vst [vmem:[#allocation32_spill] sm:$0xff] %v5486_v5  ;;  %v4519_v54 = vpop.eup %4518  ;;  %v2161_v7 = vmax.f32 %v2065_v14, 1e-06  ;;  %v1979_v8 = vadd.f32 0.5, %v1883_v28  ;;  %v2160_v10 = vmax.f32 %v2064_v13, 1e-06  ;;  %4530 = vtanh.f32 %v5460_v32 }
 0x220   : > { %v4521_v47 = vpop.eup %4520  ;;  %v2342_v38 = vmul.f32 %v2246_v46, %v2150_v34  ;;  %v2255_v30 = vmul.f32 %v2159_v39, %v2159_v39  ;;  %v1885_v20 = vmul.f32 0.5, %v4513_v15  ;;  %v2162_v9 = vmax.f32 %v2066_v48, 1e-06  ;;  %v5494_v14 = vpop.f32.mrb[36].mxu1 }
 0x221   : > { %v4523_v5 = vpop.eup %4522  ;;  %v2257_v56 = vmul.f32 %v2161_v7, %v2161_v7  ;;  %v2075_v25 = vmul.f32 %v1979_v8, %v5374_v57  ;;  %v1884_v23 = vmul.f32 0.5, %v4515_v33  ;;  %v2256_v58 = vmul.f32 %v2160_v10, %v2160_v10  ;;  %6391 = vst [vmem:[#allocation33_spill] sm:$0xff] %v5494_v14  ;;  %v5496_v29 = vpop.f32.mrb[44].mxu0 }
 0x222   : > { %v4525_v24 = vpop.eup %4524  ;;  %v2431_v6 = vadd.f32 %v5359_v40, %v2342_v38  ;;  %v2351_v35 = vmul.f32 %v2255_v30, %v2159_v39  ;;  %v1981_v51 = vadd.f32 0.5, %v1885_v20  ;;  %6392 = vst [vmem:[#allocation34_spill] sm:$0xff] %v5496_v29  ;;  %v2258_v28 = vmul.f32 %v2162_v9, %v2162_v9  ;;  %v5498_v13 = vpop.f32.mrb[37].mxu1 }
 0x223   : > { %v4527_v34 = vpop.eup %4526  ;;  %v2353_v17 = vmul.f32 %v2257_v56, %v2161_v7  ;;  %v2171_v15 = vmax.f32 %v2075_v25, 1e-06  ;;  %v1980_v46 = vadd.f32 0.5, %v1884_v23  ;;  %6393 = vst [vmem:[#allocation35_spill] sm:$0xff] %v5498_v13  ;;  %v5500_v48 = vpop.f32.mrb[45].mxu0  ;;  %v2352_v33 = vmul.f32 %v2256_v58, %v2160_v10 }
 0x224   : > { %6394 = vst [vmem:[#allocation36_spill] sm:$0xff] %v5500_v48  ;;  %v2393_v57 = vadd.f32 %v5404_v3, %v2351_v35  ;;  %v2077_v40 = vmul.f32 %v1981_v51, %v5383_v42  ;;  %v1886_v39 = vmul.f32 0.5, %v4517_v31  ;;  %v5504_v20 = vpop.f32.mrb[38].mxu1  ;;  %v5506_v8 = vpop.f32.mrb[46].mxu0  ;;  %v2354_v56 = vmul.f32 %v2258_v28, %v2162_v9 }
 0x225   : > { %v4529_v38 = vpop.eup %4528  ;;  %v2419_v30 = vadd.f32 %v2418_v61, %v2353_v17  ;;  %v2267_v7 = vmul.f32 %v2171_v15, %v2171_v15  ;;  %v2076_v25 = vmul.f32 %v1980_v46, %v5387_v12  ;;  %v2406_v23 = vadd.f32 %v2405_v55, %v2352_v33  ;;  %v5509_v14 = vpop.f32.mrb[39].mxu1 }
 0x226   : > { %v2173_v13 = vmax.f32 %v2077_v40, 1e-06  ;;  %v1982_v29 = vadd.f32 0.5, %v1886_v39  ;;  %v1895_v48 = vmul.f32 0.5, %v4519_v54  ;;  %v5511_v3 = vpop.f32.mrb[47].mxu0  ;;  %v2432_v42 = vadd.f32 %v2431_v6, %v2354_v56 }
 0x227   : > { %v2363_v31 = vmul.f32 %v2267_v7, %v2171_v15  ;;  %v2172_v10 = vmax.f32 %v2076_v25, 1e-06  ;;  %v1897_v35 = vmul.f32 0.5, %v4521_v47  ;;  %v1896_v9 = vmul.f32 0.5, %v4523_v5 }
 0x228   : > { %v2269_v58 = vmul.f32 %v2173_v13, %v2173_v13  ;;  %v2078_v51 = vmul.f32 %v1982_v29, %v5396_v41  ;;  %v1991_v61 = vadd.f32 0.5, %v1895_v48  ;;  %v1898_v55 = vmul.f32 0.5, %v4525_v24 }
 0x229   : > { %v2394_v17 = vadd.f32 %v2393_v57, %v2363_v31  ;;  %v2268_v28 = vmul.f32 %v2172_v10, %v2172_v10  ;;  %v1993_v12 = vadd.f32 0.5, %v1897_v35  ;;  %v1992_v40 = vadd.f32 0.5, %v1896_v9  ;;  %v5520_v57 = vpop.f32.mrb[48].mxu0 }
 0x22a   : > { %v2365_v46 = vmul.f32 %v2269_v58, %v2173_v13  ;;  %v2174_v33 = vmax.f32 %v2078_v51, 1e-06  ;;  %v2087_v54 = vmul.f32 %v1991_v61, %v5402_v52  ;;  %v1994_v15 = vadd.f32 0.5, %v1898_v55  ;;  %v5518_v13 = vpop.f32.mrb[40].mxu1 }
 0x22b   : > { %v2364_v39 = vmul.f32 %v2268_v28, %v2172_v10  ;;  %v2089_v6 = vmul.f32 %v1993_v12, %v5409_v22  ;;  %v1815_v56 = vmul.f32 0.5, %v4527_v34  ;;  %v2088_v41 = vmul.f32 %v1992_v40, %v5414_v0  ;;  %v5522_v35 = vpop.f32.mrb[41].mxu1  ;;  %v5524_v34 = vpop.f32.mrb[49].mxu0 }
 0x22c   : > { %v2420_v47 = vadd.f32 %v2419_v30, %v2365_v46  ;;  %v2270_v7 = vmul.f32 %v2174_v33, %v2174_v33  ;;  %v2183_v25 = vmax.f32 %v2087_v54, 1e-06  ;;  %v2090_v48 = vmul.f32 %v1994_v15, %v5418_v44  ;;  %v5528_v44 = vpop.f32.mrb[42].mxu1 }
 0x22d   : > { %v2407_v5 = vadd.f32 %v2406_v23, %v2364_v39  ;;  %v2185_v29 = vmax.f32 %v2089_v6, 1e-06  ;;  %v1911_v24 = vadd.f32 0.5, %v1815_v56  ;;  %v2184_v10 = vmax.f32 %v2088_v41, 1e-06 }
 0x22e   : > { %v2366_v52 = vmul.f32 %v2270_v7, %v2174_v33  ;;  %v2279_v31 = vmul.f32 %v2183_v25, %v2183_v25  ;;  %v1817_v22 = vmul.f32 0.5, %v4529_v38  ;;  %v2186_v58 = vmax.f32 %v2090_v48, 1e-06  ;;  %v5531_v38 = vpop.f32.mrb[50].mxu0 }
 0x22f   : > { %v2281_v30 = vmul.f32 %v2185_v29, %v2185_v29  ;;  %v2007_v0 = vmul.f32 %v1911_v24, %v5423_v45  ;;  %v2280_v61 = vmul.f32 %v2184_v10, %v2184_v10  ;;  %4532 = vtanh.f32 %v5463_v43  ;;  %v5539_v43 = vpop.f32.mrb[43].mxu1  ;;  %v5541_v7 = vpop.f32.mrb[51].mxu0 }
 0x230   : > { %v2433_v23 = vadd.f32 %v2432_v42, %v2366_v52  ;;  %v2375_v51 = vmul.f32 %v2279_v31, %v2183_v25  ;;  %v1913_v9 = vadd.f32 0.5, %v1817_v22  ;;  %v2282_v12 = vmul.f32 %v2186_v58, %v2186_v58 }
 0x231   : > { %v2377_v28 = vmul.f32 %v2281_v30, %v2185_v29  ;;  %v2103_v55 = vmax.f32 %v2007_v0, 1e-06  ;;  %v2376_v33 = vmul.f32 %v2280_v61, %v2184_v10  ;;  %v1635_v45 = vmul.f32 0.5, %v5467_v26 }
 0x232   : > { %v2395_v46 = vadd.f32 %v2394_v17, %v2375_v51  ;;  %v2009_v54 = vmul.f32 %v1913_v9, %v5438_v27  ;;  %v2378_v40 = vmul.f32 %v2282_v12, %v2186_v58  ;;  %v5537_v42 = vadd.f32 %v5304_v1, %v6376_v60  ;;  %v4531_v58 = vpop.eup %4530 }
 0x233   : > { %v2421_v32 = vadd.f32 %v2420_v47, %v2377_v28  ;;  %v2199_v39 = vmul.f32 %v2103_v55, %v2103_v55  ;;  %v2408_v15 = vadd.f32 %v2407_v5, %v2376_v33  ;;  %4534 = vtanh.f32 %v1635_v45  ;;  %v5563_v33 = vpop.f32.mrb[44].mxu1 }
 0x234   : > { %v2396_v6 = vrot.slane %v2395_v46, 4  ;;  %v2105_v56 = vmax.f32 %v2009_v54, 1e-06  ;;  %v2434_v25 = vadd.f32 %v2433_v23, %v2378_v40  ;;  %v1637_v47 = vmul.f32 0.5, %v5537_v42  ;;  %v5565_v54 = vpop.f32.mrb[52].mxu0 }
 0x235   : > { %v2422_v17 = vrot.slane %v2421_v32, 4  ;;  %v5543_v27 = vmul.f32 %v2199_v39, %v2103_v55  ;;  %v2409_v29 = vrot.slane %v2408_v15, 4  ;;  %v5548_v1 = vadd.f32 %v5307_v16, %v6379_v4 }
 0x236   : > { %v2397_v41 = vadd.f32 %v2396_v6, %v2395_v46  ;;  %v2201_v48 = vmul.f32 %v2105_v56, %v2105_v56  ;;  %v2435_v24 = vrot.slane %v2434_v25, 4  ;;  %4536 = vtanh.f32 %v1637_v47  ;;  %v5569_v6 = vpop.f32.mrb[53].mxu0 }
 0x237   : > { %v2423_v5 = vadd.f32 %v2422_v17, %v2421_v32  ;;  %v5552_v52 = vadd.f32 %v5309_v49, %v6380_v11  ;;  %v2410_v10 = vadd.f32 %v2409_v29, %v2408_v15  ;;  %v1636_v30 = vmul.f32 0.5, %v5548_v1  ;;  %6396 = vst [vmem:[#allocation38_spill] sm:$0xff] %v5569_v6 }
 0x238   : > { %v2398_v31 = vrot.slane %v2397_v41, 2  ;;  %v5554_v22 = vmul.f32 %v2201_v48, %v2105_v56  ;;  %v2436_v23 = vadd.f32 %v2435_v24, %v2434_v25  ;;  %v5560_v16 = vadd.f32 %v5314_v2, %v6371_v18  ;;  %v5567_v2 = vpop.f32.mrb[45].mxu1 }
 0x239   : > { %v2424_v0 = vrot.slane %v2423_v5, 2  ;;  %v1638_v51 = vmul.f32 0.5, %v5552_v52  ;;  %v2411_v9 = vrot.slane %v2410_v10, 2  ;;  %v1816_v28 = vmul.f32 0.5, %v4531_v58  ;;  %v4533_v49 = vpop.eup %4532  ;;  %6395 = vst [vmem:[#allocation37_spill] sm:$0xff] %v5567_v2 }
 0x23a   : > { %v2399_v61 = vadd.f32 %v2398_v31, %v2397_v41  ;;  %4538 = vtanh.f32 %v1636_v30  ;;  %v2437_v55 = vrot.slane %v2436_v23, 2  ;;  %v1647_v46 = vmul.f32 0.5, %v5560_v16 }
 0x23b   : > { %v2425_v12 = vadd.f32 %v2424_v0, %v2423_v5  ;;  %4540 = vtanh.f32 %v1638_v51  ;;  %v2412_v32 = vadd.f32 %v2411_v9, %v2410_v10  ;;  %v1912_v40 = vadd.f32 0.5, %v1816_v28 }
 0x23c   : > { %v2400_v45 = vrot.slane %v2399_v61, 1  ;;  %v1818_v39 = vmul.f32 0.5, %v4533_v49  ;;  %v2438_v56 = vadd.f32 %v2437_v55, %v2436_v23  ;;  %4542 = vtanh.f32 %v1647_v46 }
 0x23d   : > { %v2426_v15 = vrot.slane %v2425_v12, 1  ;;  %v5573_v17 = vadd.f32 %v5316_v59, %v6376_v60  ;;  %v4535_v25 = vpop.eup %4534  ;;  %v2413_v41 = vrot.slane %v2412_v32, 1  ;;  %v2008_v29 = vmul.f32 %v1912_v40, %v5446_v50 }
 0x23e   : > { %v2401_v47 = vadd.f32 %v2400_v45, %v2399_v61  ;;  %v1914_v48 = vadd.f32 0.5, %v1818_v39  ;;  %v2439_v24 = vrot.slane %v2438_v56, 1  ;;  %v1827_v31 = vmul.f32 0.5, %v4535_v25 }
 0x23f   : > { %v2427_v5 = vadd.f32 %v2426_v15, %v2425_v12  ;;  %v1649_v10 = vmul.f32 0.5, %v5573_v17  ;;  %v2414_v30 = vadd.f32 %v2413_v41, %v2412_v32  ;;  %v2104_v58 = vmax.f32 %v2008_v29, 1e-06  ;;  %v6397_v32 = vld [vmem:[#allocation12_spill] sm:$0xff] }
 0x240   : > { %v2010_v0 = vmul.f32 %v1914_v48, %v5450_v63  ;;  %v5580_v23 = vadd.f32 %v5319_v19, %v6379_v4  ;;  %v4537_v59 = vpop.eup %4536  ;;  %v2440_v51 = vadd.f32 %v2439_v24, %v2438_v56  ;;  %v1923_v61 = vadd.f32 0.5, %v1827_v31 }
 0x241   : > { %4544 = vtanh.f32 %v1649_v10  ;;  %v5584_v50 = vadd.f32 %v5321_v62, %v6380_v11  ;;  %v2557_v9 = vcombine.low %v2401_v47, %v2414_v30  ;;  %v2200_v28 = vmul.f32 %v2104_v58, %v2104_v58 }
 0x242   : > { %v2106_v49 = vmax.f32 %v2010_v0, 1e-06  ;;  %v1829_v12 = vmul.f32 0.5, %v4537_v59  ;;  %v2558_v55 = vcombine.low %v2427_v5, %v2440_v51  ;;  %v2019_v46 = vmul.f32 %v1923_v61, %v5467_v26  ;;  %v5592_v5 = vpop.f32.mrb[46].mxu1 }
 0x243   : > { %v1648_v63 = vmul.f32 0.5, %v5580_v23  ;;  %v1650_v19 = vmul.f32 0.5, %v5584_v50  ;;  %v2567_v40 = vrot.slane %v2557_v9, %v6397_v32  ;;  %v2296_v39 = vmul.f32 %v2200_v28, %v2104_v58  ;;  %6398 = vst [vmem:[#allocation12_spill] sm:$0xff] %v5592_v5 }
 0x244   : > { %v4539_v45 = vpop.eup %4538  ;;  %v2202_v15 = vmul.f32 %v2106_v49, %v2106_v49  ;;  %v1925_v56 = vadd.f32 0.5, %v1829_v12  ;;  %v2574_v62 = vrot.slane %v2558_v55, %v6397_v32  ;;  %v2115_v47 = vmax.f32 %v2019_v46, 1e-06  ;;  %v5607_v12 = vpop.f32.mrb[54].mxu0 }
 0x245   : > { %v4541_v25 = vpop.eup %4540  ;;  %v1828_v41 = vmul.f32 0.5, %v4539_v45  ;;  %4546 = vtanh.f32 %v1648_v63  ;;  %v5596_v58 = vadd.f32 %v5323_v53, %v6371_v18  ;;  %v5600_v61 = vadd.f32 %v5325_v36, %v6376_v60  ;;  %6399 = vst [vmem:[#allocation39_spill] sm:$0xff] %v5607_v12 }
 0x246   : > { %v2298_v29 = vmul.f32 %v2202_v15, %v2106_v49  ;;  %v2021_v48 = vmul.f32 %v1925_v56, %v5537_v42  ;;  %v1830_v26 = vmul.f32 0.5, %v4541_v25  ;;  %4548 = vtanh.f32 %v1650_v19  ;;  %v4543_v24 = vpop.eup %4542 }
 0x247   : > { %v2589_v31 = vcombine.low %v2567_v40, %v2574_v62  ;;  %v2211_v10 = vmul.f32 %v2115_v47, %v2115_v47  ;;  %v1924_v30 = vadd.f32 0.5, %v1828_v41  ;;  %v1839_v51 = vmul.f32 0.5, %v4543_v24 }
 0x248   : > { %v2117_v0 = vmax.f32 %v2021_v48, 1e-06  ;;  %v1926_v59 = vadd.f32 0.5, %v1830_v26  ;;  %v1659_v49 = vmul.f32 0.5, %v5596_v58  ;;  %v1661_v63 = vmul.f32 0.5, %v5600_v61 }
 0x249   : > { %v5603_v42 = vrot.slane %v2589_v31, %v6397_v32  ;;  %v2307_v9 = vmul.f32 %v2211_v10, %v2115_v47  ;;  %v2020_v28 = vmul.f32 %v1924_v30, %v5548_v1  ;;  %v1935_v46 = vadd.f32 0.5, %v1839_v51  ;;  %v5628_v30 = vpop.f32.mrb[47].mxu1 }
 0x24a   : > { %v2213_v55 = vmul.f32 %v2117_v0, %v2117_v0  ;;  %v2022_v53 = vmul.f32 %v1926_v59, %v5552_v52  ;;  %4550 = vtanh.f32 %v1659_v49  ;;  %v5614_v40 = vadd.f32 %v5328_v21, %v6379_v4 }
 0x24b   : > { %v4545_v19 = vpop.eup %4544  ;;  %v2441_v36 = vadd.f32 %v2307_v9, %v5543_v27  ;;  %v2116_v45 = vmax.f32 %v2020_v28, 1e-06  ;;  %v2031_v56 = vmul.f32 %v1935_v46, %v5560_v16  ;;  %4552 = vtanh.f32 %v1661_v63  ;;  %v6400_v16 = vld [vmem:[#allocation13_spill] sm:$0xff] }
 0x24c   : > { %v2309_v1 = vmul.f32 %v2213_v55, %v2117_v0  ;;  %v2118_v15 = vmax.f32 %v2022_v53, 1e-06  ;;  %v1841_v25 = vmul.f32 0.5, %v4545_v19  ;;  %v1660_v52 = vmul.f32 0.5, %v5614_v40  ;;  %6401 = vst [vmem:[#allocation13_spill] sm:$0xff] %v5628_v30  ;;  %v5630_v0 = vpop.f32.mrb[55].mxu0 }
 0x24d   : > { %v2212_v62 = vmul.f32 %v2116_v45, %v2116_v45  ;;  %v5620_v47 = vadd.f32 %v5330_v37, %v6380_v11  ;;  %v2127_v48 = vmax.f32 %v2031_v56, 1e-06  ;;  %v5626_v10 = vadd.f32 %v6400_v16, %v6371_v18  ;;  %6402 = vst [vmem:[#allocation40_spill] sm:$0xff] %v5630_v0 }
 0x24e   : > { %v2467_v27 = vadd.f32 %v2309_v1, %v5554_v22  ;;  %v2214_v41 = vmul.f32 %v2118_v15, %v2118_v15  ;;  %v1937_v26 = vadd.f32 0.5, %v1841_v25  ;;  %4554 = vtanh.f32 %v1660_v52  ;;  %v6403_v1 = vld [vmem:[#allocation14_spill] sm:$0xff]  ;;  %v6405_v52 = vld [vmem:[#allocation16_spill] sm:$0xff] }
 0x24f   : > { %v4547_v21 = vpop.eup %4546  ;;  %v2308_v24 = vmul.f32 %v2212_v62, %v2116_v45  ;;  %v1662_v31 = vmul.f32 0.5, %v5620_v47  ;;  %v2223_v51 = vmul.f32 %v2127_v48, %v2127_v48  ;;  %v1671_v55 = vmul.f32 0.5, %v5626_v10 }
 0x250   : > { %v4549_v37 = vpop.eup %4548  ;;  %v2310_v59 = vmul.f32 %v2214_v41, %v2118_v15  ;;  %v2033_v22 = vmul.f32 %v1937_v26, %v5573_v17  ;;  %v1840_v9 = vmul.f32 0.5, %v4547_v21  ;;  %v5636_v56 = vadd.f32 %v6403_v1, %v6376_v60  ;;  %v6404_v15 = vld [vmem:[#allocation15_spill] sm:$0xff] }
 0x251   : > { %v2454_v28 = vadd.f32 %v2308_v24, %v2296_v39  ;;  %v1842_v49 = vmul.f32 0.5, %v4549_v37  ;;  %4556 = vtanh.f32 %v1662_v31  ;;  %v2319_v46 = vmul.f32 %v2223_v51, %v2127_v48  ;;  %v6406_v24 = vld [vmem:[#allocation17_spill] sm:$0xff] }
 0x252   : > { %v2480_v53 = vadd.f32 %v2310_v59, %v2298_v29  ;;  %v2129_v63 = vmax.f32 %v2033_v22, 1e-06  ;;  %v1936_v19 = vadd.f32 0.5, %v1840_v9  ;;  %4558 = vtanh.f32 %v1671_v55 }
 0x253   : > { %v1938_v45 = vadd.f32 0.5, %v1842_v49  ;;  %v5640_v25 = vadd.f32 %v6404_v15, %v6379_v4  ;;  %v2442_v17 = vadd.f32 %v2441_v36, %v2319_v46  ;;  %v5645_v29 = vadd.f32 %v6405_v52, %v6380_v11  ;;  %v6408_v15 = vld [vmem:[#allocation19_spill] sm:$0xff] }
 0x254   : > { %v2225_v39 = vmul.f32 %v2129_v63, %v2129_v63  ;;  %v2032_v62 = vmul.f32 %v1936_v19, %v5580_v23  ;;  %v4551_v41 = vpop.eup %4550  ;;  %v1673_v26 = vmul.f32 0.5, %v5636_v56  ;;  %v5652_v31 = vadd.f32 %v6406_v24, %v6371_v18 }
 0x255   : > { %v2034_v48 = vmul.f32 %v1938_v45, %v5584_v50  ;;  %v1672_v21 = vmul.f32 0.5, %v5640_v25  ;;  %v1851_v37 = vmul.f32 0.5, %v4551_v41  ;;  %v1674_v23 = vmul.f32 0.5, %v5645_v29  ;;  %v4553_v59 = vpop.eup %4552  ;;  %v6407_v50 = vld [vmem:[#allocation18_spill] sm:$0xff] }
 0x256   : > { %v2321_v16 = vmul.f32 %v2225_v39, %v2129_v63  ;;  %v2128_v36 = vmax.f32 %v2032_v62, 1e-06  ;;  %4560 = vtanh.f32 %v1673_v26  ;;  %v1683_v22 = vmul.f32 0.5, %v5652_v31 }
 0x257   : > { %v2130_v51 = vmax.f32 %v2034_v48, 1e-06  ;;  %v5658_v9 = vadd.f32 %v6407_v50, %v6376_v60  ;;  %v1947_v46 = vadd.f32 0.5, %v1851_v37  ;;  %v1853_v19 = vmul.f32 0.5, %v4553_v59 }
 0x258   : > { %v2468_v49 = vadd.f32 %v2467_v27, %v2321_v16  ;;  %v2224_v55 = vmul.f32 %v2128_v36, %v2128_v36  ;;  %v4555_v45 = vpop.eup %4554  ;;  %4562 = vtanh.f32 %v1672_v21  ;;  %v5663_v39 = vadd.f32 %v6408_v15, %v6379_v4  ;;  %v6409_v16 = vld [vmem:[#allocation20_spill] sm:$0xff] }
 0x259   : > { %v2226_v1 = vmul.f32 %v2130_v51, %v2130_v51  ;;  %v1685_v63 = vmul.f32 0.5, %v5658_v9  ;;  %v2043_v52 = vmul.f32 %v1947_v46, %v5596_v58  ;;  %v1949_v41 = vadd.f32 0.5, %v1853_v19 }
 0x25a   : > { %v2320_v62 = vmul.f32 %v2224_v55, %v2128_v36  ;;  %v1852_v48 = vmul.f32 0.5, %v4555_v45  ;;  %4564 = vtanh.f32 %v1674_v23  ;;  %v1684_v27 = vmul.f32 0.5, %v5663_v39 }
 0x25b   : > { %v4557_v26 = vpop.eup %4556  ;;  %v2322_v24 = vmul.f32 %v2226_v1, %v2130_v51  ;;  %v5669_v37 = vadd.f32 %v6409_v16, %v6380_v11  ;;  %v2139_v59 = vmax.f32 %v2043_v52, 1e-06  ;;  %v2045_v50 = vmul.f32 %v1949_v41, %v5600_v61  ;;  %v6410_v1 = vld [vmem:[#allocation8_spill] sm:$0xff]  ;;  %v6411_v61 = vld [vmem:[#allocation21_spill] sm:$0xff] }
 0x25c   : > { %v2455_v21 = vadd.f32 %v2454_v28, %v2320_v62  ;;  %v1948_v15 = vadd.f32 0.5, %v1852_v48  ;;  %v4559_v0 = vpop.eup %4558  ;;  %v1854_v55 = vmul.f32 0.5, %v4557_v26  ;;  %4566 = vtanh.f32 %v1683_v22 }
 0x25d   : > { %v2481_v36 = vadd.f32 %v2480_v53, %v2322_v24  ;;  %v1686_v58 = vmul.f32 0.5, %v5669_v37  ;;  %v2235_v46 = vmul.f32 %v2139_v59, %v2139_v59  ;;  %v2141_v51 = vmax.f32 %v2045_v50, 1e-06 }
 0x25e   : > { %v2044_v23 = vmul.f32 %v1948_v15, %v5614_v40  ;;  %v1863_v19 = vmul.f32 0.5, %v4559_v0  ;;  %v1950_v45 = vadd.f32 0.5, %v1854_v55  ;;  %4568 = vtanh.f32 %v1685_v63 }
 0x25f   : > { %v5676_v28 = vadd.f32 %v6410_v1, %v6371_v18  ;;  %v5680_v62 = vadd.f32 %v6411_v61, %v6376_v60  ;;  %v2331_v53 = vmul.f32 %v2235_v46, %v2139_v59  ;;  %v2237_v52 = vmul.f32 %v2141_v51, %v2141_v51  ;;  %v6412_v59 = vld [vmem:[#allocation22_spill] sm:$0xff] }
 0x260   : > { %v2140_v22 = vmax.f32 %v2044_v23, 1e-06  ;;  %v1959_v41 = vadd.f32 0.5, %v1863_v19  ;;  %v4561_v48 = vpop.eup %4560  ;;  %v2046_v26 = vmul.f32 %v1950_v45, %v5620_v47  ;;  %4570 = vtanh.f32 %v1684_v27 }
 0x261   : > { %v1695_v40 = vmul.f32 0.5, %v5676_v28  ;;  %v1697_v0 = vmul.f32 0.5, %v5680_v62  ;;  %v2443_v63 = vadd.f32 %v2442_v17, %v2331_v53  ;;  %v2333_v24 = vmul.f32 %v2237_v52, %v2141_v51 }
 0x262   : > { %v2236_v16 = vmul.f32 %v2140_v22, %v2140_v22  ;;  %v2055_v50 = vmul.f32 %v1959_v41, %v5626_v10  ;;  %v4563_v15 = vpop.eup %4562  ;;  %v2142_v55 = vmax.f32 %v2046_v26, 1e-06  ;;  %v1865_v1 = vmul.f32 0.5, %v4561_v48 }
 0x263   : > { %4572 = vtanh.f32 %v1686_v58  ;;  %v5688_v46 = vadd.f32 %v6412_v59, %v6379_v4  ;;  %v2469_v23 = vadd.f32 %v2468_v49, %v2333_v24  ;;  %v1864_v19 = vmul.f32 0.5, %v4563_v15  ;;  %v6413_v49 = vld [vmem:[#allocation23_spill] sm:$0xff] }
 0x264   : > { %v2332_v47 = vmul.f32 %v2236_v16, %v2140_v22  ;;  %v2151_v27 = vmax.f32 %v2055_v50, 1e-06  ;;  %v4565_v45 = vpop.eup %4564  ;;  %v2238_v61 = vmul.f32 %v2142_v55, %v2142_v55  ;;  %v1961_v30 = vadd.f32 0.5, %v1865_v1 }
 0x265   : > { %4574 = vtanh.f32 %v1695_v40  ;;  %v1696_v17 = vmul.f32 0.5, %v5688_v46  ;;  %v1960_v53 = vadd.f32 0.5, %v1864_v19  ;;  %v1866_v52 = vmul.f32 0.5, %v4565_v45 }
 0x266   : > { %v2456_v51 = vadd.f32 %v2455_v21, %v2332_v47  ;;  %v2247_v10 = vmul.f32 %v2151_v27, %v2151_v27  ;;  %v4567_v41 = vpop.eup %4566  ;;  %v2334_v58 = vmul.f32 %v2238_v61, %v2142_v55  ;;  %v2057_v48 = vmul.f32 %v1961_v30, %v5636_v56 }
 0x267   : > { %4576 = vtanh.f32 %v1697_v0  ;;  %v5694_v22 = vadd.f32 %v6413_v49, %v6380_v11  ;;  %v2056_v24 = vmul.f32 %v1960_v53, %v5640_v25  ;;  %v1962_v16 = vadd.f32 0.5, %v1866_v52 }
 0x268   : > { %v2343_v26 = vmul.f32 %v2247_v10, %v2151_v27  ;;  %v1875_v40 = vmul.f32 0.5, %v4567_v41  ;;  %v4569_v50 = vpop.eup %4568  ;;  %v2482_v15 = vadd.f32 %v2481_v36, %v2334_v58  ;;  %v2153_v21 = vmax.f32 %v2057_v48, 1e-06  ;;  %v6414_v27 = vld [vmem:[#allocation9_spill] sm:$0xff] }
 0x269   : > { %4578 = vtanh.f32 %v1696_v17  ;;  %v1698_v1 = vmul.f32 0.5, %v5694_v22  ;;  %v2152_v55 = vmax.f32 %v2056_v24, 1e-06  ;;  %v2058_v30 = vmul.f32 %v1962_v16, %v5645_v29  ;;  %v6415_v29 = vld [vmem:[#allocation24_spill] sm:$0xff] }
 0x26a   : > { %v2444_v59 = vadd.f32 %v2443_v63, %v2343_v26  ;;  %v1971_v56 = vadd.f32 0.5, %v1875_v40  ;;  %v4571_v0 = vpop.eup %4570  ;;  %v2249_v47 = vmul.f32 %v2153_v21, %v2153_v21  ;;  %v1877_v19 = vmul.f32 0.5, %v4569_v50 }
 0x26b   : > { %4580 = vtanh.f32 %v1698_v1  ;;  %v5701_v25 = vadd.f32 %v6414_v27, %v6371_v18  ;;  %v2248_v45 = vmul.f32 %v2152_v55, %v2152_v55  ;;  %v2154_v61 = vmax.f32 %v2058_v30, 1e-06 }
 0x26c   : > { %v2067_v36 = vmul.f32 %v1971_v56, %v5652_v31  ;;  %v1876_v17 = vmul.f32 0.5, %v4571_v0  ;;  %v2345_v53 = vmul.f32 %v2249_v47, %v2153_v21  ;;  %v1973_v63 = vadd.f32 0.5, %v1877_v19 }
 0x26d   : > { %v4573_v10 = vpop.eup %4572  ;;  %v1707_v52 = vmul.f32 0.5, %v5701_v25  ;;  %v5707_v41 = vadd.f32 %v6415_v29, %v6376_v60  ;;  %v2344_v58 = vmul.f32 %v2248_v45, %v2152_v55  ;;  %v2250_v48 = vmul.f32 %v2154_v61, %v2154_v61 }
 0x26e   : > { %v2163_v49 = vmax.f32 %v2067_v36, 1e-06  ;;  %v1972_v26 = vadd.f32 0.5, %v1876_v17  ;;  %v2470_v24 = vadd.f32 %v2469_v23, %v2345_v53  ;;  %v2069_v16 = vmul.f32 %v1973_v63, %v5658_v9  ;;  %v4352_v63 = vld [vmem:[%s6330_s7] sm:$0xff]  }
 0x26f   : > { %v4575_v18 = vpop.eup %4574  ;;  %v1878_v40 = vmul.f32 0.5, %v4573_v10  ;;  %4582 = vtanh.f32 %v1707_v52  ;;  %v2457_v31 = vadd.f32 %v2456_v51, %v2344_v58  ;;  %v2346_v50 = vmul.f32 %v2250_v48, %v2154_v61  ;;  %v4351_v51 = vld [vmem:[%s6330_s7 + $0xc0] sm:$0xff]  }
 0x270   : > { %v2259_v21 = vmul.f32 %v2163_v49, %v2163_v49  ;;  %v2068_v1 = vmul.f32 %v1972_v26, %v5663_v39  ;;  %v2165_v56 = vmax.f32 %v2069_v16, 1e-06  ;;  %v1887_v60 = vmul.f32 0.5, %v4575_v18  ;;  %v4350_v39 = vld [vmem:[%s6330_s7 + $0x40] sm:$0xff]   ;;  %4051 = vmatprep.subr.bf16.mxu0 %v4351_v51  ;;  %v6417_v51 = vld [vmem:[#allocation11_spill] sm:$0xff] }
 0x271   : > { %v4577_v30 = vpop.eup %4576  ;;  %v1974_v0 = vadd.f32 0.5, %v1878_v40  ;;  %v1709_v55 = vmul.f32 0.5, %v5707_v41  ;;  %v2483_v47 = vadd.f32 %v2482_v15, %v2346_v50  ;;  %4029 = vmatprep.subr.bf16.mxu1 %v4350_v39  ;;  %v5734_v50 = vld [vmem:[%s6327_s4 + $0x8] sm:$0xf] }
 0x272   : > { %v2355_v19 = vmul.f32 %v2259_v21, %v2163_v49  ;;  %v2164_v27 = vmax.f32 %v2068_v1, 1e-06  ;;  %v1889_v45 = vmul.f32 0.5, %v4577_v30  ;;  %v2261_v36 = vmul.f32 %v2165_v56, %v2165_v56  ;;  %v6416_v49 = vld [vmem:[#allocation10_spill] sm:$0xff]  ;;  %4030 = vmatpush3.bf16.msra.mxu1 %v4352_v63  ;;  %v4358_v63 = vld [vmem:[%s6330_s7 + $0x50] sm:$0xff]  }
 0x273   : > { %v4579_v23 = vpop.eup %4578  ;;  %v2070_v9 = vmul.f32 %v1974_v0, %v5669_v37  ;;  %v1983_v17 = vadd.f32 0.5, %v1887_v60  ;;  %4584 = vtanh.f32 %v1709_v55  ;;  %v4353_v37 = vld [vmem:[%s6330_s7 + $0x80] sm:$0xff]   ;;  %v5728_v26 = vadd.f32 %v6416_v49, %v6379_v4  ;;  %v4354_v30 = vld [vmem:[%s6330_s7 + $0x48] sm:$0xff]  }
 0x274   : > { %v2445_v61 = vadd.f32 %v2444_v59, %v2355_v19  ;;  %v2260_v10 = vmul.f32 %v2164_v27, %v2164_v27  ;;  %v1985_v15 = vadd.f32 0.5, %v1889_v45  ;;  %v1888_v53 = vmul.f32 0.5, %v4579_v23  ;;  %4052 = vmatpush3.bf16.msra.mxu0 %v4353_v37  ;;  %v4357_v19 = vld [vmem:[%s6330_s7 + $0x88] sm:$0xff]   ;;  %4031 = vmatprep.subr.bf16.mxu1 %v4354_v30 }
 0x275   : > { %v4581_v52 = vpop.eup %4580  ;;  %v2357_v29 = vmul.f32 %v2261_v36, %v2165_v56  ;;  %v2166_v58 = vmax.f32 %v2070_v9, 1e-06  ;;  %v2079_v48 = vmul.f32 %v1983_v17, %v5676_v28  ;;  %v1708_v4 = vmul.f32 0.5, %v5728_v26 }
 0x276   : > { %v2356_v59 = vmul.f32 %v2260_v10, %v2164_v27  ;;  %v2081_v18 = vmul.f32 %v1985_v15, %v5680_v62  ;;  %v1984_v16 = vadd.f32 0.5, %v1888_v53  ;;  %v1890_v40 = vmul.f32 0.5, %v4581_v52  ;;  %v4355_v62 = vld [vmem:[%s6330_s7 + $0xc8] sm:$0xff]   ;;  %v6418_v15 = vld [vmem:[#allocation4_spill] sm:$0xff] }
 0x277   : > { %v2471_v21 = vadd.f32 %v2470_v24, %v2357_v29  ;;  %v2262_v28 = vmul.f32 %v2166_v58, %v2166_v58  ;;  %v2175_v1 = vmax.f32 %v2079_v48, 1e-06  ;;  %v4356_v24 = vld [vmem:[%s6330_s7 + $0x8] sm:$0xff]   ;;  %4586 = vtanh.f32 %v1708_v4  ;;  %4053 = vmatprep.subr.bf16.mxu0 %v4355_v62 }
 0x278   : > { %v2458_v56 = vadd.f32 %v2457_v31, %v2356_v59  ;;  %v2177_v0 = vmax.f32 %v2081_v18, 1e-06  ;;  %v2080_v60 = vmul.f32 %v1984_v16, %v5688_v46  ;;  %v1986_v55 = vadd.f32 0.5, %v1890_v40  ;;  %4032 = vmatpush3.bf16.msra.mxu1 %v4356_v24  ;;  %4054 = vmatpush3.bf16.msra.mxu0 %v4357_v19  ;;  %v6419_v18 = vld [vmem:[#allocation25_spill] sm:$0xff] }
 0x279   : > { %v4583_v27 = vpop.eup %4582  ;;  %v2358_v45 = vmul.f32 %v2262_v28, %v2166_v58  ;;  %v2271_v23 = vmul.f32 %v2175_v1, %v2175_v1  ;;  %v5753_v10 = vadd.f32 %v6417_v51, %v6380_v11  ;;  %v5757_v53 = vrot.slane %v5734_v50, %v6418_v15  ;;  %v4360_v11 = vld [vmem:[%s6330_s7 + $0x10] sm:$0xff]   ;;  %v6420_v40 = vld [vmem:[#allocation5_spill] sm:$0xff]  ;;  %4033 = vmatprep.subr.bf16.mxu1 %v4358_v63 }
 0x27a   : > { %v2273_v36 = vmul.f32 %v2177_v0, %v2177_v0  ;;  %v2176_v31 = vmax.f32 %v2080_v60, 1e-06  ;;  %v2082_v9 = vmul.f32 %v1986_v55, %v5694_v22  ;;  %v1899_v46 = vmul.f32 0.5, %v4583_v27  ;;  %v4359_v22 = vld [vmem:[%s6330_s7 + $0xd0] sm:$0xff]   ;;  %v6421_v60 = vld [vmem:[#allocation26_spill] sm:$0xff]  ;;  %v4362_v24 = vld [vmem:[%s6330_s7 + $0x58] sm:$0xff]  }
 0x27b   : > { %v2484_v17 = vadd.f32 %v2483_v47, %v2358_v45  ;;  %v2367_v39 = vmul.f32 %v2271_v23, %v2175_v1  ;;  %v4361_v58 = vld [vmem:[%s6330_s7 + $0x90] sm:$0xff]   ;;  %v1710_v59 = vmul.f32 0.5, %v5753_v10  ;;  %v5774_v16 = vadd.f32 %v6419_v18, %v5757_v53  ;;  %4055 = vmatprep.subr.bf16.mxu0 %v4359_v22  ;;  %v6422_v45 = vld [vmem:[#allocation6_spill] sm:$0xff] }
 0x27c   : > { %v2369_v37 = vmul.f32 %v2273_v36, %v2177_v0  ;;  %v2272_v52 = vmul.f32 %v2176_v31, %v2176_v31  ;;  %v2178_v47 = vmax.f32 %v2082_v9, 1e-06  ;;  %v1995_v29 = vadd.f32 0.5, %v1899_v46  ;;  %4034 = vmatpush3.bf16.msra.mxu1 %v4360_v11  ;;  %4056 = vmatpush3.bf16.msra.mxu0 %v4361_v58  ;;  %v4364_v36 = vld [vmem:[%s6330_s7 + $0x18] sm:$0xff]   ;;  %v6424_v22 = vld [vmem:[#allocation27_spill] sm:$0xff]  ;;  %v4367_v18 = vld [vmem:[%s6330_s7 + $0xe0] sm:$0xff]  }
 0x27d   : > { %v4585_v48 = vpop.eup %4584  ;;  %v2446_v49 = vadd.f32 %v2445_v61, %v2367_v39  ;;  %v5778_v28 = vrot.slane %v5734_v50, %v6420_v40  ;;  %4588 = vtanh.f32 %v1710_v59  ;;  %v1627_v0 = vmul.f32 0.5, %v5774_v16  ;;  %4035 = vmatprep.subr.bf16.mxu1 %v4362_v24  ;;  %v4366_v59 = vld [vmem:[%s6330_s7 + $0x60] sm:$0xff]  }
 0x27e   : > { %v5780_v1 = vadd.f32 %v2471_v21, %v2369_v37  ;;  %v2368_v4 = vmul.f32 %v2272_v52, %v2176_v31  ;;  %v2274_v30 = vmul.f32 %v2178_v47, %v2178_v47  ;;  %v2091_v62 = vmul.f32 %v1995_v29, %v5701_v25  ;;  %v4363_v21 = vld [vmem:[%s6330_s7 + $0xd8] sm:$0xff]  }
 0x27f   : > { %v1901_v61 = vmul.f32 0.5, %v4585_v48  ;;  %v5786_v55 = vadd.f32 %v6421_v60, %v5778_v28  ;;  %v5798_v23 = vrot.slane %v5734_v50, %v6422_v45  ;;  %v4365_v31 = vld [vmem:[%s6330_s7 + $0x98] sm:$0xff]   ;;  %4590 = vtanh.f32 %v1627_v0  ;;  %4057 = vmatprep.subr.bf16.mxu0 %v4363_v21  ;;  %v4369_v0 = vld [vmem:[%s6330_s7 + $0xa0] sm:$0xff]  }
 0x280   : > { %v5794_v19 = vadd.f32 %v2458_v56, %v2368_v4  ;;  %v2370_v25 = vmul.f32 %v2274_v30, %v2178_v47  ;;  %v2187_v27 = vmax.f32 %v2091_v62, 1e-06  ;;  %v6423_v56 = vld [vmem:[#allocation7_spill] sm:$0xff]  ;;  %v6425_v52 = vld [vmem:[#allocation29_spill] sm:$0xff]  ;;  %4036 = vmatpush3.bf16.msra.mxu1 %v4364_v36  ;;  %4058 = vmatpush3.bf16.msra.mxu0 %v4365_v31 }
 0x281   : > { %v1997_v9 = vadd.f32 0.5, %v1901_v61  ;;  %v1629_v46 = vmul.f32 0.5, %v5786_v55  ;;  %v5809_v39 = vrot.slane %v5734_v50, %v6423_v56  ;;  %v5815_v37 = vadd.f32 %v6424_v22, %v5798_v23  ;;  %v4587_v29 = vpop.eup %4586  ;;  %v6426_v50 = vld [vmem:[#allocation28_spill] sm:$0xff]  ;;  %v4368_v61 = vld [vmem:[%s6330_s7 + $0x20] sm:$0xff]   ;;  %4037 = vmatprep.subr.bf16.mxu1 %v4366_v59  ;;  %4059 = vmatprep.subr.bf16.mxu0 %v4367_v18  ;;  %v4370_v36 = vld [vmem:[%s6330_s7 + $0x68] sm:$0xff]  }
 0x282   : > { %v5811_v51 = vadd.f32 %v2484_v17, %v2370_v25  ;;  %v2283_v63 = vmul.f32 %v2187_v27, %v2187_v27  ;;  %v5819_v47 = vadd.f32 %v6425_v52, %v5757_v53  ;;  %v6427_v17 = vld [vmem:[#allocation30_spill] sm:$0xff]  ;;  %v6428_v25 = vld [vmem:[#allocation31_spill] sm:$0xff] }
 0x283   : > { %v2093_v11 = vmul.f32 %v1997_v9, %v5707_v41  ;;  %4592 = vtanh.f32 %v1629_v46  ;;  %v5824_v58 = vadd.f32 %v6426_v50, %v5809_v39  ;;  %v5828_v48 = vadd.f32 %v6427_v17, %v5778_v28  ;;  %v4371_v31 = vld [vmem:[%s6330_s7 + $0xe8] sm:$0xff]   ;;  %v6430_v50 = vld [vmem:[#allocation33_spill] sm:$0xff]  ;;  %v4374_v59 = vld [vmem:[%s6330_s7 + $0x70] sm:$0xff]  }
 0x284   : > { %v2379_v4 = vmul.f32 %v2283_v63, %v2187_v27  ;;  %v1900_v41 = vmul.f32 0.5, %v4587_v29  ;;  %v1628_v30 = vmul.f32 0.5, %v5815_v37  ;;  %v1639_v62 = vmul.f32 0.5, %v5819_v47  ;;  %v6429_v63 = vld [vmem:[#allocation32_spill] sm:$0xff]  ;;  %4038 = vmatpush3.bf16.msra.mxu1 %v4368_v61  ;;  %v4372_v52 = vld [vmem:[%s6330_s7 + $0x28] sm:$0xff]   ;;  %4060 = vmatpush3.bf16.msra.mxu0 %v4369_v0 }
 0x285   : > { %v2189_v60 = vmax.f32 %v2093_v11, 1e-06  ;;  %v1630_v24 = vmul.f32 0.5, %v5824_v58  ;;  %v1641_v21 = vmul.f32 0.5, %v5828_v48  ;;  %v5848_v27 = vadd.f32 %v6428_v25, %v5798_v23  ;;  %4039 = vmatprep.subr.bf16.mxu1 %v4370_v36  ;;  %4061 = vmatprep.subr.bf16.mxu0 %v4371_v31  ;;  %v6431_v25 = vld [vmem:[#allocation34_spill] sm:$0xff] }
 0x286   : > { %v2447_v9 = vadd.f32 %v2446_v49, %v2379_v4  ;;  %v1996_v46 = vadd.f32 0.5, %v1900_v41  ;;  %4594 = vtanh.f32 %v1628_v30  ;;  %v5858_v22 = vadd.f32 %v6429_v63, %v5809_v39  ;;  %v4373_v49 = vld [vmem:[%s6330_s7 + $0xa8] sm:$0xff]   ;;  %v4375_v30 = vld [vmem:[%s6330_s7 + $0xf0] sm:$0xff]  }
 0x287   : > { %v2285_v29 = vmul.f32 %v2189_v60, %v2189_v60  ;;  %4596 = vtanh.f32 %v1630_v24  ;;  %v1640_v11 = vmul.f32 0.5, %v5848_v27  ;;  %v5866_v17 = vadd.f32 %v6430_v50, %v5757_v53  ;;  %v4589_v61 = vpop.eup %4588 }
 0x288   : > { %v2448_v18 = vrot.slane %v2447_v9, 4  ;;  %v2092_v4 = vmul.f32 %v1996_v46, %v5728_v26  ;;  %4598 = vtanh.f32 %v1639_v62  ;;  %v1642_v41 = vmul.f32 0.5, %v5858_v22  ;;  %4040 = vmatpush3.bf16.msra.mxu1 %v4372_v52  ;;  %v4376_v62 = vld [vmem:[%s6330_s7 + $0x30] sm:$0xff]   ;;  %4062 = vmatpush3.bf16.msra.mxu0 %v4373_v49  ;;  %v4378_v52 = vld [vmem:[%s6330_s7 + $0x78] sm:$0xff]  }
 0x289   : > { %v2381_v0 = vmul.f32 %v2285_v29, %v2189_v60  ;;  %4600 = vtanh.f32 %v1641_v21  ;;  %v1651_v24 = vmul.f32 0.5, %v5866_v17  ;;  %v5882_v36 = vadd.f32 %v6431_v25, %v5778_v28  ;;  %v4591_v31 = vpop.eup %4590  ;;  %v6432_v21 = vld [vmem:[#allocation35_spill] sm:$0xff]  ;;  %4041 = vmatprep.subr.bf16.mxu1 %v4374_v59  ;;  %4063 = vmatprep.subr.bf16.mxu0 %v4375_v30  ;;  %v4380_v30 = vld [vmem:[%s6330_s7 + $0x38] sm:$0xff]  }
 0x28a   : > { %v2449_v63 = vadd.f32 %v2448_v18, %v2447_v9  ;;  %v2188_v50 = vmax.f32 %v2092_v4, 1e-06  ;;  %v1902_v26 = vmul.f32 0.5, %v4589_v61  ;;  %4602 = vtanh.f32 %v1640_v11  ;;  %v4377_v9 = vld [vmem:[%s6330_s7 + $0xb0] sm:$0xff]  }
 0x28b   : > { %v2473_v46 = vadd.f32 %v5780_v1, %v2381_v0  ;;  %4604 = vtanh.f32 %v1642_v41  ;;  %v1653_v60 = vmul.f32 0.5, %v5882_v36  ;;  %v5891_v29 = vadd.f32 %v6432_v21, %v5798_v23  ;;  %v4379_v41 = vld [vmem:[%s6330_s7 + $0xf8] sm:$0xff]  }
 0x28c   : > { %v2450_v11 = vrot.slane %v2449_v63, 2  ;;  %v2284_v18 = vmul.f32 %v2188_v50, %v2188_v50  ;;  %v1998_v1 = vadd.f32 0.5, %v1902_v26  ;;  %v1819_v4 = vmul.f32 0.5, %v4591_v31  ;;  %v6433_v0 = vld [vmem:[#allocation36_spill] sm:$0xff]  ;;  %4042 = vmatpush3.bf16.msra.mxu1 %v4376_v62  ;;  %4064 = vmatpush3.bf16.msra.mxu0 %v4377_v9  ;;  %v4383_v9 = vld [vmem:[%s6330_s7 + $0x1c0] sm:$0xff]  }
 0x28d   : > { %v4593_v61 = vpop.eup %4592  ;;  %v2474_v49 = vrot.slane %v2473_v46, 4  ;;  %4606 = vtanh.f32 %v1651_v24  ;;  %v1652_v59 = vmul.f32 0.5, %v5891_v29  ;;  %v5905_v25 = vadd.f32 %v6433_v0, %v5809_v39  ;;  %4043 = vmatprep.subr.bf16.mxu1 %v4378_v52  ;;  %4065 = vmatprep.subr.bf16.mxu0 %v4379_v41 }
 0x28e   : > { %v2451_v21 = vadd.f32 %v2450_v11, %v2449_v63  ;;  %v2380_v40 = vmul.f32 %v2284_v18, %v2188_v50  ;;  %v2094_v15 = vmul.f32 %v1998_v1, %v5753_v10  ;;  %v1915_v26 = vadd.f32 0.5, %v1819_v4  ;;  %v4381_v63 = vld [vmem:[%s6330_s7 + $0xb8] sm:$0xff]   ;;  %v4382_v10 = vld [vmem:[%s6330_s7 + $0x140] sm:$0xff]  }
 0x28f   : > { %v2475_v31 = vadd.f32 %v2474_v49, %v2473_v46  ;;  %v1821_v56 = vmul.f32 0.5, %v4593_v61  ;;  %4608 = vtanh.f32 %v1653_v60  ;;  %v5912_v24 = vmul.f32 0.5, %v5905_v25 }
 0x290   : > { %v4595_v50 = vpop.eup %4594  ;;  %v2452_v62 = vrot.slane %v2451_v21, 1  ;;  %v2460_v11 = vadd.f32 %v5794_v19, %v2380_v40  ;;  %v2190_v46 = vmax.f32 %v2094_v15, 1e-06  ;;  %v2011_v60 = vmul.f32 %v1915_v26, %v5774_v16  ;;  %4044 = vmatpush3.bf16.msra.mxu1 %v4380_v30  ;;  %4066 = vmatpush3.bf16.msra.mxu0 %v4381_v63 }
 0x291   : > { %v4597_v52 = vpop.eup %4596  ;;  %v2476_v18 = vrot.slane %v2475_v31, 2  ;;  %v1917_v1 = vadd.f32 0.5, %v1821_v56  ;;  %v1820_v4 = vmul.f32 0.5, %v4595_v50  ;;  %4610 = vtanh.f32 %v1652_v59  ;;  %4073 = vmatprep.subr.bf16.mxu1 %v4382_v10  ;;  %4095 = vmatprep.subr.bf16.mxu0 %v4383_v9 }
 0x292   : > { %v4599_v61 = vpop.eup %4598  ;;  %v5925_v49 = vadd.f32 %v2452_v62, %v2451_v21  ;;  %v2461_v0 = vrot.slane %v2460_v11, 4  ;;  %v2286_v45 = vmul.f32 %v2190_v46, %v2190_v46  ;;  %v2107_v12 = vmax.f32 %v2011_v60, 1e-06 }
 0x293   : > { %v4601_v15 = vpop.eup %4600  ;;  %v2477_v40 = vadd.f32 %v2476_v18, %v2475_v31  ;;  %v2013_v16 = vmul.f32 %v1917_v1, %v5786_v55  ;;  %v1916_v19 = vadd.f32 0.5, %v1820_v4  ;;  %v1822_v41 = vmul.f32 0.5, %v4597_v52 }
 0x294   : > { %v4603_v26 = vpop.eup %4602  ;;  %v2462_v5 = vadd.f32 %v2461_v0, %v2460_v11  ;;  %v2382_v56 = vmul.f32 %v2286_v45, %v2190_v46  ;;  %v2203_v50 = vmul.f32 %v2107_v12, %v2107_v12  ;;  %v1831_v59 = vmul.f32 0.5, %v4599_v61 }
 0x295   : > { %v4605_v21 = vpop.eup %4604  ;;  %v2478_v62 = vrot.slane %v2477_v40, 1  ;;  %v2109_v6 = vmax.f32 %v2013_v16, 1e-06  ;;  %v2012_v60 = vmul.f32 %v1916_v19, %v5815_v37  ;;  %v1918_v30 = vadd.f32 0.5, %v1822_v41 }
 0x296   : > { %v2463_v2 = vrot.slane %v2462_v5, 2  ;;  %v2486_v31 = vadd.f32 %v5811_v51, %v2382_v56  ;;  %v2299_v55 = vmul.f32 %v2203_v50, %v2107_v12  ;;  %v1927_v18 = vadd.f32 0.5, %v1831_v59 }
 0x297   : > { %v4607_v52 = vpop.eup %4606  ;;  %v5930_v63 = vadd.f32 %v2478_v62, %v2477_v40  ;;  %v2205_v10 = vmul.f32 %v2109_v6, %v2109_v6  ;;  %v2108_v11 = vmax.f32 %v2012_v60, 1e-06  ;;  %v2014_v45 = vmul.f32 %v1918_v30, %v5824_v58 }
 0x298   : > { %v2464_v46 = vadd.f32 %v2463_v2, %v2462_v5  ;;  %v2487_v9 = vrot.slane %v2486_v31, 4  ;;  %v2023_v1 = vmul.f32 %v1927_v18, %v5819_v47  ;;  %v1833_v4 = vmul.f32 0.5, %v4601_v15 }
 0x299   : > { %v4609_v61 = vpop.eup %4608  ;;  %v2301_v37 = vmul.f32 %v2205_v10, %v2109_v6  ;;  %v2204_v0 = vmul.f32 %v2108_v11, %v2108_v11  ;;  %v2110_v16 = vmax.f32 %v2014_v45, 1e-06  ;;  %v1832_v19 = vmul.f32 0.5, %v4603_v26 }
 0x29a   : > { %v2465_v51 = vrot.slane %v2464_v46, 1  ;;  %v2488_v12 = vadd.f32 %v2487_v9, %v2486_v31  ;;  %v2119_v41 = vmax.f32 %v2023_v1, 1e-06  ;;  %v1929_v56 = vadd.f32 0.5, %v1833_v4 }
 0x29b   : > { %v4611_v40 = vpop.eup %4610  ;;  %v2300_v50 = vmul.f32 %v2204_v0, %v2108_v11  ;;  %v2206_v59 = vmul.f32 %v2110_v16, %v2110_v16  ;;  %v1928_v62 = vadd.f32 0.5, %v1832_v19  ;;  %v1834_v60 = vmul.f32 0.5, %v4605_v21 }
 0x29c   : > { %v2466_v58 = vadd.f32 %v2465_v51, %v2464_v46  ;;  %v2489_v2 = vrot.slane %v2488_v12, 2  ;;  %v2215_v5 = vmul.f32 %v2119_v41, %v2119_v41  ;;  %v2025_v47 = vmul.f32 %v1929_v56, %v5828_v48 }
 0x29d   : > { %v2302_v15 = vmul.f32 %v2206_v59, %v2110_v16  ;;  %v2024_v6 = vmul.f32 %v1928_v62, %v5848_v27  ;;  %v1930_v30 = vadd.f32 0.5, %v1834_v60  ;;  %v1843_v18 = vmul.f32 0.5, %v4607_v52 }
 0x29e   : > { %v2559_v26 = vcombine.low %v5925_v49, %v2466_v58  ;;  %v2490_v31 = vadd.f32 %v2489_v2, %v2488_v12  ;;  %v2311_v10 = vmul.f32 %v2215_v5, %v2119_v41  ;;  %v2121_v45 = vmax.f32 %v2025_v47, 1e-06 }
 0x29f   : > { %v2120_v9 = vmax.f32 %v2024_v6, 1e-06  ;;  %v2026_v11 = vmul.f32 %v1930_v30, %v5858_v22  ;;  %v1939_v1 = vadd.f32 0.5, %v1843_v18  ;;  %v1845_v21 = vmul.f32 0.5, %v4609_v61 }
 0x2a0   : > { %v2581_v46 = vrot.slane %v2559_v26, %v6397_v32  ;;  %v2491_v4 = vrot.slane %v2490_v31, 1  ;;  %v2493_v0 = vadd.f32 %v2311_v10, %v2299_v55  ;;  %v2217_v48 = vmul.f32 %v2121_v45, %v2121_v45 }
 0x2a1   : > { %v2216_v16 = vmul.f32 %v2120_v9, %v2120_v9  ;;  %v2122_v19 = vmax.f32 %v2026_v11, 1e-06  ;;  %v2035_v27 = vmul.f32 %v1939_v1, %v5866_v17  ;;  %v1941_v52 = vadd.f32 0.5, %v1845_v21 }
 0x2a2   : > { %v2492_v51 = vadd.f32 %v2491_v4, %v2490_v31  ;;  %v2313_v49 = vmul.f32 %v2217_v48, %v2121_v45  ;;  %v1844_v12 = vmul.f32 0.5, %v4611_v40  ;;  %4612 = vtanh.f32 %v5912_v24 }
 0x2a3   : > { %v2312_v41 = vmul.f32 %v2216_v16, %v2120_v9  ;;  %v2218_v56 = vmul.f32 %v2122_v19, %v2122_v19  ;;  %v2131_v22 = vmax.f32 %v2035_v27, 1e-06  ;;  %v2037_v61 = vmul.f32 %v1941_v52, %v5882_v36 }
 0x2a4   : > { %v2560_v59 = vcombine.low %v5930_v63, %v2492_v51  ;;  %v2519_v62 = vadd.f32 %v2313_v49, %v2301_v37  ;;  %v1940_v55 = vadd.f32 0.5, %v1844_v12  ;;  %v5945_v60 = vadd.f32 %v5504_v20, %v5757_v53 }
 0x2a5   : > { %v2506_v17 = vadd.f32 %v2312_v41, %v2300_v50  ;;  %v2314_v58 = vmul.f32 %v2218_v56, %v2122_v19  ;;  %v2227_v2 = vmul.f32 %v2131_v22, %v2131_v22  ;;  %v2133_v5 = vmax.f32 %v2037_v61, 1e-06 }
 0x2a6   : > { %v2588_v40 = vrot.slane %v2560_v59, %v6397_v32  ;;  %v2036_v24 = vmul.f32 %v1940_v55, %v5891_v29  ;;  %v1663_v47 = vmul.f32 0.5, %v5945_v60  ;;  %v5952_v36 = vadd.f32 %v5506_v8, %v5778_v28  ;;  %v6434_v59 = vld [vmem:[#allocation37_spill] sm:$0xff]  ;;  %v6435_v55 = vld [vmem:[#allocation38_spill] sm:$0xff] }
 0x2a7   : > { %v5954_v63 = vadd.f32 %v2314_v58, %v2302_v15  ;;  %v2323_v37 = vmul.f32 %v2227_v2, %v2131_v22  ;;  %v2229_v6 = vmul.f32 %v2133_v5, %v2133_v5  ;;  %v5958_v20 = vadd.f32 %v5509_v14, %v5798_v23 }
 0x2a8   : > { %v2590_v50 = vcombine.low %v2581_v46, %v2588_v40  ;;  %v2132_v30 = vmax.f32 %v2036_v24, 1e-06  ;;  %4614 = vtanh.f32 %v1663_v47  ;;  %v1665_v18 = vmul.f32 0.5, %v5952_v36 }
 0x2a9   : > { %v5961_v29 = vadd.f32 %v2493_v0, %v2323_v37  ;;  %v2325_v26 = vmul.f32 %v2229_v6, %v2133_v5  ;;  %v1664_v31 = vmul.f32 0.5, %v5958_v20  ;;  %v5966_v8 = vadd.f32 %v5511_v3, %v5809_v39 }
 0x2aa   : > { %v2604_v15 = vrot.slane %v2590_v50, %v6397_v32  ;;  %v2228_v10 = vmul.f32 %v2132_v30, %v2132_v30  ;;  %4616 = vtanh.f32 %v1665_v18  ;;  %v5971_v14 = vadd.f32 %v5518_v13, %v5757_v53 }
 0x2ab   : > { %v5973_v45 = vadd.f32 %v2519_v62, %v2325_v26  ;;  %4618 = vtanh.f32 %v1664_v31  ;;  %v1666_v9 = vmul.f32 0.5, %v5966_v8  ;;  %v5978_v11 = vadd.f32 %v5520_v57, %v5778_v28 }
 0x2ac   : > { %v4613_v1 = vpop.eup %4612  ;;  %v2605_v3 = vcombine.low %v5603_v42, %v2604_v15  ;;  %v2324_v21 = vmul.f32 %v2228_v10, %v2132_v30  ;;  %v1675_v46 = vmul.f32 0.5, %v5971_v14  ;;  %v5984_v4 = vadd.f32 %v5522_v35, %v5798_v23  ;;  %v6436_v15 = vld [vmem:[#allocation12_spill] sm:$0xff] }
 0x2ad   : > { %v1846_v13 = vmul.f32 0.5, %v4613_v1  ;;  %4620 = vtanh.f32 %v1666_v9  ;;  %v1677_v0 = vmul.f32 0.5, %v5978_v11  ;;  %v5989_v48 = vadd.f32 %v5524_v34, %v5809_v39 }
 0x2ae   : > { %v5991_v57 = vadd.f32 %v2506_v17, %v2324_v21  ;;  %4622 = vtanh.f32 %v1675_v46  ;;  %v1676_v42 = vmul.f32 0.5, %v5984_v4  ;;  %v5997_v35 = vadd.f32 %v5528_v44, %v5757_v53  ;;  %2634 = vst [vmem:[#allocation2] sm:$0xff] %v2605_v3 }
 0x2af   : > { %v1942_v16 = vadd.f32 0.5, %v1846_v13  ;;  %4624 = vtanh.f32 %v1677_v0  ;;  %v1678_v19 = vmul.f32 0.5, %v5989_v48  ;;  %v6001_v27 = vadd.f32 %v5531_v38, %v5778_v28 }
 0x2b0   : > { %4626 = vtanh.f32 %v1676_v42  ;;  %v6005_v34 = vadd.f32 %v5539_v43, %v5798_v23  ;;  %v6009_v52 = vadd.f32 %v5541_v7, %v5809_v39  ;;  %v1687_v44 = vmul.f32 0.5, %v5997_v35 }
 0x2b1   : > { %v2038_v51 = vmul.f32 %v1942_v16, %v5905_v25  ;;  %4628 = vtanh.f32 %v1678_v19  ;;  %v6015_v49 = vadd.f32 %v5563_v33, %v5757_v53  ;;  %v1689_v38 = vmul.f32 0.5, %v6001_v27 }
 0x2b2   : > { %v4615_v12 = vpop.eup %4614  ;;  %v1688_v41 = vmul.f32 0.5, %v6005_v34  ;;  %v1690_v43 = vmul.f32 0.5, %v6009_v52  ;;  %v6022_v7 = vadd.f32 %v5565_v54, %v5778_v28  ;;  %4630 = vtanh.f32 %v1687_v44 }
 0x2b3   : > { %v2134_v56 = vmax.f32 %v2038_v51, 1e-06  ;;  %v1855_v25 = vmul.f32 0.5, %v4615_v12  ;;  %v1699_v22 = vmul.f32 0.5, %v6015_v49  ;;  %4632 = vtanh.f32 %v1689_v38 }
 0x2b4   : > { %v4617_v61 = vpop.eup %4616  ;;  %v1701_v33 = vmul.f32 0.5, %v6022_v7  ;;  %v6028_v62 = vadd.f32 %v6434_v59, %v5798_v23  ;;  %v6032_v17 = vadd.f32 %v6435_v55, %v5809_v39  ;;  %4634 = vtanh.f32 %v1688_v41 }
 0x2b5   : > { %v4619_v58 = vpop.eup %4618  ;;  %v2230_v54 = vmul.f32 %v2134_v56, %v2134_v56  ;;  %v1951_v2 = vadd.f32 0.5, %v1855_v25  ;;  %v1857_v5 = vmul.f32 0.5, %v4617_v61  ;;  %4636 = vtanh.f32 %v1690_v43 }
 0x2b6   : > { %v1856_v40 = vmul.f32 0.5, %v4619_v58  ;;  %v1700_v24 = vmul.f32 0.5, %v6028_v62  ;;  %v6036_v47 = vmul.f32 0.5, %v6032_v17  ;;  %4638 = vtanh.f32 %v1699_v22 }
 0x2b7   : > { %v4621_v37 = vpop.eup %4620  ;;  %v2326_v6 = vmul.f32 %v2230_v54, %v2134_v56  ;;  %v2047_v50 = vmul.f32 %v1951_v2, %v5945_v60  ;;  %v1953_v30 = vadd.f32 0.5, %v1857_v5  ;;  %4640 = vtanh.f32 %v1701_v33 }
 0x2b8   : > { %v4623_v18 = vpop.eup %4622  ;;  %v1952_v26 = vadd.f32 0.5, %v1856_v40  ;;  %v1858_v31 = vmul.f32 0.5, %v4621_v37  ;;  %v6041_v10 = vadd.f32 %v6436_v15, %v5757_v53  ;;  %4642 = vtanh.f32 %v1700_v24 }
 0x2b9   : > { %v4625_v9 = vpop.eup %4624  ;;  %v2533_v1 = vadd.f32 %v5954_v63, %v2326_v6  ;;  %v2143_v3 = vmax.f32 %v2047_v50, 1e-06  ;;  %v2049_v21 = vmul.f32 %v1953_v30, %v5952_v36  ;;  %v1867_v46 = vmul.f32 0.5, %v4623_v18 }
 0x2ba   : > { %v4627_v13 = vpop.eup %4626  ;;  %v2048_v60 = vmul.f32 %v1952_v26, %v5958_v20  ;;  %v1954_v0 = vadd.f32 0.5, %v1858_v31  ;;  %v1869_v42 = vmul.f32 0.5, %v4625_v9  ;;  %4644 = vtanh.f32 %v6036_v47 }
 0x2bb   : > { %v4629_v16 = vpop.eup %4628  ;;  %v2239_v19 = vmul.f32 %v2143_v3, %v2143_v3  ;;  %v2145_v51 = vmax.f32 %v2049_v21, 1e-06  ;;  %v1963_v44 = vadd.f32 0.5, %v1867_v46  ;;  %v1868_v12 = vmul.f32 0.5, %v4627_v13 }
 0x2bc   : > { %v2144_v53 = vmax.f32 %v2048_v60, 1e-06  ;;  %v2050_v38 = vmul.f32 %v1954_v0, %v5966_v8  ;;  %v1965_v41 = vadd.f32 0.5, %v1869_v42  ;;  %v1870_v63 = vmul.f32 0.5, %v4629_v16  ;;  %v4631_v43 = vpop.eup %4630 }
 0x2bd   : > { %v2335_v56 = vmul.f32 %v2239_v19, %v2143_v3  ;;  %v2241_v36 = vmul.f32 %v2145_v51, %v2145_v51  ;;  %v2059_v25 = vmul.f32 %v1963_v44, %v5971_v14  ;;  %v1964_v22 = vadd.f32 0.5, %v1868_v12  ;;  %v4633_v20 = vpop.eup %4632 }
 0x2be   : > { %v2240_v61 = vmul.f32 %v2144_v53, %v2144_v53  ;;  %v2146_v33 = vmax.f32 %v2050_v38, 1e-06  ;;  %v2061_v59 = vmul.f32 %v1965_v41, %v5978_v11  ;;  %v1966_v55 = vadd.f32 0.5, %v1870_v63  ;;  %v4635_v58 = vpop.eup %4634 }
 0x2bf   : > { %v2495_v54 = vadd.f32 %v5961_v29, %v2335_v56  ;;  %v2337_v2 = vmul.f32 %v2241_v36, %v2145_v51  ;;  %v2155_v5 = vmax.f32 %v2059_v25, 1e-06  ;;  %v2060_v8 = vmul.f32 %v1964_v22, %v5984_v4  ;;  %v4637_v40 = vpop.eup %4636 }
 0x2c0   : > { %v2336_v24 = vmul.f32 %v2240_v61, %v2144_v53  ;;  %v2242_v37 = vmul.f32 %v2146_v33, %v2146_v33  ;;  %v2157_v6 = vmax.f32 %v2061_v59, 1e-06  ;;  %v2062_v14 = vmul.f32 %v1966_v55, %v5989_v48  ;;  %v4639_v50 = vpop.eup %4638 }
 0x2c1   : > { %v2521_v30 = vadd.f32 %v5973_v45, %v2337_v2  ;;  %v2251_v18 = vmul.f32 %v2155_v5, %v2155_v5  ;;  %v2156_v26 = vmax.f32 %v2060_v8, 1e-06  ;;  %v1879_v11 = vmul.f32 0.5, %v4631_v43  ;;  %v4641_v31 = vpop.eup %4640 }
 0x2c2   : > { %v2508_v15 = vadd.f32 %v5991_v57, %v2336_v24  ;;  %v2338_v29 = vmul.f32 %v2242_v37, %v2146_v33  ;;  %v2253_v9 = vmul.f32 %v2157_v6, %v2157_v6  ;;  %v2158_v3 = vmax.f32 %v2062_v14, 1e-06  ;;  %v4643_v60 = vpop.eup %4642 }
 0x2c3   : > { %v2347_v21 = vmul.f32 %v2251_v18, %v2155_v5  ;;  %v2252_v4 = vmul.f32 %v2156_v26, %v2156_v26  ;;  %v1975_v46 = vadd.f32 0.5, %v1879_v11  ;;  %v1881_v13 = vmul.f32 0.5, %v4633_v20 }
 0x2c4   : > { %v2534_v0 = vadd.f32 %v2533_v1, %v2338_v29  ;;  %v2349_v42 = vmul.f32 %v2253_v9, %v2157_v6  ;;  %v2254_v48 = vmul.f32 %v2158_v3, %v2158_v3  ;;  %v1880_v16 = vmul.f32 0.5, %v4635_v58  ;;  %v6438_v9 = vld [vmem:[#allocation13_spill] sm:$0xff] }
 0x2c5   : > { %v2496_v19 = vadd.f32 %v2495_v54, %v2347_v21  ;;  %v2348_v45 = vmul.f32 %v2252_v4, %v2156_v26  ;;  %v2071_v51 = vmul.f32 %v1975_v46, %v5997_v35  ;;  %v1977_v44 = vadd.f32 0.5, %v1881_v13  ;;  %v2643_v21 = vld [vmem:[#allocation2] sm:$0xff] }
 0x2c6   : > { %v2522_v12 = vadd.f32 %v2521_v30, %v2349_v42  ;;  %v2350_v53 = vmul.f32 %v2254_v48, %v2158_v3  ;;  %v1976_v57 = vadd.f32 0.5, %v1880_v16  ;;  %v1882_v38 = vmul.f32 0.5, %v4637_v40 }
 0x2c7   : > { %v2509_v41 = vadd.f32 %v2508_v15, %v2348_v45  ;;  %v2167_v63 = vmax.f32 %v2071_v51, 1e-06  ;;  %v2073_v43 = vmul.f32 %v1977_v44, %v6001_v27  ;;  %v1891_v56 = vmul.f32 0.5, %v4639_v50  ;;  %v4645_v44 = vpop.eup %4644 }
 0x2c8   : > { %v2535_v36 = vadd.f32 %v2534_v0, %v2350_v53  ;;  %v2072_v1 = vmul.f32 %v1976_v57, %v6005_v34  ;;  %v1978_v25 = vadd.f32 0.5, %v1882_v38  ;;  %v1893_v22 = vmul.f32 0.5, %v4641_v31 }
 0x2c9   : > { %v2263_v20 = vmul.f32 %v2167_v63, %v2167_v63  ;;  %v2169_v61 = vmax.f32 %v2073_v43, 1e-06  ;;  %v1987_v33 = vadd.f32 0.5, %v1891_v56  ;;  %v1892_v59 = vmul.f32 0.5, %v4643_v60  ;;  %v4403_v60 = vld [vmem:[%s6330_s7 + $0x1e8] sm:$0xff]  }
 0x2ca   : > { %v2168_v35 = vmax.f32 %v2072_v1, 1e-06  ;;  %v2074_v55 = vmul.f32 %v1978_v25, %v6009_v52  ;;  %v1989_v58 = vadd.f32 0.5, %v1893_v22  ;;  %v1711_v24 = vmul.f32 0.5, %v6041_v10 }
 0x2cb   : > { %v2359_v54 = vmul.f32 %v2263_v20, %v2167_v63  ;;  %v2265_v2 = vmul.f32 %v2169_v61, %v2169_v61  ;;  %v2083_v27 = vmul.f32 %v1987_v33, %v6015_v49  ;;  %v1988_v5 = vadd.f32 0.5, %v1892_v59  ;;  %v6437_v49 = vld [vmem:[#allocation39_spill] sm:$0xff] }
 0x2cc   : > { %v2264_v8 = vmul.f32 %v2168_v35, %v2168_v35  ;;  %v2170_v40 = vmax.f32 %v2074_v55, 1e-06  ;;  %v2085_v34 = vmul.f32 %v1989_v58, %v6022_v7  ;;  %4646 = vtanh.f32 %v1711_v24 }
 0x2cd   : > { %v2497_v37 = vadd.f32 %v2496_v19, %v2359_v54  ;;  %v2361_v6 = vmul.f32 %v2265_v2, %v2169_v61  ;;  %v2179_v14 = vmax.f32 %v2083_v27, 1e-06  ;;  %v2084_v50 = vmul.f32 %v1988_v5, %v6028_v62 }
 0x2ce   : > { %v2360_v52 = vmul.f32 %v2264_v8, %v2168_v35  ;;  %v2266_v30 = vmul.f32 %v2170_v40, %v2170_v40  ;;  %v2181_v18 = vmax.f32 %v2085_v34, 1e-06  ;;  %v1615_v31 = vadd.f32 %v6437_v49, %v5778_v28  ;;  %v6442_v28 = vld [vmem:[#allocation40_spill] sm:$0xff] }
 0x2cf   : > { %v2523_v47 = vadd.f32 %v2522_v12, %v2361_v6  ;;  %v2275_v26 = vmul.f32 %v2179_v14, %v2179_v14  ;;  %v2180_v11 = vmax.f32 %v2084_v50, 1e-06  ;;  %v1544_v3 = vadd.f32 %v6438_v9, %v5798_v23 }
 0x2d0   : > { %v2510_v15 = vadd.f32 %v2509_v41, %v2360_v52  ;;  %v2362_v29 = vmul.f32 %v2266_v30, %v2170_v40  ;;  %v2277_v7 = vmul.f32 %v2181_v18, %v2181_v18  ;;  %v1713_v62 = vmul.f32 0.5, %v1615_v31 }
 0x2d1   : > { %v2371_v4 = vmul.f32 %v2275_v26, %v2179_v14  ;;  %v2276_v46 = vmul.f32 %v2180_v11, %v2180_v11  ;;  %v6439_v13 = vlaneseq  ;;  %v1712_v48 = vmul.f32 0.5, %v1544_v3 }
 0x2d2   : > { %v2536_v0 = vadd.f32 %v2535_v36, %v2362_v29  ;;  %v2373_v42 = vmul.f32 %v2277_v7, %v2181_v18  ;;  %v4688_v16 = vmov 0.0   ;;  %v1617_v19 = vadd.f32 %v6442_v28, %v5809_v39 }
 0x2d3   : > { %vm6068_vm1 = vcmp.lt.s32.totalorder %v6439_v13, 512  ;;  %v2498_v23 = vadd.f32 %v2497_v37, %v2371_v4  ;;  %v2372_v45 = vmul.f32 %v2276_v46, %v2180_v11  ;;  %4648 = vtanh.f32 %v1713_v62 }
 0x2d4   : > { %367 = vst.msk [vmem:[#allocation2 + $0x8] sm:$0xf] %vm6068_vm1, %v4688_v16  ;;  %v2645_v51 = vmul.f32 0.015625, %v2643_v21  ;;  %v2524_v12 = vadd.f32 %v2523_v47, %v2373_v42  ;;  %4650 = vtanh.f32 %v1712_v48  ;;  %v1714_v53 = vmul.f32 0.5, %v1617_v19  ;;  %v2657_v42 = vld [vmem:[%s6328_s5] sm:$0xff] }
 0x2d5   : > { %v2511_v57 = vadd.f32 %v2510_v15, %v2372_v45  ;;  %v1894_v38 = vmul.f32 0.5, %v4645_v44  ;;  %v2661_v45 = vld [vmem:[%s6329_s6] sm:$0xff] }
 0x2d6   : > { %4652 = vlog2.f32 %v2645_v51  ;;  %v4647_v63 = vpop.eup %4646 }
 0x2d7   : > { %4654 = vtanh.f32 %v1714_v53  ;;  %v1990_v41 = vadd.f32 0.5, %v1894_v38  ;;  %v1903_v56 = vmul.f32 0.5, %v4647_v63 }
 0x2d9   : > { %v2086_v43 = vmul.f32 %v1990_v41, %v6032_v17  ;;  %v1999_v1 = vadd.f32 0.5, %v1903_v56 }
 0x2db   : > { %v2182_v36 = vmax.f32 %v2086_v43, 1e-06  ;;  %v2095_v22 = vmul.f32 %v1999_v1, %v6041_v10  ;;  %v6443_v1 = vld [vmem:[#allocation6_spill] sm:$0xff] }
 0x2dd   : > { %v4649_v39 = vpop.eup %4648  ;;  %v2278_v25 = vmul.f32 %v2182_v36, %v2182_v36  ;;  %v2191_v35 = vmax.f32 %v2095_v22, 1e-06 }
 0x2de   : > { %v4651_v20 = vpop.eup %4650  ;;  %v1905_v61 = vmul.f32 0.5, %v4649_v39 }
 0x2df   : > { %v2374_v59 = vmul.f32 %v2278_v25, %v2182_v36  ;;  %v1904_v55 = vmul.f32 0.5, %v4651_v20  ;;  %v2287_v5 = vmul.f32 %v2191_v35, %v2191_v35  ;;  %v6444_v25 = vld [vmem:[#allocation7_spill] sm:$0xff] }
 0x2e0   : > { %v4653_v33 = vpop.eup %4652  ;;  %v2001_v54 = vadd.f32 0.5, %v1905_v61  ;;  %v6445_v61 = vld [vmem:[#allocation4_spill] sm:$0xff] }
 0x2e1   : > { %v4655_v58 = vpop.eup %4654  ;;  %v2648_v2 = vmul.f32 0.6931472, %v4653_v33  ;;  %v2537_v27 = vadd.f32 %v2536_v0, %v2374_v59  ;;  %v2000_v8 = vadd.f32 0.5, %v1904_v55  ;;  %v2383_v24 = vmul.f32 %v2287_v5, %v2191_v35  ;;  %v6446_v59 = vld [vmem:[#allocation5_spill] sm:$0xff]  ;;  %v6447_v55 = vld [vmem:[#allocation3_spill] sm:$0xff] }
 0x2e2   : > { %v1906_v17 = vmul.f32 0.5, %v4655_v58  ;;  %v2097_v40 = vmul.f32 %v2001_v54, %v1615_v31  ;;  %v6448_v58 = vsub.s32 5, %v6447_v55 }
 0x2e3   : > { %v2651_v34 = vmul.f32 0.33333334, %v2648_v2  ;;  %v2096_v37 = vmul.f32 %v2000_v8, %v1544_v3  ;;  %v2499_v50 = vadd.f32 %v2498_v23, %v2383_v24 }
 0x2e4   : > { %v2002_v6 = vadd.f32 0.5, %v1906_v17  ;;  %v2193_v14 = vmax.f32 %v2097_v40, 1e-06  ;;  %v4384_v17 = vld [vmem:[%s6330_s7 + $0x100] sm:$0xff]  }
 0x2e5   : > { %v2653_v10 = vmul.f32 1.442695, %v2651_v34  ;;  %v2192_v52 = vmax.f32 %v2096_v37, 1e-06  ;;  %v2500_v47 = vrot.slane %v2499_v50, 4  ;;  %v4385_v40 = vld [vmem:[%s6330_s7 + $0x180] sm:$0xff]  }
 0x2e6   : > { %v2098_v30 = vmul.f32 %v2002_v6, %v1617_v19  ;;  %v2289_v18 = vmul.f32 %v2193_v14, %v2193_v14  ;;  %v6449_v37 = vsub.s32 7, %v6447_v55 }
 0x2e7   : > { %4656 = vpow2.f32 %v2653_v10  ;;  %v2288_v26 = vmul.f32 %v2192_v52, %v2192_v52  ;;  %v2501_v15 = vadd.f32 %v2500_v47, %v2499_v50  ;;  %v4386_v50 = vld [vmem:[%s6330_s7 + $0x148] sm:$0xff]  }
 0x2e8   : > { %v2194_v11 = vmax.f32 %v2098_v30, 1e-06  ;;  %v2385_v49 = vmul.f32 %v2289_v18, %v2193_v14 }
 0x2e9   : > { %v2384_v29 = vmul.f32 %v2288_v26, %v2192_v52  ;;  %v2502_v31 = vrot.slane %v2501_v15, 2  ;;  %v4387_v52 = vld [vmem:[%s6330_s7 + $0x1c8] sm:$0xff]  }
 0x2ea   : > { %v2290_v7 = vmul.f32 %v2194_v11, %v2194_v11  ;;  %v2525_v9 = vadd.f32 %v2524_v12, %v2385_v49  ;;  %v4389_v49 = vld [vmem:[%s6330_s7 + $0x188] sm:$0xff]  }
 0x2eb   : > { %v2512_v21 = vadd.f32 %v2511_v57, %v2384_v29  ;;  %v2503_v46 = vadd.f32 %v2502_v31, %v2501_v15  ;;  %v4390_v15 = vld [vmem:[%s6330_s7 + $0x150] sm:$0xff]  }
 0x2ec   : > { %v2386_v4 = vmul.f32 %v2290_v7, %v2194_v11  ;;  %v2526_v3 = vrot.slane %v2525_v9, 4  ;;  %v4388_v11 = vld [vmem:[%s6330_s7 + $0x108] sm:$0xff]   ;;  %v4391_v29 = vld [vmem:[%s6330_s7 + $0x1d0] sm:$0xff]  }
 0x2ed   : > { %v2513_v62 = vrot.slane %v2512_v21, 4  ;;  %v2504_v19 = vrot.slane %v2503_v46, 1  ;;  %v4392_v31 = vld [vmem:[%s6330_s7 + $0x110] sm:$0xff]  }
 0x2ee   : > { %v2538_v13 = vadd.f32 %v2537_v27, %v2386_v4  ;;  %v2527_v0 = vadd.f32 %v2526_v3, %v2525_v9  ;;  %v2388_v4 = vld [vmem:[#allocation2 + $0x8] sm:$0xf]  ;;  %v4394_v3 = vld [vmem:[%s6330_s7 + $0x158] sm:$0xff]  }
 0x2ef   : > { %v2514_v48 = vadd.f32 %v2513_v62, %v2512_v21  ;;  %v2505_v63 = vadd.f32 %v2504_v19, %v2503_v46  ;;  %v4393_v21 = vld [vmem:[%s6330_s7 + $0x190] sm:$0xff]   ;;  %v4395_v46 = vld [vmem:[%s6330_s7 + $0x1d8] sm:$0xff]   ;;  %v4402_v19 = vld [vmem:[%s6330_s7 + $0x168] sm:$0xff]  }
 0x2f0   : > { %v2539_v16 = vrot.slane %v2538_v13, 4  ;;  %v2528_v23 = vrot.slane %v2527_v0, 2 }
 0x2f1   : > { %v4657_v28 = vpop.eup %4656  ;;  %v2515_v51 = vrot.slane %v2514_v48, 2 }
 0x2f2   : > { %v2540_v44 = vadd.f32 %v2539_v16, %v2538_v13  ;;  %v2659_v12 = vmul.f32 %v4657_v28, %v2657_v42  ;;  %v2529_v53 = vadd.f32 %v2528_v23, %v2527_v0  ;;  %v4396_v0 = vld [vmem:[%s6330_s7 + $0x118] sm:$0xff]   ;;  %v4400_v16 = vld [vmem:[%s6330_s7 + $0x120] sm:$0xff]   ;;  %v4404_v23 = vld [vmem:[%s6330_s7 + $0x128] sm:$0xff]  }
 0x2f3   : > { %v2516_v57 = vadd.f32 %v2515_v51, %v2514_v48  ;;  %v4397_v42 = vld [vmem:[%s6330_s7 + $0x198] sm:$0xff]   ;;  %v4398_v48 = vld [vmem:[%s6330_s7 + $0x160] sm:$0xff]   ;;  %v4406_v51 = vld [vmem:[%s6330_s7 + $0x170] sm:$0xff]  }
 0x2f4   : > { %v2541_v38 = vrot.slane %v2540_v44, 2  ;;  %v6084_v41 = vadd.f32 %v2661_v45, %v2659_v12  ;;  %v2530_v43 = vrot.slane %v2529_v53, 1  ;;  %v4401_v28 = vld [vmem:[%s6330_s7 + $0x1a0] sm:$0xff]   ;;  %v4405_v45 = vld [vmem:[%s6330_s7 + $0x1a8] sm:$0xff]  }
 0x2f5   : > { %v2517_v56 = vrot.slane %v2516_v57, 1 }
 0x2f6   : > { %v2542_v36 = vadd.f32 %v2541_v38, %v2540_v44  ;;  %v2674_v39 = vrot.slane %v6084_v41, %v6443_v1  ;;  %v2682_v22 = vrot.slane %v6084_v41, %v6444_v25  ;;  %v2531_v20 = vadd.f32 %v2530_v43, %v2529_v53  ;;  %v4407_v44 = vld [vmem:[%s6330_s7 + $0x1f0] sm:$0xff]   ;;  %v4411_v43 = vld [vmem:[%s6330_s7 + $0x1f8] sm:$0xff]  }
 0x2f7   : > { %v2670_v33 = vrot.slane %v6084_v41, %v6445_v61  ;;  %v2678_v35 = vrot.slane %v6084_v41, %v6446_v59  ;;  %v2690_v54 = vrot.slane %v6084_v41, %v6448_v58  ;;  %v2518_v2 = vadd.f32 %v2517_v56, %v2516_v57  ;;  %v4408_v57 = vld [vmem:[%s6330_s7 + $0x130] sm:$0xff]   ;;  %v4412_v56 = vld [vmem:[%s6330_s7 + $0x138] sm:$0xff]   ;;  %v4415_v58 = vld [vmem:[%s6330_s7 + $0x2c0] sm:$0xff]  }
 0x2f8   : > { %v2543_v27 = vrot.slane %v2542_v36, 1  ;;  %v2728_v5 = vpack.c.bf16 %v2674_v39, %v2674_v39  ;;  %v2730_v8 = vpack.c.bf16 %v2682_v22, %v2682_v22  ;;  %v2698_v6 = vrot.slane %v6084_v41, %v6449_v37  ;;  %v4409_v38 = vld [vmem:[%s6330_s7 + $0x1b0] sm:$0xff]  }
 0x2f9   : > { %v2727_v34 = vpack.c.bf16 %v2670_v33, %v2670_v33  ;;  %v2729_v24 = vpack.c.bf16 %v2678_v35, %v2678_v35  ;;  %v2606_v14 = vcombine.low %v2505_v63, %v2518_v2  ;;  %v2732_v30 = vpack.c.bf16 %v2690_v54, %v2690_v54  ;;  %v4410_v63 = vld [vmem:[%s6330_s7 + $0x178] sm:$0xff]   ;;  %v4414_v35 = vld [vmem:[%s6330_s7 + $0x240] sm:$0xff]   ;;  %v4422_v37 = vld [vmem:[%s6330_s7 + $0x250] sm:$0xff]  }
 0x2fa   : > { %v2544_v10 = vadd.f32 %v2543_v27, %v2542_v36  ;;  %3540 = vmatprep.mubr.bf16.mxu1 %v2728_v5  ;;  %3580 = vmatprep.mubr.bf16.mxu0 %v2730_v8  ;;  %v2734_v18 = vpack.c.bf16 %v2698_v6, %v2698_v6  ;;  %v4413_v36 = vld [vmem:[%s6330_s7 + $0x1b8] sm:$0xff]   ;;  %v6450_v39 = vsub.s32 4, %v6447_v55  ;;  %v4416_v54 = vld [vmem:[%s6330_s7 + $0x200] sm:$0xff]   ;;  %v4418_v27 = vld [vmem:[%s6330_s7 + $0x248] sm:$0xff]  }
 0x2fb   : > { %3541 = vmatmul.mubr.bf16.vlgmr.msra.gmra.mrb[48].mxu1 %v2727_v34  ;;  %3581 = vmatmul.mubr.bf16.vlgmr.msra.gmra.mrb[56].mxu0 %v2729_v24  ;;  %v2614_v47 = vrot.slane %v2606_v14, %v6397_v32  ;;  %v4419_v5 = vld [vmem:[%s6330_s7 + $0x2c8] sm:$0xff]   ;;  %v4423_v6 = vld [vmem:[%s6330_s7 + $0x2d0] sm:$0xff]  }
 0x2fc   : > { %v2607_v26 = vcombine.low %v2531_v20, %v2544_v10  ;;  %4074 = vmatpush3.bf16.msra.mxu1 %v4384_v17  ;;  %4096 = vmatpush3.bf16.msra.mxu0 %v4385_v40  ;;  %v2686_v22 = vrot.slane %v6084_v41, %v6450_v39  ;;  %v6451_v20 = vsub.s32 6, %v6447_v55  ;;  %v4417_v55 = vld [vmem:[%s6330_s7 + $0x280] sm:$0xff]   ;;  %v4420_v40 = vld [vmem:[%s6330_s7 + $0x208] sm:$0xff]   ;;  %v4424_v10 = vld [vmem:[%s6330_s7 + $0x210] sm:$0xff]  }
 0x2fd   : > { %3620 = vmatprep.mubr.bf16.mxu1 %v2732_v30  ;;  %3660 = vmatprep.mubr.bf16.mxu0 %v2734_v18  ;;  %v4421_v34 = vld [vmem:[%s6330_s7 + $0x288] sm:$0xff]   ;;  %v4427_v30 = vld [vmem:[%s6330_s7 + $0x2d8] sm:$0xff]  }
 0x2fe   : > { %v2621_v7 = vrot.slane %v2607_v26, %v6397_v32  ;;  %4075 = vmatprep.subr.bf16.mxu1 %v4386_v50  ;;  %4097 = vmatprep.subr.bf16.mxu0 %v4387_v52  ;;  %v2694_v33 = vrot.slane %v6084_v41, %v6451_v20  ;;  %v2731_v2 = vpack.c.bf16 %v2686_v22, %v2686_v22  ;;  %v4425_v50 = vld [vmem:[%s6330_s7 + $0x290] sm:$0xff]   ;;  %v4426_v52 = vld [vmem:[%s6330_s7 + $0x258] sm:$0xff]   ;;  %v4430_v26 = vld [vmem:[%s6330_s7 + $0x260] sm:$0xff]  }
 0x2ff   : > { %v4428_v18 = vld [vmem:[%s6330_s7 + $0x218] sm:$0xff]  }
 0x300   : > { %v2622_v9 = vcombine.low %v2614_v47, %v2621_v7  ;;  %4076 = vmatpush3.bf16.msra.mxu1 %v4388_v11  ;;  %4098 = vmatpush3.bf16.msra.mxu0 %v4389_v49  ;;  %v2733_v41 = vpack.c.bf16 %v2694_v33, %v2694_v33  ;;  %v4429_v47 = vld [vmem:[%s6330_s7 + $0x298] sm:$0xff]   ;;  %v4431_v11 = vld [vmem:[%s6330_s7 + $0x2e0] sm:$0xff]   ;;  %v4434_v7 = vld [vmem:[%s6330_s7 + $0x268] sm:$0xff]  }
 0x301   : > { %4077 = vmatprep.subr.bf16.mxu1 %v4390_v15  ;;  %4099 = vmatprep.subr.bf16.mxu0 %v4391_v29  ;;  %v4432_v49 = vld [vmem:[%s6330_s7 + $0x220] sm:$0xff]   ;;  %v2658_v29 = vld [vmem:[%s6328_s5 + $0x8] sm:$0xf] }
 0x302   : > { %v2629_v62 = vrot.slane %v2622_v9, %v6397_v32  ;;  %v4399_v32 = vld [vmem:[%s6330_s7 + $0x1e0] sm:$0xff]   ;;  %v4435_v9 = vld [vmem:[%s6330_s7 + $0x2e8] sm:$0xff]  }
 0x303   : > { %v4433_v15 = vld [vmem:[%s6330_s7 + $0x2a0] sm:$0xff]  }
 0x304   : > { %v2633_v13 = vadd.f32 %v2629_v62, %v2388_v4  ;;  %4078 = vmatpush3.bf16.msra.mxu1 %v4392_v31  ;;  %4100 = vmatpush3.bf16.msra.mxu0 %v4393_v21  ;;  %v2662_v21 = vld [vmem:[%s6329_s6 + $0x8] sm:$0xf]  ;;  %v4438_v62 = vld [vmem:[%s6330_s7 + $0x270] sm:$0xff]  }
 0x305   : > { %4079 = vmatprep.subr.bf16.mxu1 %v4394_v3  ;;  %4101 = vmatprep.subr.bf16.mxu0 %v4395_v46  ;;  %v4436_v3 = vld [vmem:[%s6330_s7 + $0x228] sm:$0xff]  }
 0x306   : > { %2639 = vst.msk [vmem:[#allocation2 + $0x8] sm:$0xf] %vm6068_vm1, %v2633_v13  ;;  %v4437_v46 = vld [vmem:[%s6330_s7 + $0x2a8] sm:$0xff]   ;;  %v4439_v13 = vld [vmem:[%s6330_s7 + $0x2f0] sm:$0xff]  }
 0x308   : > { %4080 = vmatpush3.bf16.msra.mxu1 %v4396_v0  ;;  %4102 = vmatpush3.bf16.msra.mxu0 %v4397_v42 }
 0x309   : > { %4081 = vmatprep.subr.bf16.mxu1 %v4398_v48  ;;  %4103 = vmatprep.subr.bf16.mxu0 %v4399_v32  ;;  %v4440_v32 = vld [vmem:[%s6330_s7 + $0x230] sm:$0xff]  }
 0x30c   : > { %4082 = vmatpush3.bf16.msra.mxu1 %v4400_v16  ;;  %4104 = vmatpush3.bf16.msra.mxu0 %v4401_v28  ;;  %v4441_v16 = vld [vmem:[%s6330_s7 + $0x2b0] sm:$0xff]  }
 0x30d   : > { %4083 = vmatprep.subr.bf16.mxu1 %v4402_v19  ;;  %4105 = vmatprep.subr.bf16.mxu0 %v4403_v60  ;;  %v2644_v12 = vld [vmem:[#allocation2 + $0x8] sm:$0xf]  ;;  %v4444_v60 = vld [vmem:[%s6330_s7 + $0x238] sm:$0xff]  }
 0x30e   : > { %v2646_v53 = vmul.f32 0.015625, %v2644_v12 }
 0x310   : > { %4084 = vmatpush3.bf16.msra.mxu1 %v4404_v23  ;;  %4106 = vmatpush3.bf16.msra.mxu0 %v4405_v45  ;;  %4658 = vlog2.f32 %v2646_v53  ;;  %v4445_v23 = vld [vmem:[%s6330_s7 + $0x2b8] sm:$0xff]  }
 0x311   : > { %4085 = vmatprep.subr.bf16.mxu1 %v4406_v51  ;;  %4107 = vmatprep.subr.bf16.mxu0 %v4407_v44 }
 0x314   : > { %4086 = vmatpush3.bf16.msra.mxu1 %v4408_v57  ;;  %4108 = vmatpush3.bf16.msra.mxu0 %v4409_v38  ;;  %v2931_v38 = vld [vmem:[%s6331_s8] sm:$0x1] }
 0x315   : > { %4087 = vmatprep.subr.bf16.mxu1 %v4410_v63  ;;  %4109 = vmatprep.subr.bf16.mxu0 %v4411_v43 }
 0x318   : > { %4088 = vmatpush3.bf16.msra.mxu1 %v4412_v56  ;;  %4110 = vmatpush3.bf16.msra.mxu0 %v4413_v36 }
 0x319   : > { %4117 = vmatprep.subr.bf16.mxu1 %v4414_v35  ;;  %4139 = vmatprep.subr.bf16.mxu0 %v4415_v58 }
 0x31a   : > { %v4659_v8 = vpop.eup %4658 }
 0x31b   : > { %3621 = vmatmul.mubr.bf16.vlgmr.msra.gmra.mrb[52].mxu1 %v2731_v2  ;;  %3661 = vmatmul.mubr.bf16.vlgmr.msra.gmra.mrb[60].mxu0 %v2733_v41  ;;  %v2650_v17 = vmul.f32 0.6931472, %v4659_v8 }
 0x31c   : > { %4118 = vmatpush3.bf16.msra.mxu1 %v4416_v54  ;;  %4140 = vmatpush3.bf16.msra.mxu0 %v4417_v55 }
 0x31d   : > { %v2652_v24 = vmul.f32 0.33333334, %v2650_v17  ;;  %4119 = vmatprep.subr.bf16.mxu1 %v4418_v27  ;;  %4141 = vmatprep.subr.bf16.mxu0 %v4419_v5 }
 0x31f   : > { %v2655_v14 = vmul.f32 1.442695, %v2652_v24 }
 0x320   : > { %4120 = vmatpush3.bf16.msra.mxu1 %v4420_v40  ;;  %4142 = vmatpush3.bf16.msra.mxu0 %v4421_v34 }
 0x321   : > { %4660 = vpow2.f32 %v2655_v14  ;;  %4121 = vmatprep.subr.bf16.mxu1 %v4422_v37  ;;  %4143 = vmatprep.subr.bf16.mxu0 %v4423_v6 }
 0x324   : > { %4122 = vmatpush3.bf16.msra.mxu1 %v4424_v10  ;;  %4144 = vmatpush3.bf16.msra.mxu0 %v4425_v50 }
 0x325   : > { %4123 = vmatprep.subr.bf16.mxu1 %v4426_v52  ;;  %4145 = vmatprep.subr.bf16.mxu0 %v4427_v30 }
 0x328   : > { %4124 = vmatpush3.bf16.msra.mxu1 %v4428_v18  ;;  %4146 = vmatpush3.bf16.msra.mxu0 %v4429_v47 }
 0x329   : > { %4125 = vmatprep.subr.bf16.mxu1 %v4430_v26  ;;  %4147 = vmatprep.subr.bf16.mxu0 %v4431_v11 }
 0x32b   : > { %v4661_v31 = vpop.eup %4660 }
 0x32c   : > { %v2660_v4 = vmul.f32 %v4661_v31, %v2658_v29  ;;  %4126 = vmatpush3.bf16.msra.mxu1 %v4432_v49  ;;  %4148 = vmatpush3.bf16.msra.mxu0 %v4433_v15 }
 0x32d   : > { %4127 = vmatprep.subr.bf16.mxu1 %v4434_v7  ;;  %4149 = vmatprep.subr.bf16.mxu0 %v4435_v9 }
 0x32e   : > { %v2664_v0 = vadd.f32 %v2662_v21, %v2660_v4 }
 0x330   : > { %v2706_v42 = vrot.slane %v2664_v0, %v6443_v1  ;;  %v2714_v48 = vrot.slane %v2664_v0, %v6444_v25  ;;  %4128 = vmatpush3.bf16.msra.mxu1 %v4436_v3  ;;  %4150 = vmatpush3.bf16.msra.mxu0 %v4437_v46  ;;  %v4442_v1 = vld [vmem:[%s6330_s7 + $0x278] sm:$0xff]   ;;  %v2702_v45 = vrot.slane %v2664_v0, %v6445_v61 }
 0x331   : > { %4129 = vmatprep.subr.bf16.mxu1 %v4438_v62  ;;  %4151 = vmatprep.subr.bf16.mxu0 %v4439_v13  ;;  %v4443_v25 = vld [vmem:[%s6330_s7 + $0x2f8] sm:$0xff]   ;;  %v2710_v51 = vrot.slane %v2664_v0, %v6446_v59 }
 0x332   : > { %v2736_v28 = vpack.c.bf16 %v2706_v42, %v2706_v42  ;;  %v2738_v19 = vpack.c.bf16 %v2714_v48, %v2714_v48  ;;  %v2735_v44 = vpack.c.bf16 %v2702_v45, %v2702_v45 }
 0x333   : > { %v2737_v12 = vpack.c.bf16 %v2710_v51, %v2710_v51 }
 0x334   : > { %3700 = vmatprep.mubr.bf16.mxu1 %v2736_v28  ;;  %3740 = vmatprep.mubr.bf16.mxu0 %v2738_v19 }
 0x335   : > { %4130 = vmatpush3.bf16.msra.mxu1 %v4440_v32  ;;  %4152 = vmatpush3.bf16.msra.mxu0 %v4441_v16 }
 0x336   : > { %4131 = vmatprep.subr.bf16.mxu1 %v4442_v1  ;;  %4153 = vmatprep.subr.bf16.mxu0 %v4443_v25 }
 0x339   : > { %4132 = vmatpush3.bf16.msra.mxu1 %v4444_v60  ;;  %4154 = vmatpush3.bf16.msra.mxu0 %v4445_v23 }
 0x33c   : > { %3701 = vmatmul.mubr.bf16.vlgmr.msra.gmra.mrb[56].mxu1 %v2735_v44  ;;  %3741 = vmatmul.mubr.bf16.vlgmr.msra.gmra.mrb[64].mxu0 %v2737_v12 }
 0x3ce   : > { %v4045_v53 = vpop.f32.mrb[48].mxu1  ;;  %v4067_v57 = vpop.f32.mrb[56].mxu0 }
 0x3cf   : > { %v4046_v63 = vpop.f32.mrb[49].mxu1  ;;  %v4068_v43 = vpop.f32.mrb[57].mxu0 }
 0x3d0   : > { %v4047_v56 = vadd.f32 %v4046_v63, %v4045_v53  ;;  %v4069_v36 = vadd.f32 %v4068_v43, %v4067_v57  ;;  %v4048_v39 = vpop.f32.mrb[50].mxu1  ;;  %v4070_v61 = vpop.f32.mrb[58].mxu0 }
 0x3d1   : > { %v4049_v22 = vpop.f32.mrb[51].mxu1  ;;  %v4071_v59 = vpop.f32.mrb[59].mxu0 }
 0x3d2   : > { %v3543_v20 = vadd.f32 %v4047_v56, %v2931_v38 }
 0x3d4   : > { %v3583_v33 = vadd.f32 %v4069_v36, %v3543_v20 }
 0x3ee   : > { %v4089_v35 = vpop.f32.mrb[52].mxu1  ;;  %v4111_v58 = vpop.f32.mrb[60].mxu0 }
 0x3ef   : > { %v4090_v54 = vpop.f32.mrb[53].mxu1  ;;  %v4112_v55 = vpop.f32.mrb[61].mxu0 }
 0x3f0   : > { %v4091_v2 = vadd.f32 %v4090_v54, %v4089_v35  ;;  %v4113_v41 = vadd.f32 %v4112_v55, %v4111_v58  ;;  %v4092_v27 = vpop.f32.mrb[54].mxu1  ;;  %v4114_v5 = vpop.f32.mrb[62].mxu0 }
 0x3f1   : > { %v4093_v8 = vpop.f32.mrb[55].mxu1  ;;  %v4115_v17 = vpop.f32.mrb[63].mxu0 }
 0x3f2   : > { %v3623_v40 = vadd.f32 %v4091_v2, %v3583_v33 }
 0x3f4   : > { %v3663_v34 = vadd.f32 %v4113_v41, %v3623_v40 }
 0x40f   : > { %v4133_v24 = vpop.f32.mrb[56].mxu1  ;;  %v4155_v37 = vpop.f32.mrb[64].mxu0 }
 0x410   : > { %v4134_v6 = vpop.f32.mrb[57].mxu1  ;;  %v4156_v14 = vpop.f32.mrb[65].mxu0 }
 0x411   : > { %v4135_v10 = vadd.f32 %v4134_v6, %v4133_v24  ;;  %v4157_v50 = vadd.f32 %v4156_v14, %v4155_v37  ;;  %v4136_v52 = vpop.f32.mrb[58].mxu1  ;;  %v4158_v30 = vpop.f32.mrb[66].mxu0 }
 0x412   : > { %v4137_v18 = vpop.f32.mrb[59].mxu1  ;;  %v4159_v47 = vpop.f32.mrb[67].mxu0 }
 0x413   : > { %v3703_v26 = vadd.f32 %v4135_v10, %v3663_v34 }
 0x415   : > { %v3743_v11 = vadd.f32 %v4157_v50, %v3703_v26 }
 0x417   : > { %3748 = vst [vmem:[%s356_s15] sm:$0x1] %v3743_v11 }
 0x418 PF: > { %s19_s11 = sadd.s32 1, %s4684_s11   ;;  %s6452_s30 = smov %s4680_s10 }
 0x419   : > { %p16_p5 = scmp.ge.s32.totalorder %s19_s11, 4   ;;  %s6453_s10 = smov %s6455_s12 }
 0x41b   :  { %18 = sbr.rel (!%p16_p5) target bundleno = 2 (0x2), region = 94 }

</bundles_post_ra>
